<compile_context>
chip_gen: v6e
topology: v6e:2x2x1
jax: 0.10.0
libtpu: 0.0.40
codegen_flags: <defaults>
</compile_context>

<pallas_src>
import numpy as np
import jax
import jax.numpy as jnp
from jax import lax
from jax.experimental import pallas as pl
from jax.experimental.pallas import tpu as pltpu

H_IN = 16
W_IN = 16
HW_IN = H_IN * W_IN
KMAX = 9 * 32 + 1                  # widest conv: 9 taps * 32 cin + 1 bias row
_LOG2 = {2: 1, 4: 2, 8: 3, 16: 4, 32: 5}


# ----------------------------- in-kernel helpers -----------------------------


def _edge_masks(h, w):
    """Per-tap validity masks for a 3x3 'same' conv on a (c, h*w) flat layout.

    masks[(dy, dx)] is a (1, h*w) bool (or None) that is False wherever tap (dy, dx)
    would read outside the h x w image.  Both vertical AND horizontal 'same' padding
    are handled purely by masking, so the staging buffer never needs zeroing.
    """
    hw = h * w
    lane = lax.broadcasted_iota(jnp.int32, (1, hw), 1)
    x = jnp.bitwise_and(lane, w - 1)                 # w is a power of two
    y = lax.shift_right_logical(lane, _LOG2[w])
    vx = {0: x >= 1, 2: x <= w - 2}
    vy = {0: y >= 1, 2: y <= h - 2}
    masks = {}
    for dy in range(3):
        for dx in range(3):
            parts = [m for m in (vy.get(dy), vx.get(dx)) if m is not None]
            if not parts:
                masks[(dy, dx)] = None
            elif len(parts) == 1:
                masks[(dy, dx)] = parts[0]
            else:
                masks[(dy, dx)] = jnp.logical_and(parts[0], parts[1])
    return masks


def _pool_compaction(h, w):
    """(h*w, h*w/4) 0/1 matrix keeping the even-(y,x) entries; built from iota in-kernel."""
    hw, ho, wo = h * w, h // 2, w // 2
    p = lax.broadcasted_iota(jnp.int32, (hw, ho * wo), 0)
    q = lax.broadcasted_iota(jnp.int32, (hw, ho * wo), 1)
    qy = lax.shift_right_logical(q, _LOG2[wo])
    qx = jnp.bitwise_and(q, wo - 1)
    return (p == 2 * qy * w + 2 * qx).astype(jnp.float32)


def _upsample_matrix(h, w):
    """(h*w, 4*h*w) 0/1 nearest-neighbor 2x replication matrix; built from iota in-kernel."""
    hw, wb = h * w, 2 * w
    p = lax.broadcasted_iota(jnp.int32, (hw, 4 * hw), 0)
    q = lax.broadcasted_iota(jnp.int32, (hw, 4 * hw), 1)
    qy = lax.shift_right_logical(q, _LOG2[wb])
    qx = jnp.bitwise_and(q, wb - 1)
    src = lax.shift_right_logical(qy, 1) * w + lax.shift_right_logical(qx, 1)
    return (p == src).astype(jnp.float32)


def _conv3x3(a, wm, act_ref, taps_ref, masks, *, cin, h, w, relu):
    """3x3 'same' conv (+ fused bias, optional ReLU) as ONE MXU matmul.

    a:   (cin, h*w) activation value (channel-major, flat spatial).
    wm:  (cout, 9*cin + 1) weight value; column 9*cin holds the bias.
    """
    hw = h * w
    pad = w + 1                                      # largest |tap shift|
    act_ref[0:cin, pad:pad + hw] = a                 # stage (no zeroing; masks do padding)
    for dy in range(3):
        for dx in range(3):
            t = dy * 3 + dx
            shift = (dy - 1) * w + (dx - 1)
            tap = act_ref[0:cin, pad + shift:pad + shift + hw]
            m = masks[(dy, dx)]
            if m is not None:
                tap = jnp.where(m, tap, 0.0)
            taps_ref[t * cin:(t + 1) * cin, 0:hw] = tap
    taps_ref[9 * cin:9 * cin + 1, 0:hw] = jnp.ones((1, hw), jnp.float32)   # bias row
    out = jnp.dot(wm, taps_ref[0:9 * cin + 1, 0:hw],
                  preferred_element_type=jnp.float32)
    return jnp.maximum(out, 0.0) if relu else out


def _maxpool2x2(a, act_ref, masks, *, h, w):
    """2x2 max pool: VPU max over the 4 window taps + ONE compaction matmul."""
    c, hw = a.shape
    act_ref[0:c, 0:hw] = a
    # Taps read up to hw + w elements; positions reading garbage (row/array wrap) are
    # exactly the odd-(y,x) positions discarded by the compaction, but mask them so a
    # stale NaN can never poison the 0-weighted matmul contribution.
    m = jnp.maximum(a, jnp.where(masks[(1, 2)], act_ref[0:c, 1:1 + hw], 0.0))
    m = jnp.maximum(m, jnp.where(masks[(2, 1)], act_ref[0:c, w:w + hw], 0.0))
    m = jnp.maximum(m, jnp.where(masks[(2, 2)], act_ref[0:c, w + 1:w + 1 + hw], 0.0))
    return jnp.dot(m, _pool_compaction(h, w), preferred_element_type=jnp.float32)


def _dae_fused_kernel(x_ref, w_ref, o_ref, act_ref, taps_ref):
    # Edge masks computed once per distinct spatial size and reused (no per-conv re-emit).
    m16, m8, m4 = _edge_masks(16, 16), _edge_masks(8, 8), _edge_masks(4, 4)

    a = x_ref[...]                                                          # (1, 256)
    a = _conv3x3(a, w_ref[0, 0:32, 0:10], act_ref, taps_ref, m16,
                 cin=1, h=16, w=16, relu=True)                              # (32, 256)
    a = _maxpool2x2(a, act_ref, m16, h=16, w=16)                            # (32, 64)
    a = _conv3x3(a, w_ref[1, 0:32, 0:KMAX], act_ref, taps_ref, m8,
                 cin=32, h=8, w=8, relu=True)                               # (32, 64)
    a = _maxpool2x2(a, act_ref, m8, h=8, w=8)                               # (32, 16)
    a = _conv3x3(a, w_ref[2, 0:32, 0:KMAX], act_ref, taps_ref, m4,
                 cin=32, h=4, w=4, relu=True)                               # (32, 16)
    a = jnp.dot(a, _upsample_matrix(4, 4), preferred_element_type=jnp.float32)   # (32, 64)
    a = _conv3x3(a, w_ref[3, 0:32, 0:KMAX], act_ref, taps_ref, m8,
                 cin=32, h=8, w=8, relu=True)                               # (32, 64)
    a = jnp.dot(a, _upsample_matrix(8, 8), preferred_element_type=jnp.float32)   # (32, 256)
    a = _conv3x3(a, w_ref[4, 0:1, 0:KMAX], act_ref, taps_ref, m16,
                 cin=32, h=16, w=16, relu=False)                            # (1, 256)
    o_ref[...] = a


# ----------------------------- wrapper-side prep -----------------------------


def _pack_weights(params):
    """Pack all 5 convs into one (5, 32, KMAX) buffer.

    Row i: [co, 0:9*cin] = W[co, (dy*3+dx)*cin + ci] (matches in-kernel tap order),
           [co, 9*cin]   = bias  (folded into the matmul via a ones tap row).
    """
    def entry(name, cin):
        w, b = params[name]                              # (3,3,cin,cout), (cout,)
        cout = w.shape[-1]
        wm = jnp.transpose(w.reshape(9 * cin, cout))     # (cout, 9*cin)
        row = jnp.concatenate([wm, b.reshape(cout, 1)], axis=1)
        return jnp.pad(row, ((0, 32 - cout), (0, KMAX - (9 * cin + 1))))
    return jnp.stack([entry("enc_conv1", 1), entry("enc_conv2", 32),
                      entry("dec_conv1", 32), entry("dec_conv2", 32),
                      entry("output", 32)], axis=0)


def denoising_encoder_forward(params, x):
    """x: (H, W) f32.  Returns NCHW (1, 1, H, W) like the PyTorch module."""
    H, W = x.shape
    assert (H, W) == (H_IN, W_IN)
    # noise = zeros * randn == 0  ->  x unchanged.
    wpack = _pack_weights(params)                        # (5, 32, 289): single DMA

    conv_flops = 2 * (32 * 10 * 256 + 32 * KMAX * 64 + 32 * KMAX * 16
                      + 32 * KMAX * 64 + 1 * KMAX * 256)
    glue_flops = 2 * 32 * (256 * 64 + 64 * 16 + 16 * 64 + 64 * 256)
    bytes_accessed = 4 * (HW_IN + int(np.prod(wpack.shape)) + HW_IN)

    out = pl.pallas_call(
        _dae_fused_kernel,
        out_shape=jax.ShapeDtypeStruct((1, HW_IN), jnp.float32),
        grid=(1,),
        in_specs=[pl.BlockSpec((1, HW_IN), lambda i: (0, 0)),
                  pl.BlockSpec((5, 32, KMAX), lambda i: (0, 0, 0))],
        out_specs=pl.BlockSpec((1, HW_IN), lambda i: (0, 0)),
        scratch_shapes=[
            pltpu.VMEM((32, HW_IN + 2 * (W_IN + 1)), jnp.float32),  # staging buffer
            pltpu.VMEM((KMAX, HW_IN), jnp.float32),                 # unfolded taps + ones
        ],
        compiler_params=pltpu.CompilerParams(
            dimension_semantics=("arbitrary",)),
        cost_estimate=pl.CostEstimate(flops=conv_flops + glue_flops,
                                      transcendentals=0,
                                      bytes_accessed=bytes_accessed),
    )(x.reshape(1, HW_IN), wpack)
    return out.reshape(1, 1, H, W)


# ------------------------------ params & reference ---------------------------


def init_params(key, input_size=1):
    def conv_init(k, cin, cout):
        kw, kb = jax.random.split(k)
        fan_in = cin * 9
        scale = 1.0 / (fan_in ** 0.5)
        w = jax.random.uniform(kw, (3, 3, cin, cout), jnp.float32, -scale, scale)
        b = jax.random.uniform(kb, (cout,), jnp.float32, -scale, scale)
        return w, b

    keys = jax.random.split(key, 5)
    return {
        "enc_conv1": conv_init(keys[0], input_size, 32),
        "enc_conv2": conv_init(keys[1], 32, 32),
        "dec_conv1": conv_init(keys[2], 32, 32),
        "dec_conv2": conv_init(keys[3], 32, 32),
        "output": conv_init(keys[4], 32, 1),
    }


def _ref_conv(x, w, b):
    y = lax.conv_general_dilated(
        x[None], w, (1, 1), "SAME", dimension_numbers=("NHWC", "HWIO", "NHWC"))[0]
    return y + b


def _ref_pool(h):
    H, W, C = h.shape
    return jnp.max(h.reshape(H // 2, 2, W // 2, 2, C), axis=(1, 3))


def _ref_up(h):
    return jnp.repeat(jnp.repeat(h, 2, axis=0), 2, axis=1)


def ref_forward(params, x):
    h = x[..., None]
    w, b = params["enc_conv1"]; h = _ref_pool(jax.nn.relu(_ref_conv(h, w, b)))
    w, b = params["enc_conv2"]; h = _ref_pool(jax.nn.relu(_ref_conv(h, w, b)))
    w, b = params["dec_conv1"]; h = _ref_up(jax.nn.relu(_ref_conv(h, w, b)))
    w, b = params["dec_conv2"]; h = _ref_up(jax.nn.relu(_ref_conv(h, w, b)))
    w, b = params["output"];    h = _ref_conv(h, w, b)
    return jnp.transpose(h, (2, 0, 1))[None]


# ---------------------------------- main -------------------------------------

if __name__ == "__main__":
    key = jax.random.PRNGKey(0)
    kx, kp = jax.random.split(key)

    x = jax.random.normal(kx, (H_IN, W_IN), dtype=jnp.float32)
    params = init_params(kp, input_size=1)

    fwd = jax.jit(denoising_encoder_forward)
    out = jax.block_until_ready(fwd(params, x))
    assert out.shape == (1, 1, H_IN, W_IN), out.shape

    ref = ref_forward(params, x)
    max_err = float(jnp.max(jnp.abs(out - ref)))
    assert max_err < 2e-3, f"mismatch vs reference: {max_err}"

    print("KERNEL_OK")
</pallas_src>

<mosaic_0001>
module attributes {stable_mosaic.version = 11 : i64} {
  func.func @_dae_fused_kernel(%arg0: i32, %arg1: memref<1x256xf32, #tpu.memory_space<vmem>>, %arg2: memref<5x32x289xf32, #tpu.memory_space<vmem>>, %arg3: memref<1x256xf32, #tpu.memory_space<vmem>>, %arg4: memref<32x290xf32, #tpu.memory_space<vmem>>, %arg5: memref<289x256xf32, #tpu.memory_space<vmem>>) attributes {dimension_semantics = [#tpu.dimension_semantics<arbitrary>], iteration_bounds = array<i64: 1>, scalar_prefetch = 0 : i64, scratch_operands = 2 : i64, tpu.core_type = #tpu.core_type<tc>, window_params = [{pipeline_mode = #tpu.pipeline_mode<synchronous>, transform_indices = @transform_0, window_bounds = array<i64: 1, 256>}, {pipeline_mode = #tpu.pipeline_mode<synchronous>, transform_indices = @transform_1, window_bounds = array<i64: 5, 32, 289>}, {pipeline_mode = #tpu.pipeline_mode<synchronous>, transform_indices = @transform_2, window_bounds = array<i64: 1, 256>}]} {
    %0 = tpu.iota {dimensions = array<i32: 1>} : vector<1x256xi32>
    %c15_i32 = arith.constant 15 : i32
    %1 = vector.broadcast %c15_i32 : i32 to vector<1x256xi32>
    %2 = arith.andi %0, %1 : vector<1x256xi32>
    %c4_i32 = arith.constant 4 : i32
    %3 = vector.broadcast %c4_i32 : i32 to vector<1x256xi32>
    %4 = arith.shrui %0, %3 : vector<1x256xi32>
    %c1_i32 = arith.constant 1 : i32
    %5 = vector.broadcast %c1_i32 : i32 to vector<1x256xi32>
    %6 = arith.cmpi sge, %2, %5 : vector<1x256xi32>
    %c14_i32 = arith.constant 14 : i32
    %7 = vector.broadcast %c14_i32 : i32 to vector<1x256xi32>
    %8 = arith.cmpi sle, %2, %7 : vector<1x256xi32>
    %c1_i32_0 = arith.constant 1 : i32
    %9 = vector.broadcast %c1_i32_0 : i32 to vector<1x256xi32>
    %10 = arith.cmpi sge, %4, %9 : vector<1x256xi32>
    %c14_i32_1 = arith.constant 14 : i32
    %11 = vector.broadcast %c14_i32_1 : i32 to vector<1x256xi32>
    %12 = arith.cmpi sle, %4, %11 : vector<1x256xi32>
    %13 = arith.andi %10, %6 : vector<1x256xi1>
    %14 = arith.andi %10, %8 : vector<1x256xi1>
    %15 = arith.andi %12, %6 : vector<1x256xi1>
    %16 = arith.andi %12, %8 : vector<1x256xi1>
    %17 = tpu.iota {dimensions = array<i32: 1>} : vector<1x64xi32>
    %c7_i32 = arith.constant 7 : i32
    %18 = vector.broadcast %c7_i32 : i32 to vector<1x64xi32>
    %19 = arith.andi %17, %18 : vector<1x64xi32>
    %c3_i32 = arith.constant 3 : i32
    %20 = vector.broadcast %c3_i32 : i32 to vector<1x64xi32>
    %21 = arith.shrui %17, %20 : vector<1x64xi32>
    %c1_i32_2 = arith.constant 1 : i32
    %22 = vector.broadcast %c1_i32_2 : i32 to vector<1x64xi32>
    %23 = arith.cmpi sge, %19, %22 : vector<1x64xi32>
    %c6_i32 = arith.constant 6 : i32
    %24 = vector.broadcast %c6_i32 : i32 to vector<1x64xi32>
    %25 = arith.cmpi sle, %19, %24 : vector<1x64xi32>
    %c1_i32_3 = arith.constant 1 : i32
    %26 = vector.broadcast %c1_i32_3 : i32 to vector<1x64xi32>
    %27 = arith.cmpi sge, %21, %26 : vector<1x64xi32>
    %c6_i32_4 = arith.constant 6 : i32
    %28 = vector.broadcast %c6_i32_4 : i32 to vector<1x64xi32>
    %29 = arith.cmpi sle, %21, %28 : vector<1x64xi32>
    %30 = arith.andi %27, %23 : vector<1x64xi1>
    %31 = arith.andi %27, %25 : vector<1x64xi1>
    %32 = arith.andi %29, %23 : vector<1x64xi1>
    %33 = arith.andi %29, %25 : vector<1x64xi1>
    %34 = tpu.iota {dimensions = array<i32: 1>} : vector<1x16xi32>
    %c3_i32_5 = arith.constant 3 : i32
    %35 = vector.broadcast %c3_i32_5 : i32 to vector<1x16xi32>
    %36 = arith.andi %34, %35 : vector<1x16xi32>
    %c2_i32 = arith.constant 2 : i32
    %37 = vector.broadcast %c2_i32 : i32 to vector<1x16xi32>
    %38 = arith.shrui %34, %37 : vector<1x16xi32>
    %c1_i32_6 = arith.constant 1 : i32
    %39 = vector.broadcast %c1_i32_6 : i32 to vector<1x16xi32>
    %40 = arith.cmpi sge, %36, %39 : vector<1x16xi32>
    %c2_i32_7 = arith.constant 2 : i32
    %41 = vector.broadcast %c2_i32_7 : i32 to vector<1x16xi32>
    %42 = arith.cmpi sle, %36, %41 : vector<1x16xi32>
    %c1_i32_8 = arith.constant 1 : i32
    %43 = vector.broadcast %c1_i32_8 : i32 to vector<1x16xi32>
    %44 = arith.cmpi sge, %38, %43 : vector<1x16xi32>
    %c2_i32_9 = arith.constant 2 : i32
    %45 = vector.broadcast %c2_i32_9 : i32 to vector<1x16xi32>
    %46 = arith.cmpi sle, %38, %45 : vector<1x16xi32>
    %47 = arith.andi %44, %40 : vector<1x16xi1>
    %48 = arith.andi %44, %42 : vector<1x16xi1>
    %49 = arith.andi %46, %40 : vector<1x16xi1>
    %50 = arith.andi %46, %42 : vector<1x16xi1>
    %c0 = arith.constant 0 : index
    %c0_10 = arith.constant 0 : index
    %51 = vector.load %arg1[%c0, %c0_10] : memref<1x256xf32, #tpu.memory_space<vmem>>, vector<1x256xf32>
    %c0_11 = arith.constant 0 : index
    %c0_12 = arith.constant 0 : index
    %c0_13 = arith.constant 0 : index
    %52 = vector.load %arg2[%c0_11, %c0_12, %c0_13] : memref<5x32x289xf32, #tpu.memory_space<vmem>>, vector<1x32x10xf32>
    %53 = vector.shape_cast %52 : vector<1x32x10xf32> to vector<32x10xf32>
    %c0_14 = arith.constant 0 : index
    %c17 = arith.constant 17 : index
    %54 = vector.load %arg4[%c0_14, %c17] : memref<32x290xf32, #tpu.memory_space<vmem>>, vector<1x256xf32>
    tpu.vector_store %arg4[%c0_14, %c17], %51 {strides = array<i32>} : memref<32x290xf32, #tpu.memory_space<vmem>>, vector<1x256xf32>,
    %c0_15 = arith.constant 0 : index
    %c0_16 = arith.constant 0 : index
    %55 = vector.load %arg4[%c0_15, %c0_16] : memref<32x290xf32, #tpu.memory_space<vmem>>, vector<1x256xf32>
    %cst = arith.constant 0.000000e+00 : f32
    %56 = vector.broadcast %cst : f32 to vector<1x256xf32>
    %57 = arith.select %13, %55, %56 : vector<1x256xi1>, vector<1x256xf32>
    %c0_17 = arith.constant 0 : index
    %c0_18 = arith.constant 0 : index
    %58 = vector.load %arg5[%c0_17, %c0_18] : memref<289x256xf32, #tpu.memory_space<vmem>>, vector<1x256xf32>
    tpu.vector_store %arg5[%c0_17, %c0_18], %57 {strides = array<i32>} : memref<289x256xf32, #tpu.memory_space<vmem>>, vector<1x256xf32>,
    %c0_19 = arith.constant 0 : index
    %c1 = arith.constant 1 : index
    %59 = vector.load %arg4[%c0_19, %c1] : memref<32x290xf32, #tpu.memory_space<vmem>>, vector<1x256xf32>
    %cst_20 = arith.constant 0.000000e+00 : f32
    %60 = vector.broadcast %cst_20 : f32 to vector<1x256xf32>
    %61 = arith.select %10, %59, %60 : vector<1x256xi1>, vector<1x256xf32>
    %c1_21 = arith.constant 1 : index
    %c0_22 = arith.constant 0 : index
    %62 = vector.load %arg5[%c1_21, %c0_22] : memref<289x256xf32, #tpu.memory_space<vmem>>, vector<1x256xf32>
    tpu.vector_store %arg5[%c1_21, %c0_22], %61 {strides = array<i32>} : memref<289x256xf32, #tpu.memory_space<vmem>>, vector<1x256xf32>,
    %c0_23 = arith.constant 0 : index
    %c2 = arith.constant 2 : index
    %63 = vector.load %arg4[%c0_23, %c2] : memref<32x290xf32, #tpu.memory_space<vmem>>, vector<1x256xf32>
    %cst_24 = arith.constant 0.000000e+00 : f32
    %64 = vector.broadcast %cst_24 : f32 to vector<1x256xf32>
    %65 = arith.select %14, %63, %64 : vector<1x256xi1>, vector<1x256xf32>
    %c2_25 = arith.constant 2 : index
    %c0_26 = arith.constant 0 : index
    %66 = vector.load %arg5[%c2_25, %c0_26] : memref<289x256xf32, #tpu.memory_space<vmem>>, vector<1x256xf32>
    tpu.vector_store %arg5[%c2_25, %c0_26], %65 {strides = array<i32>} : memref<289x256xf32, #tpu.memory_space<vmem>>, vector<1x256xf32>,
    %c0_27 = arith.constant 0 : index
    %c16 = arith.constant 16 : index
    %67 = vector.load %arg4[%c0_27, %c16] : memref<32x290xf32, #tpu.memory_space<vmem>>, vector<1x256xf32>
    %cst_28 = arith.constant 0.000000e+00 : f32
    %68 = vector.broadcast %cst_28 : f32 to vector<1x256xf32>
    %69 = arith.select %6, %67, %68 : vector<1x256xi1>, vector<1x256xf32>
    %c3 = arith.constant 3 : index
    %c0_29 = arith.constant 0 : index
    %70 = vector.load %arg5[%c3, %c0_29] : memref<289x256xf32, #tpu.memory_space<vmem>>, vector<1x256xf32>
    tpu.vector_store %arg5[%c3, %c0_29], %69 {strides = array<i32>} : memref<289x256xf32, #tpu.memory_space<vmem>>, vector<1x256xf32>,
    %c0_30 = arith.constant 0 : index
    %c17_31 = arith.constant 17 : index
    %71 = vector.load %arg4[%c0_30, %c17_31] : memref<32x290xf32, #tpu.memory_space<vmem>>, vector<1x256xf32>
    %c4 = arith.constant 4 : index
    %c0_32 = arith.constant 0 : index
    %72 = vector.load %arg5[%c4, %c0_32] : memref<289x256xf32, #tpu.memory_space<vmem>>, vector<1x256xf32>
    tpu.vector_store %arg5[%c4, %c0_32], %71 {strides = array<i32>} : memref<289x256xf32, #tpu.memory_space<vmem>>, vector<1x256xf32>,
    %c0_33 = arith.constant 0 : index
    %c18 = arith.constant 18 : index
    %73 = vector.load %arg4[%c0_33, %c18] : memref<32x290xf32, #tpu.memory_space<vmem>>, vector<1x256xf32>
    %cst_34 = arith.constant 0.000000e+00 : f32
    %74 = vector.broadcast %cst_34 : f32 to vector<1x256xf32>
    %75 = arith.select %8, %73, %74 : vector<1x256xi1>, vector<1x256xf32>
    %c5 = arith.constant 5 : index
    %c0_35 = arith.constant 0 : index
    %76 = vector.load %arg5[%c5, %c0_35] : memref<289x256xf32, #tpu.memory_space<vmem>>, vector<1x256xf32>
    tpu.vector_store %arg5[%c5, %c0_35], %75 {strides = array<i32>} : memref<289x256xf32, #tpu.memory_space<vmem>>, vector<1x256xf32>,
    %c0_36 = arith.constant 0 : index
    %c32 = arith.constant 32 : index
    %77 = vector.load %arg4[%c0_36, %c32] : memref<32x290xf32, #tpu.memory_space<vmem>>, vector<1x256xf32>
    %cst_37 = arith.constant 0.000000e+00 : f32
    %78 = vector.broadcast %cst_37 : f32 to vector<1x256xf32>
    %79 = arith.select %15, %77, %78 : vector<1x256xi1>, vector<1x256xf32>
    %c6 = arith.constant 6 : index
    %c0_38 = arith.constant 0 : index
    %80 = vector.load %arg5[%c6, %c0_38] : memref<289x256xf32, #tpu.memory_space<vmem>>, vector<1x256xf32>
    tpu.vector_store %arg5[%c6, %c0_38], %79 {strides = array<i32>} : memref<289x256xf32, #tpu.memory_space<vmem>>, vector<1x256xf32>,
    %c0_39 = arith.constant 0 : index
    %c33 = arith.constant 33 : index
    %81 = vector.load %arg4[%c0_39, %c33] : memref<32x290xf32, #tpu.memory_space<vmem>>, vector<1x256xf32>
    %cst_40 = arith.constant 0.000000e+00 : f32
    %82 = vector.broadcast %cst_40 : f32 to vector<1x256xf32>
    %83 = arith.select %12, %81, %82 : vector<1x256xi1>, vector<1x256xf32>
    %c7 = arith.constant 7 : index
    %c0_41 = arith.constant 0 : index
    %84 = vector.load %arg5[%c7, %c0_41] : memref<289x256xf32, #tpu.memory_space<vmem>>, vector<1x256xf32>
    tpu.vector_store %arg5[%c7, %c0_41], %83 {strides = array<i32>} : memref<289x256xf32, #tpu.memory_space<vmem>>, vector<1x256xf32>,
    %c0_42 = arith.constant 0 : index
    %c34 = arith.constant 34 : index
    %85 = vector.load %arg4[%c0_42, %c34] : memref<32x290xf32, #tpu.memory_space<vmem>>, vector<1x256xf32>
    %cst_43 = arith.constant 0.000000e+00 : f32
    %86 = vector.broadcast %cst_43 : f32 to vector<1x256xf32>
    %87 = arith.select %16, %85, %86 : vector<1x256xi1>, vector<1x256xf32>
    %c8 = arith.constant 8 : index
    %c0_44 = arith.constant 0 : index
    %88 = vector.load %arg5[%c8, %c0_44] : memref<289x256xf32, #tpu.memory_space<vmem>>, vector<1x256xf32>
    tpu.vector_store %arg5[%c8, %c0_44], %87 {strides = array<i32>} : memref<289x256xf32, #tpu.memory_space<vmem>>, vector<1x256xf32>,
    %cst_45 = arith.constant 1.000000e+00 : f32
    %89 = vector.broadcast %cst_45 : f32 to vector<1x256xf32>
    %c9 = arith.constant 9 : index
    %c0_46 = arith.constant 0 : index
    %90 = vector.load %arg5[%c9, %c0_46] : memref<289x256xf32, #tpu.memory_space<vmem>>, vector<1x256xf32>
    tpu.vector_store %arg5[%c9, %c0_46], %89 {strides = array<i32>} : memref<289x256xf32, #tpu.memory_space<vmem>>, vector<1x256xf32>,
    %c0_47 = arith.constant 0 : index
    %c0_48 = arith.constant 0 : index
    %91 = vector.load %arg5[%c0_47, %c0_48] : memref<289x256xf32, #tpu.memory_space<vmem>>, vector<10x256xf32>
    %cst_49 = arith.constant dense<0.000000e+00> : vector<32x256xf32>
    %92 = tpu.matmul %53, %91, %cst_49 {dimension_numbers = #tpu.dot_dimension_numbers<[1], [0], [0], [1], [0, 0, 1, 1], [], []>} : vector<32x10xf32>, vector<10x256xf32>, vector<32x256xf32> -> vector<32x256xf32>
    %cst_50 = arith.constant 0.000000e+00 : f32
    %93 = vector.broadcast %cst_50 : f32 to vector<32x256xf32>
    %94 = arith.maximumf %92, %93 : vector<32x256xf32>
    %c0_51 = arith.constant 0 : index
    %c0_52 = arith.constant 0 : index
    %95 = vector.load %arg4[%c0_51, %c0_52] : memref<32x290xf32, #tpu.memory_space<vmem>>, vector<32x256xf32>
    tpu.vector_store %arg4[%c0_51, %c0_52], %94 {strides = array<i32>} : memref<32x290xf32, #tpu.memory_space<vmem>>, vector<32x256xf32>,
    %c0_53 = arith.constant 0 : index
    %c1_54 = arith.constant 1 : index
    %96 = vector.load %arg4[%c0_53, %c1_54] : memref<32x290xf32, #tpu.memory_space<vmem>>, vector<32x256xf32>
    %cst_55 = arith.constant 0.000000e+00 : f32
    %97 = vector.shape_cast %8 : vector<1x256xi1> to vector<1x256xi1>
    %98 = vector.broadcast %97 : vector<1x256xi1> to vector<32x256xi1>
    %99 = vector.broadcast %cst_55 : f32 to vector<32x256xf32>
    %100 = arith.select %98, %96, %99 : vector<32x256xi1>, vector<32x256xf32>
    %101 = arith.maximumf %94, %100 : vector<32x256xf32>
    %c0_56 = arith.constant 0 : index
    %c16_57 = arith.constant 16 : index
    %102 = vector.load %arg4[%c0_56, %c16_57] : memref<32x290xf32, #tpu.memory_space<vmem>>, vector<32x256xf32>
    %cst_58 = arith.constant 0.000000e+00 : f32
    %103 = vector.shape_cast %12 : vector<1x256xi1> to vector<1x256xi1>
    %104 = vector.broadcast %103 : vector<1x256xi1> to vector<32x256xi1>
    %105 = vector.broadcast %cst_58 : f32 to vector<32x256xf32>
    %106 = arith.select %104, %102, %105 : vector<32x256xi1>, vector<32x256xf32>
    %107 = arith.maximumf %101, %106 : vector<32x256xf32>
    %c0_59 = arith.constant 0 : index
    %c17_60 = arith.constant 17 : index
    %108 = vector.load %arg4[%c0_59, %c17_60] : memref<32x290xf32, #tpu.memory_space<vmem>>, vector<32x256xf32>
    %cst_61 = arith.constant 0.000000e+00 : f32
    %109 = vector.shape_cast %16 : vector<1x256xi1> to vector<1x256xi1>
    %110 = vector.broadcast %109 : vector<1x256xi1> to vector<32x256xi1>
    %111 = vector.broadcast %cst_61 : f32 to vector<32x256xf32>
    %112 = arith.select %110, %108, %111 : vector<32x256xi1>, vector<32x256xf32>
    %113 = arith.maximumf %107, %112 : vector<32x256xf32>
    %114 = tpu.iota {dimensions = array<i32: 0>} : vector<256x64xi32>
    %115 = tpu.iota {dimensions = array<i32: 1>} : vector<256x64xi32>
    %c3_i32_62 = arith.constant 3 : i32
    %116 = vector.broadcast %c3_i32_62 : i32 to vector<256x64xi32>
    %117 = arith.shrui %115, %116 : vector<256x64xi32>
    %c7_i32_63 = arith.constant 7 : i32
    %118 = vector.broadcast %c7_i32_63 : i32 to vector<256x64xi32>
    %119 = arith.andi %115, %118 : vector<256x64xi32>
    %c2_i32_64 = arith.constant 2 : i32
    %120 = vector.broadcast %c2_i32_64 : i32 to vector<256x64xi32>
    %121 = arith.muli %120, %117 : vector<256x64xi32>
    %c16_i32 = arith.constant 16 : i32
    %122 = vector.broadcast %c16_i32 : i32 to vector<256x64xi32>
    %123 = arith.muli %121, %122 : vector<256x64xi32>
    %c2_i32_65 = arith.constant 2 : i32
    %124 = vector.broadcast %c2_i32_65 : i32 to vector<256x64xi32>
    %125 = arith.muli %124, %119 : vector<256x64xi32>
    %126 = arith.addi %123, %125 : vector<256x64xi32>
    %127 = arith.cmpi eq, %114, %126 : vector<256x64xi32>
    %128 = arith.extui %127 : vector<256x64xi1> to vector<256x64xi32>
    %129 = arith.sitofp %128 : vector<256x64xi32> to vector<256x64xf32>
    %cst_66 = arith.constant dense<0.000000e+00> : vector<32x64xf32>
    %130 = tpu.matmul %113, %129, %cst_66 {dimension_numbers = #tpu.dot_dimension_numbers<[1], [0], [0], [1], [0, 0, 1, 1], [], []>} : vector<32x256xf32>, vector<256x64xf32>, vector<32x64xf32> -> vector<32x64xf32>
    %c1_67 = arith.constant 1 : index
    %c0_68 = arith.constant 0 : index
    %c0_69 = arith.constant 0 : index
    %131 = vector.load %arg2[%c1_67, %c0_68, %c0_69] : memref<5x32x289xf32, #tpu.memory_space<vmem>>, vector<1x32x289xf32>
    %132 = vector.shape_cast %131 : vector<1x32x289xf32> to vector<32x289xf32>
    %c0_70 = arith.constant 0 : index
    %c9_71 = arith.constant 9 : index
    %133 = vector.load %arg4[%c0_70, %c9_71] : memref<32x290xf32, #tpu.memory_space<vmem>>, vector<32x64xf32>
    tpu.vector_store %arg4[%c0_70, %c9_71], %130 {strides = array<i32>} : memref<32x290xf32, #tpu.memory_space<vmem>>, vector<32x64xf32>,
    %c0_72 = arith.constant 0 : index
    %c0_73 = arith.constant 0 : index
    %134 = vector.load %arg4[%c0_72, %c0_73] : memref<32x290xf32, #tpu.memory_space<vmem>>, vector<32x64xf32>
    %cst_74 = arith.constant 0.000000e+00 : f32
    %135 = vector.shape_cast %30 : vector<1x64xi1> to vector<1x64xi1>
    %136 = vector.broadcast %135 : vector<1x64xi1> to vector<32x64xi1>
    %137 = vector.broadcast %cst_74 : f32 to vector<32x64xf32>
    %138 = arith.select %136, %134, %137 : vector<32x64xi1>, vector<32x64xf32>
    %c0_75 = arith.constant 0 : index
    %c0_76 = arith.constant 0 : index
    %139 = vector.load %arg5[%c0_75, %c0_76] : memref<289x256xf32, #tpu.memory_space<vmem>>, vector<32x64xf32>
    tpu.vector_store %arg5[%c0_75, %c0_76], %138 {strides = array<i32>} : memref<289x256xf32, #tpu.memory_space<vmem>>, vector<32x64xf32>,
    %c0_77 = arith.constant 0 : index
    %c1_78 = arith.constant 1 : index
    %140 = vector.load %arg4[%c0_77, %c1_78] : memref<32x290xf32, #tpu.memory_space<vmem>>, vector<32x64xf32>
    %cst_79 = arith.constant 0.000000e+00 : f32
    %141 = vector.shape_cast %27 : vector<1x64xi1> to vector<1x64xi1>
    %142 = vector.broadcast %141 : vector<1x64xi1> to vector<32x64xi1>
    %143 = vector.broadcast %cst_79 : f32 to vector<32x64xf32>
    %144 = arith.select %142, %140, %143 : vector<32x64xi1>, vector<32x64xf32>
    %c32_80 = arith.constant 32 : index
    %c0_81 = arith.constant 0 : index
    %145 = vector.load %arg5[%c32_80, %c0_81] : memref<289x256xf32, #tpu.memory_space<vmem>>, vector<32x64xf32>
    tpu.vector_store %arg5[%c32_80, %c0_81], %144 {strides = array<i32>} : memref<289x256xf32, #tpu.memory_space<vmem>>, vector<32x64xf32>,
    %c0_82 = arith.constant 0 : index
    %c2_83 = arith.constant 2 : index
    %146 = vector.load %arg4[%c0_82, %c2_83] : memref<32x290xf32, #tpu.memory_space<vmem>>, vector<32x64xf32>
    %cst_84 = arith.constant 0.000000e+00 : f32
    %147 = vector.shape_cast %31 : vector<1x64xi1> to vector<1x64xi1>
    %148 = vector.broadcast %147 : vector<1x64xi1> to vector<32x64xi1>
    %149 = vector.broadcast %cst_84 : f32 to vector<32x64xf32>
    %150 = arith.select %148, %146, %149 : vector<32x64xi1>, vector<32x64xf32>
    %c64 = arith.constant 64 : index
    %c0_85 = arith.constant 0 : index
    %151 = vector.load %arg5[%c64, %c0_85] : memref<289x256xf32, #tpu.memory_space<vmem>>, vector<32x64xf32>
    tpu.vector_store %arg5[%c64, %c0_85], %150 {strides = array<i32>} : memref<289x256xf32, #tpu.memory_space<vmem>>, vector<32x64xf32>,
    %c0_86 = arith.constant 0 : index
    %c8_87 = arith.constant 8 : index
    %152 = vector.load %arg4[%c0_86, %c8_87] : memref<32x290xf32, #tpu.memory_space<vmem>>, vector<32x64xf32>
    %cst_88 = arith.constant 0.000000e+00 : f32
    %153 = vector.shape_cast %23 : vector<1x64xi1> to vector<1x64xi1>
    %154 = vector.broadcast %153 : vector<1x64xi1> to vector<32x64xi1>
    %155 = vector.broadcast %cst_88 : f32 to vector<32x64xf32>
    %156 = arith.select %154, %152, %155 : vector<32x64xi1>, vector<32x64xf32>
    %c96 = arith.constant 96 : index
    %c0_89 = arith.constant 0 : index
    %157 = vector.load %arg5[%c96, %c0_89] : memref<289x256xf32, #tpu.memory_space<vmem>>, vector<32x64xf32>
    tpu.vector_store %arg5[%c96, %c0_89], %156 {strides = array<i32>} : memref<289x256xf32, #tpu.memory_space<vmem>>, vector<32x64xf32>,
    %c0_90 = arith.constant 0 : index
    %c9_91 = arith.constant 9 : index
    %158 = vector.load %arg4[%c0_90, %c9_91] : memref<32x290xf32, #tpu.memory_space<vmem>>, vector<32x64xf32>
    %c128 = arith.constant 128 : index
    %c0_92 = arith.constant 0 : index
    %159 = vector.load %arg5[%c128, %c0_92] : memref<289x256xf32, #tpu.memory_space<vmem>>, vector<32x64xf32>
    tpu.vector_store %arg5[%c128, %c0_92], %158 {strides = array<i32>} : memref<289x256xf32, #tpu.memory_space<vmem>>, vector<32x64xf32>,
    %c0_93 = arith.constant 0 : index
    %c10 = arith.constant 10 : index
    %160 = vector.load %arg4[%c0_93, %c10] : memref<32x290xf32, #tpu.memory_space<vmem>>, vector<32x64xf32>
    %cst_94 = arith.constant 0.000000e+00 : f32
    %161 = vector.shape_cast %25 : vector<1x64xi1> to vector<1x64xi1>
    %162 = vector.broadcast %161 : vector<1x64xi1> to vector<32x64xi1>
    %163 = vector.broadcast %cst_94 : f32 to vector<32x64xf32>
    %164 = arith.select %162, %160, %163 : vector<32x64xi1>, vector<32x64xf32>
    %c160 = arith.constant 160 : index
    %c0_95 = arith.constant 0 : index
    %165 = vector.load %arg5[%c160, %c0_95] : memref<289x256xf32, #tpu.memory_space<vmem>>, vector<32x64xf32>
    tpu.vector_store %arg5[%c160, %c0_95], %164 {strides = array<i32>} : memref<289x256xf32, #tpu.memory_space<vmem>>, vector<32x64xf32>,
    %c0_96 = arith.constant 0 : index
    %c16_97 = arith.constant 16 : index
    %166 = vector.load %arg4[%c0_96, %c16_97] : memref<32x290xf32, #tpu.memory_space<vmem>>, vector<32x64xf32>
    %cst_98 = arith.constant 0.000000e+00 : f32
    %167 = vector.shape_cast %32 : vector<1x64xi1> to vector<1x64xi1>
    %168 = vector.broadcast %167 : vector<1x64xi1> to vector<32x64xi1>
    %169 = vector.broadcast %cst_98 : f32 to vector<32x64xf32>
    %170 = arith.select %168, %166, %169 : vector<32x64xi1>, vector<32x64xf32>
    %c192 = arith.constant 192 : index
    %c0_99 = arith.constant 0 : index
    %171 = vector.load %arg5[%c192, %c0_99] : memref<289x256xf32, #tpu.memory_space<vmem>>, vector<32x64xf32>
    tpu.vector_store %arg5[%c192, %c0_99], %170 {strides = array<i32>} : memref<289x256xf32, #tpu.memory_space<vmem>>, vector<32x64xf32>,
    %c0_100 = arith.constant 0 : index
    %c17_101 = arith.constant 17 : index
    %172 = vector.load %arg4[%c0_100, %c17_101] : memref<32x290xf32, #tpu.memory_space<vmem>>, vector<32x64xf32>
    %cst_102 = arith.constant 0.000000e+00 : f32
    %173 = vector.shape_cast %29 : vector<1x64xi1> to vector<1x64xi1>
    %174 = vector.broadcast %173 : vector<1x64xi1> to vector<32x64xi1>
    %175 = vector.broadcast %cst_102 : f32 to vector<32x64xf32>
    %176 = arith.select %174, %172, %175 : vector<32x64xi1>, vector<32x64xf32>
    %c224 = arith.constant 224 : index
    %c0_103 = arith.constant 0 : index
    %177 = vector.load %arg5[%c224, %c0_103] : memref<289x256xf32, #tpu.memory_space<vmem>>, vector<32x64xf32>
    tpu.vector_store %arg5[%c224, %c0_103], %176 {strides = array<i32>} : memref<289x256xf32, #tpu.memory_space<vmem>>, vector<32x64xf32>,
    %c0_104 = arith.constant 0 : index
    %c18_105 = arith.constant 18 : index
    %178 = vector.load %arg4[%c0_104, %c18_105] : memref<32x290xf32, #tpu.memory_space<vmem>>, vector<32x64xf32>
    %cst_106 = arith.constant 0.000000e+00 : f32
    %179 = vector.shape_cast %33 : vector<1x64xi1> to vector<1x64xi1>
    %180 = vector.broadcast %179 : vector<1x64xi1> to vector<32x64xi1>
    %181 = vector.broadcast %cst_106 : f32 to vector<32x64xf32>
    %182 = arith.select %180, %178, %181 : vector<32x64xi1>, vector<32x64xf32>
    %c256 = arith.constant 256 : index
    %c0_107 = arith.constant 0 : index
    %183 = vector.load %arg5[%c256, %c0_107] : memref<289x256xf32, #tpu.memory_space<vmem>>, vector<32x64xf32>
    tpu.vector_store %arg5[%c256, %c0_107], %182 {strides = array<i32>} : memref<289x256xf32, #tpu.memory_space<vmem>>, vector<32x64xf32>,
    %cst_108 = arith.constant 1.000000e+00 : f32
    %184 = vector.broadcast %cst_108 : f32 to vector<1x64xf32>
    %c288 = arith.constant 288 : index
    %c0_109 = arith.constant 0 : index
    %185 = vector.load %arg5[%c288, %c0_109] : memref<289x256xf32, #tpu.memory_space<vmem>>, vector<1x64xf32>
    tpu.vector_store %arg5[%c288, %c0_109], %184 {strides = array<i32>} : memref<289x256xf32, #tpu.memory_space<vmem>>, vector<1x64xf32>,
    %c0_110 = arith.constant 0 : index
    %c0_111 = arith.constant 0 : index
    %186 = vector.load %arg5[%c0_110, %c0_111] : memref<289x256xf32, #tpu.memory_space<vmem>>, vector<289x64xf32>
    %cst_112 = arith.constant dense<0.000000e+00> : vector<32x64xf32>
    %187 = tpu.matmul %132, %186, %cst_112 {dimension_numbers = #tpu.dot_dimension_numbers<[1], [0], [0], [1], [0, 0, 1, 1], [], []>} : vector<32x289xf32>, vector<289x64xf32>, vector<32x64xf32> -> vector<32x64xf32>
    %cst_113 = arith.constant 0.000000e+00 : f32
    %188 = vector.broadcast %cst_113 : f32 to vector<32x64xf32>
    %189 = arith.maximumf %187, %188 : vector<32x64xf32>
    %c0_114 = arith.constant 0 : index
    %c0_115 = arith.constant 0 : index
    %190 = vector.load %arg4[%c0_114, %c0_115] : memref<32x290xf32, #tpu.memory_space<vmem>>, vector<32x64xf32>
    tpu.vector_store %arg4[%c0_114, %c0_115], %189 {strides = array<i32>} : memref<32x290xf32, #tpu.memory_space<vmem>>, vector<32x64xf32>,
    %c0_116 = arith.constant 0 : index
    %c1_117 = arith.constant 1 : index
    %191 = vector.load %arg4[%c0_116, %c1_117] : memref<32x290xf32, #tpu.memory_space<vmem>>, vector<32x64xf32>
    %cst_118 = arith.constant 0.000000e+00 : f32
    %192 = vector.shape_cast %25 : vector<1x64xi1> to vector<1x64xi1>
    %193 = vector.broadcast %192 : vector<1x64xi1> to vector<32x64xi1>
    %194 = vector.broadcast %cst_118 : f32 to vector<32x64xf32>
    %195 = arith.select %193, %191, %194 : vector<32x64xi1>, vector<32x64xf32>
    %196 = arith.maximumf %189, %195 : vector<32x64xf32>
    %c0_119 = arith.constant 0 : index
    %c8_120 = arith.constant 8 : index
    %197 = vector.load %arg4[%c0_119, %c8_120] : memref<32x290xf32, #tpu.memory_space<vmem>>, vector<32x64xf32>
    %cst_121 = arith.constant 0.000000e+00 : f32
    %198 = vector.shape_cast %29 : vector<1x64xi1> to vector<1x64xi1>
    %199 = vector.broadcast %198 : vector<1x64xi1> to vector<32x64xi1>
    %200 = vector.broadcast %cst_121 : f32 to vector<32x64xf32>
    %201 = arith.select %199, %197, %200 : vector<32x64xi1>, vector<32x64xf32>
    %202 = arith.maximumf %196, %201 : vector<32x64xf32>
    %c0_122 = arith.constant 0 : index
    %c9_123 = arith.constant 9 : index
    %203 = vector.load %arg4[%c0_122, %c9_123] : memref<32x290xf32, #tpu.memory_space<vmem>>, vector<32x64xf32>
    %cst_124 = arith.constant 0.000000e+00 : f32
    %204 = vector.shape_cast %33 : vector<1x64xi1> to vector<1x64xi1>
    %205 = vector.broadcast %204 : vector<1x64xi1> to vector<32x64xi1>
    %206 = vector.broadcast %cst_124 : f32 to vector<32x64xf32>
    %207 = arith.select %205, %203, %206 : vector<32x64xi1>, vector<32x64xf32>
    %208 = arith.maximumf %202, %207 : vector<32x64xf32>
    %209 = tpu.iota {dimensions = array<i32: 0>} : vector<64x16xi32>
    %210 = tpu.iota {dimensions = array<i32: 1>} : vector<64x16xi32>
    %c2_i32_125 = arith.constant 2 : i32
    %211 = vector.broadcast %c2_i32_125 : i32 to vector<64x16xi32>
    %212 = arith.shrui %210, %211 : vector<64x16xi32>
    %c3_i32_126 = arith.constant 3 : i32
    %213 = vector.broadcast %c3_i32_126 : i32 to vector<64x16xi32>
    %214 = arith.andi %210, %213 : vector<64x16xi32>
    %c2_i32_127 = arith.constant 2 : i32
    %215 = vector.broadcast %c2_i32_127 : i32 to vector<64x16xi32>
    %216 = arith.muli %215, %212 : vector<64x16xi32>
    %c8_i32 = arith.constant 8 : i32
    %217 = vector.broadcast %c8_i32 : i32 to vector<64x16xi32>
    %218 = arith.muli %216, %217 : vector<64x16xi32>
    %c2_i32_128 = arith.constant 2 : i32
    %219 = vector.broadcast %c2_i32_128 : i32 to vector<64x16xi32>
    %220 = arith.muli %219, %214 : vector<64x16xi32>
    %221 = arith.addi %218, %220 : vector<64x16xi32>
    %222 = arith.cmpi eq, %209, %221 : vector<64x16xi32>
    %223 = arith.extui %222 : vector<64x16xi1> to vector<64x16xi32>
    %224 = arith.sitofp %223 : vector<64x16xi32> to vector<64x16xf32>
    %cst_129 = arith.constant dense<0.000000e+00> : vector<32x16xf32>
    %225 = tpu.matmul %208, %224, %cst_129 {dimension_numbers = #tpu.dot_dimension_numbers<[1], [0], [0], [1], [0, 0, 1, 1], [], []>} : vector<32x64xf32>, vector<64x16xf32>, vector<32x16xf32> -> vector<32x16xf32>
    %c2_130 = arith.constant 2 : index
    %c0_131 = arith.constant 0 : index
    %c0_132 = arith.constant 0 : index
    %226 = vector.load %arg2[%c2_130, %c0_131, %c0_132] : memref<5x32x289xf32, #tpu.memory_space<vmem>>, vector<1x32x289xf32>
    %227 = vector.shape_cast %226 : vector<1x32x289xf32> to vector<32x289xf32>
    %c0_133 = arith.constant 0 : index
    %c5_134 = arith.constant 5 : index
    %228 = vector.load %arg4[%c0_133, %c5_134] : memref<32x290xf32, #tpu.memory_space<vmem>>, vector<32x16xf32>
    tpu.vector_store %arg4[%c0_133, %c5_134], %225 {strides = array<i32>} : memref<32x290xf32, #tpu.memory_space<vmem>>, vector<32x16xf32>,
    %c0_135 = arith.constant 0 : index
    %c0_136 = arith.constant 0 : index
    %229 = vector.load %arg4[%c0_135, %c0_136] : memref<32x290xf32, #tpu.memory_space<vmem>>, vector<32x16xf32>
    %cst_137 = arith.constant 0.000000e+00 : f32
    %230 = vector.shape_cast %47 : vector<1x16xi1> to vector<1x16xi1>
    %231 = vector.broadcast %230 : vector<1x16xi1> to vector<32x16xi1>
    %232 = vector.broadcast %cst_137 : f32 to vector<32x16xf32>
    %233 = arith.select %231, %229, %232 : vector<32x16xi1>, vector<32x16xf32>
    %c0_138 = arith.constant 0 : index
    %c0_139 = arith.constant 0 : index
    %234 = vector.load %arg5[%c0_138, %c0_139] : memref<289x256xf32, #tpu.memory_space<vmem>>, vector<32x16xf32>
    tpu.vector_store %arg5[%c0_138, %c0_139], %233 {strides = array<i32>} : memref<289x256xf32, #tpu.memory_space<vmem>>, vector<32x16xf32>,
    %c0_140 = arith.constant 0 : index
    %c1_141 = arith.constant 1 : index
    %235 = vector.load %arg4[%c0_140, %c1_141] : memref<32x290xf32, #tpu.memory_space<vmem>>, vector<32x16xf32>
    %cst_142 = arith.constant 0.000000e+00 : f32
    %236 = vector.shape_cast %44 : vector<1x16xi1> to vector<1x16xi1>
    %237 = vector.broadcast %236 : vector<1x16xi1> to vector<32x16xi1>
    %238 = vector.broadcast %cst_142 : f32 to vector<32x16xf32>
    %239 = arith.select %237, %235, %238 : vector<32x16xi1>, vector<32x16xf32>
    %c32_143 = arith.constant 32 : index
    %c0_144 = arith.constant 0 : index
    %240 = vector.load %arg5[%c32_143, %c0_144] : memref<289x256xf32, #tpu.memory_space<vmem>>, vector<32x16xf32>
    tpu.vector_store %arg5[%c32_143, %c0_144], %239 {strides = array<i32>} : memref<289x256xf32, #tpu.memory_space<vmem>>, vector<32x16xf32>,
    %c0_145 = arith.constant 0 : index
    %c2_146 = arith.constant 2 : index
    %241 = vector.load %arg4[%c0_145, %c2_146] : memref<32x290xf32, #tpu.memory_space<vmem>>, vector<32x16xf32>
    %cst_147 = arith.constant 0.000000e+00 : f32
    %242 = vector.shape_cast %48 : vector<1x16xi1> to vector<1x16xi1>
    %243 = vector.broadcast %242 : vector<1x16xi1> to vector<32x16xi1>
    %244 = vector.broadcast %cst_147 : f32 to vector<32x16xf32>
    %245 = arith.select %243, %241, %244 : vector<32x16xi1>, vector<32x16xf32>
    %c64_148 = arith.constant 64 : index
    %c0_149 = arith.constant 0 : index
    %246 = vector.load %arg5[%c64_148, %c0_149] : memref<289x256xf32, #tpu.memory_space<vmem>>, vector<32x16xf32>
    tpu.vector_store %arg5[%c64_148, %c0_149], %245 {strides = array<i32>} : memref<289x256xf32, #tpu.memory_space<vmem>>, vector<32x16xf32>,
    %c0_150 = arith.constant 0 : index
    %c4_151 = arith.constant 4 : index
    %247 = vector.load %arg4[%c0_150, %c4_151] : memref<32x290xf32, #tpu.memory_space<vmem>>, vector<32x16xf32>
    %cst_152 = arith.constant 0.000000e+00 : f32
    %248 = vector.shape_cast %40 : vector<1x16xi1> to vector<1x16xi1>
    %249 = vector.broadcast %248 : vector<1x16xi1> to vector<32x16xi1>
    %250 = vector.broadcast %cst_152 : f32 to vector<32x16xf32>
    %251 = arith.select %249, %247, %250 : vector<32x16xi1>, vector<32x16xf32>
    %c96_153 = arith.constant 96 : index
    %c0_154 = arith.constant 0 : index
    %252 = vector.load %arg5[%c96_153, %c0_154] : memref<289x256xf32, #tpu.memory_space<vmem>>, vector<32x16xf32>
    tpu.vector_store %arg5[%c96_153, %c0_154], %251 {strides = array<i32>} : memref<289x256xf32, #tpu.memory_space<vmem>>, vector<32x16xf32>,
    %c0_155 = arith.constant 0 : index
    %c5_156 = arith.constant 5 : index
    %253 = vector.load %arg4[%c0_155, %c5_156] : memref<32x290xf32, #tpu.memory_space<vmem>>, vector<32x16xf32>
    %c128_157 = arith.constant 128 : index
    %c0_158 = arith.constant 0 : index
    %254 = vector.load %arg5[%c128_157, %c0_158] : memref<289x256xf32, #tpu.memory_space<vmem>>, vector<32x16xf32>
    tpu.vector_store %arg5[%c128_157, %c0_158], %253 {strides = array<i32>} : memref<289x256xf32, #tpu.memory_space<vmem>>, vector<32x16xf32>,
    %c0_159 = arith.constant 0 : index
    %c6_160 = arith.constant 6 : index
    %255 = vector.load %arg4[%c0_159, %c6_160] : memref<32x290xf32, #tpu.memory_space<vmem>>, vector<32x16xf32>
    %cst_161 = arith.constant 0.000000e+00 : f32
    %256 = vector.shape_cast %42 : vector<1x16xi1> to vector<1x16xi1>
    %257 = vector.broadcast %256 : vector<1x16xi1> to vector<32x16xi1>
    %258 = vector.broadcast %cst_161 : f32 to vector<32x16xf32>
    %259 = arith.select %257, %255, %258 : vector<32x16xi1>, vector<32x16xf32>
    %c160_162 = arith.constant 160 : index
    %c0_163 = arith.constant 0 : index
    %260 = vector.load %arg5[%c160_162, %c0_163] : memref<289x256xf32, #tpu.memory_space<vmem>>, vector<32x16xf32>
    tpu.vector_store %arg5[%c160_162, %c0_163], %259 {strides = array<i32>} : memref<289x256xf32, #tpu.memory_space<vmem>>, vector<32x16xf32>,
    %c0_164 = arith.constant 0 : index
    %c8_165 = arith.constant 8 : index
    %261 = vector.load %arg4[%c0_164, %c8_165] : memref<32x290xf32, #tpu.memory_space<vmem>>, vector<32x16xf32>
    %cst_166 = arith.constant 0.000000e+00 : f32
    %262 = vector.shape_cast %49 : vector<1x16xi1> to vector<1x16xi1>
    %263 = vector.broadcast %262 : vector<1x16xi1> to vector<32x16xi1>
    %264 = vector.broadcast %cst_166 : f32 to vector<32x16xf32>
    %265 = arith.select %263, %261, %264 : vector<32x16xi1>, vector<32x16xf32>
    %c192_167 = arith.constant 192 : index
    %c0_168 = arith.constant 0 : index
    %266 = vector.load %arg5[%c192_167, %c0_168] : memref<289x256xf32, #tpu.memory_space<vmem>>, vector<32x16xf32>
    tpu.vector_store %arg5[%c192_167, %c0_168], %265 {strides = array<i32>} : memref<289x256xf32, #tpu.memory_space<vmem>>, vector<32x16xf32>,
    %c0_169 = arith.constant 0 : index
    %c9_170 = arith.constant 9 : index
    %267 = vector.load %arg4[%c0_169, %c9_170] : memref<32x290xf32, #tpu.memory_space<vmem>>, vector<32x16xf32>
    %cst_171 = arith.constant 0.000000e+00 : f32
    %268 = vector.shape_cast %46 : vector<1x16xi1> to vector<1x16xi1>
    %269 = vector.broadcast %268 : vector<1x16xi1> to vector<32x16xi1>
    %270 = vector.broadcast %cst_171 : f32 to vector<32x16xf32>
    %271 = arith.select %269, %267, %270 : vector<32x16xi1>, vector<32x16xf32>
    %c224_172 = arith.constant 224 : index
    %c0_173 = arith.constant 0 : index
    %272 = vector.load %arg5[%c224_172, %c0_173] : memref<289x256xf32, #tpu.memory_space<vmem>>, vector<32x16xf32>
    tpu.vector_store %arg5[%c224_172, %c0_173], %271 {strides = array<i32>} : memref<289x256xf32, #tpu.memory_space<vmem>>, vector<32x16xf32>,
    %c0_174 = arith.constant 0 : index
    %c10_175 = arith.constant 10 : index
    %273 = vector.load %arg4[%c0_174, %c10_175] : memref<32x290xf32, #tpu.memory_space<vmem>>, vector<32x16xf32>
    %cst_176 = arith.constant 0.000000e+00 : f32
    %274 = vector.shape_cast %50 : vector<1x16xi1> to vector<1x16xi1>
    %275 = vector.broadcast %274 : vector<1x16xi1> to vector<32x16xi1>
    %276 = vector.broadcast %cst_176 : f32 to vector<32x16xf32>
    %277 = arith.select %275, %273, %276 : vector<32x16xi1>, vector<32x16xf32>
    %c256_177 = arith.constant 256 : index
    %c0_178 = arith.constant 0 : index
    %278 = vector.load %arg5[%c256_177, %c0_178] : memref<289x256xf32, #tpu.memory_space<vmem>>, vector<32x16xf32>
    tpu.vector_store %arg5[%c256_177, %c0_178], %277 {strides = array<i32>} : memref<289x256xf32, #tpu.memory_space<vmem>>, vector<32x16xf32>,
    %cst_179 = arith.constant 1.000000e+00 : f32
    %279 = vector.broadcast %cst_179 : f32 to vector<1x16xf32>
    %c288_180 = arith.constant 288 : index
    %c0_181 = arith.constant 0 : index
    %280 = vector.load %arg5[%c288_180, %c0_181] : memref<289x256xf32, #tpu.memory_space<vmem>>, vector<1x16xf32>
    tpu.vector_store %arg5[%c288_180, %c0_181], %279 {strides = array<i32>} : memref<289x256xf32, #tpu.memory_space<vmem>>, vector<1x16xf32>,
    %c0_182 = arith.constant 0 : index
    %c0_183 = arith.constant 0 : index
    %281 = vector.load %arg5[%c0_182, %c0_183] : memref<289x256xf32, #tpu.memory_space<vmem>>, vector<289x16xf32>
    %cst_184 = arith.constant dense<0.000000e+00> : vector<32x16xf32>
    %282 = tpu.matmul %227, %281, %cst_184 {dimension_numbers = #tpu.dot_dimension_numbers<[1], [0], [0], [1], [0, 0, 1, 1], [], []>} : vector<32x289xf32>, vector<289x16xf32>, vector<32x16xf32> -> vector<32x16xf32>
    %cst_185 = arith.constant 0.000000e+00 : f32
    %283 = vector.broadcast %cst_185 : f32 to vector<32x16xf32>
    %284 = arith.maximumf %282, %283 : vector<32x16xf32>
    %285 = tpu.iota {dimensions = array<i32: 0>} : vector<16x64xi32>
    %286 = tpu.iota {dimensions = array<i32: 1>} : vector<16x64xi32>
    %c3_i32_186 = arith.constant 3 : i32
    %287 = vector.broadcast %c3_i32_186 : i32 to vector<16x64xi32>
    %288 = arith.shrui %286, %287 : vector<16x64xi32>
    %c7_i32_187 = arith.constant 7 : i32
    %289 = vector.broadcast %c7_i32_187 : i32 to vector<16x64xi32>
    %290 = arith.andi %286, %289 : vector<16x64xi32>
    %c1_i32_188 = arith.constant 1 : i32
    %291 = vector.broadcast %c1_i32_188 : i32 to vector<16x64xi32>
    %292 = arith.shrui %288, %291 : vector<16x64xi32>
    %c4_i32_189 = arith.constant 4 : i32
    %293 = vector.broadcast %c4_i32_189 : i32 to vector<16x64xi32>
    %294 = arith.muli %292, %293 : vector<16x64xi32>
    %c1_i32_190 = arith.constant 1 : i32
    %295 = vector.broadcast %c1_i32_190 : i32 to vector<16x64xi32>
    %296 = arith.shrui %290, %295 : vector<16x64xi32>
    %297 = arith.addi %294, %296 : vector<16x64xi32>
    %298 = arith.cmpi eq, %285, %297 : vector<16x64xi32>
    %299 = arith.extui %298 : vector<16x64xi1> to vector<16x64xi32>
    %300 = arith.sitofp %299 : vector<16x64xi32> to vector<16x64xf32>
    %cst_191 = arith.constant dense<0.000000e+00> : vector<32x64xf32>
    %301 = tpu.matmul %284, %300, %cst_191 {dimension_numbers = #tpu.dot_dimension_numbers<[1], [0], [0], [1], [0, 0, 1, 1], [], []>} : vector<32x16xf32>, vector<16x64xf32>, vector<32x64xf32> -> vector<32x64xf32>
    %c3_192 = arith.constant 3 : index
    %c0_193 = arith.constant 0 : index
    %c0_194 = arith.constant 0 : index
    %302 = vector.load %arg2[%c3_192, %c0_193, %c0_194] : memref<5x32x289xf32, #tpu.memory_space<vmem>>, vector<1x32x289xf32>
    %303 = vector.shape_cast %302 : vector<1x32x289xf32> to vector<32x289xf32>
    %c0_195 = arith.constant 0 : index
    %c9_196 = arith.constant 9 : index
    %304 = vector.load %arg4[%c0_195, %c9_196] : memref<32x290xf32, #tpu.memory_space<vmem>>, vector<32x64xf32>
    tpu.vector_store %arg4[%c0_195, %c9_196], %301 {strides = array<i32>} : memref<32x290xf32, #tpu.memory_space<vmem>>, vector<32x64xf32>,
    %c0_197 = arith.constant 0 : index
    %c0_198 = arith.constant 0 : index
    %305 = vector.load %arg4[%c0_197, %c0_198] : memref<32x290xf32, #tpu.memory_space<vmem>>, vector<32x64xf32>
    %cst_199 = arith.constant 0.000000e+00 : f32
    %306 = vector.shape_cast %30 : vector<1x64xi1> to vector<1x64xi1>
    %307 = vector.broadcast %306 : vector<1x64xi1> to vector<32x64xi1>
    %308 = vector.broadcast %cst_199 : f32 to vector<32x64xf32>
    %309 = arith.select %307, %305, %308 : vector<32x64xi1>, vector<32x64xf32>
    %c0_200 = arith.constant 0 : index
    %c0_201 = arith.constant 0 : index
    %310 = vector.load %arg5[%c0_200, %c0_201] : memref<289x256xf32, #tpu.memory_space<vmem>>, vector<32x64xf32>
    tpu.vector_store %arg5[%c0_200, %c0_201], %309 {strides = array<i32>} : memref<289x256xf32, #tpu.memory_space<vmem>>, vector<32x64xf32>,
    %c0_202 = arith.constant 0 : index
    %c1_203 = arith.constant 1 : index
    %311 = vector.load %arg4[%c0_202, %c1_203] : memref<32x290xf32, #tpu.memory_space<vmem>>, vector<32x64xf32>
    %cst_204 = arith.constant 0.000000e+00 : f32
    %312 = vector.shape_cast %27 : vector<1x64xi1> to vector<1x64xi1>
    %313 = vector.broadcast %312 : vector<1x64xi1> to vector<32x64xi1>
    %314 = vector.broadcast %cst_204 : f32 to vector<32x64xf32>
    %315 = arith.select %313, %311, %314 : vector<32x64xi1>, vector<32x64xf32>
    %c32_205 = arith.constant 32 : index
    %c0_206 = arith.constant 0 : index
    %316 = vector.load %arg5[%c32_205, %c0_206] : memref<289x256xf32, #tpu.memory_space<vmem>>, vector<32x64xf32>
    tpu.vector_store %arg5[%c32_205, %c0_206], %315 {strides = array<i32>} : memref<289x256xf32, #tpu.memory_space<vmem>>, vector<32x64xf32>,
    %c0_207 = arith.constant 0 : index
    %c2_208 = arith.constant 2 : index
    %317 = vector.load %arg4[%c0_207, %c2_208] : memref<32x290xf32, #tpu.memory_space<vmem>>, vector<32x64xf32>
    %cst_209 = arith.constant 0.000000e+00 : f32
    %318 = vector.shape_cast %31 : vector<1x64xi1> to vector<1x64xi1>
    %319 = vector.broadcast %318 : vector<1x64xi1> to vector<32x64xi1>
    %320 = vector.broadcast %cst_209 : f32 to vector<32x64xf32>
    %321 = arith.select %319, %317, %320 : vector<32x64xi1>, vector<32x64xf32>
    %c64_210 = arith.constant 64 : index
    %c0_211 = arith.constant 0 : index
    %322 = vector.load %arg5[%c64_210, %c0_211] : memref<289x256xf32, #tpu.memory_space<vmem>>, vector<32x64xf32>
    tpu.vector_store %arg5[%c64_210, %c0_211], %321 {strides = array<i32>} : memref<289x256xf32, #tpu.memory_space<vmem>>, vector<32x64xf32>,
    %c0_212 = arith.constant 0 : index
    %c8_213 = arith.constant 8 : index
    %323 = vector.load %arg4[%c0_212, %c8_213] : memref<32x290xf32, #tpu.memory_space<vmem>>, vector<32x64xf32>
    %cst_214 = arith.constant 0.000000e+00 : f32
    %324 = vector.shape_cast %23 : vector<1x64xi1> to vector<1x64xi1>
    %325 = vector.broadcast %324 : vector<1x64xi1> to vector<32x64xi1>
    %326 = vector.broadcast %cst_214 : f32 to vector<32x64xf32>
    %327 = arith.select %325, %323, %326 : vector<32x64xi1>, vector<32x64xf32>
    %c96_215 = arith.constant 96 : index
    %c0_216 = arith.constant 0 : index
    %328 = vector.load %arg5[%c96_215, %c0_216] : memref<289x256xf32, #tpu.memory_space<vmem>>, vector<32x64xf32>
    tpu.vector_store %arg5[%c96_215, %c0_216], %327 {strides = array<i32>} : memref<289x256xf32, #tpu.memory_space<vmem>>, vector<32x64xf32>,
    %c0_217 = arith.constant 0 : index
    %c9_218 = arith.constant 9 : index
    %329 = vector.load %arg4[%c0_217, %c9_218] : memref<32x290xf32, #tpu.memory_space<vmem>>, vector<32x64xf32>
    %c128_219 = arith.constant 128 : index
    %c0_220 = arith.constant 0 : index
    %330 = vector.load %arg5[%c128_219, %c0_220] : memref<289x256xf32, #tpu.memory_space<vmem>>, vector<32x64xf32>
    tpu.vector_store %arg5[%c128_219, %c0_220], %329 {strides = array<i32>} : memref<289x256xf32, #tpu.memory_space<vmem>>, vector<32x64xf32>,
    %c0_221 = arith.constant 0 : index
    %c10_222 = arith.constant 10 : index
    %331 = vector.load %arg4[%c0_221, %c10_222] : memref<32x290xf32, #tpu.memory_space<vmem>>, vector<32x64xf32>
    %cst_223 = arith.constant 0.000000e+00 : f32
    %332 = vector.shape_cast %25 : vector<1x64xi1> to vector<1x64xi1>
    %333 = vector.broadcast %332 : vector<1x64xi1> to vector<32x64xi1>
    %334 = vector.broadcast %cst_223 : f32 to vector<32x64xf32>
    %335 = arith.select %333, %331, %334 : vector<32x64xi1>, vector<32x64xf32>
    %c160_224 = arith.constant 160 : index
    %c0_225 = arith.constant 0 : index
    %336 = vector.load %arg5[%c160_224, %c0_225] : memref<289x256xf32, #tpu.memory_space<vmem>>, vector<32x64xf32>
    tpu.vector_store %arg5[%c160_224, %c0_225], %335 {strides = array<i32>} : memref<289x256xf32, #tpu.memory_space<vmem>>, vector<32x64xf32>,
    %c0_226 = arith.constant 0 : index
    %c16_227 = arith.constant 16 : index
    %337 = vector.load %arg4[%c0_226, %c16_227] : memref<32x290xf32, #tpu.memory_space<vmem>>, vector<32x64xf32>
    %cst_228 = arith.constant 0.000000e+00 : f32
    %338 = vector.shape_cast %32 : vector<1x64xi1> to vector<1x64xi1>
    %339 = vector.broadcast %338 : vector<1x64xi1> to vector<32x64xi1>
    %340 = vector.broadcast %cst_228 : f32 to vector<32x64xf32>
    %341 = arith.select %339, %337, %340 : vector<32x64xi1>, vector<32x64xf32>
    %c192_229 = arith.constant 192 : index
    %c0_230 = arith.constant 0 : index
    %342 = vector.load %arg5[%c192_229, %c0_230] : memref<289x256xf32, #tpu.memory_space<vmem>>, vector<32x64xf32>
    tpu.vector_store %arg5[%c192_229, %c0_230], %341 {strides = array<i32>} : memref<289x256xf32, #tpu.memory_space<vmem>>, vector<32x64xf32>,
    %c0_231 = arith.constant 0 : index
    %c17_232 = arith.constant 17 : index
    %343 = vector.load %arg4[%c0_231, %c17_232] : memref<32x290xf32, #tpu.memory_space<vmem>>, vector<32x64xf32>
    %cst_233 = arith.constant 0.000000e+00 : f32
    %344 = vector.shape_cast %29 : vector<1x64xi1> to vector<1x64xi1>
    %345 = vector.broadcast %344 : vector<1x64xi1> to vector<32x64xi1>
    %346 = vector.broadcast %cst_233 : f32 to vector<32x64xf32>
    %347 = arith.select %345, %343, %346 : vector<32x64xi1>, vector<32x64xf32>
    %c224_234 = arith.constant 224 : index
    %c0_235 = arith.constant 0 : index
    %348 = vector.load %arg5[%c224_234, %c0_235] : memref<289x256xf32, #tpu.memory_space<vmem>>, vector<32x64xf32>
    tpu.vector_store %arg5[%c224_234, %c0_235], %347 {strides = array<i32>} : memref<289x256xf32, #tpu.memory_space<vmem>>, vector<32x64xf32>,
    %c0_236 = arith.constant 0 : index
    %c18_237 = arith.constant 18 : index
    %349 = vector.load %arg4[%c0_236, %c18_237] : memref<32x290xf32, #tpu.memory_space<vmem>>, vector<32x64xf32>
    %cst_238 = arith.constant 0.000000e+00 : f32
    %350 = vector.shape_cast %33 : vector<1x64xi1> to vector<1x64xi1>
    %351 = vector.broadcast %350 : vector<1x64xi1> to vector<32x64xi1>
    %352 = vector.broadcast %cst_238 : f32 to vector<32x64xf32>
    %353 = arith.select %351, %349, %352 : vector<32x64xi1>, vector<32x64xf32>
    %c256_239 = arith.constant 256 : index
    %c0_240 = arith.constant 0 : index
    %354 = vector.load %arg5[%c256_239, %c0_240] : memref<289x256xf32, #tpu.memory_space<vmem>>, vector<32x64xf32>
    tpu.vector_store %arg5[%c256_239, %c0_240], %353 {strides = array<i32>} : memref<289x256xf32, #tpu.memory_space<vmem>>, vector<32x64xf32>,
    %cst_241 = arith.constant 1.000000e+00 : f32
    %355 = vector.broadcast %cst_241 : f32 to vector<1x64xf32>
    %c288_242 = arith.constant 288 : index
    %c0_243 = arith.constant 0 : index
    %356 = vector.load %arg5[%c288_242, %c0_243] : memref<289x256xf32, #tpu.memory_space<vmem>>, vector<1x64xf32>
    tpu.vector_store %arg5[%c288_242, %c0_243], %355 {strides = array<i32>} : memref<289x256xf32, #tpu.memory_space<vmem>>, vector<1x64xf32>,
    %c0_244 = arith.constant 0 : index
    %c0_245 = arith.constant 0 : index
    %357 = vector.load %arg5[%c0_244, %c0_245] : memref<289x256xf32, #tpu.memory_space<vmem>>, vector<289x64xf32>
    %cst_246 = arith.constant dense<0.000000e+00> : vector<32x64xf32>
    %358 = tpu.matmul %303, %357, %cst_246 {dimension_numbers = #tpu.dot_dimension_numbers<[1], [0], [0], [1], [0, 0, 1, 1], [], []>} : vector<32x289xf32>, vector<289x64xf32>, vector<32x64xf32> -> vector<32x64xf32>
    %cst_247 = arith.constant 0.000000e+00 : f32
    %359 = vector.broadcast %cst_247 : f32 to vector<32x64xf32>
    %360 = arith.maximumf %358, %359 : vector<32x64xf32>
    %361 = tpu.iota {dimensions = array<i32: 0>} : vector<64x256xi32>
    %362 = tpu.iota {dimensions = array<i32: 1>} : vector<64x256xi32>
    %c4_i32_248 = arith.constant 4 : i32
    %363 = vector.broadcast %c4_i32_248 : i32 to vector<64x256xi32>
    %364 = arith.shrui %362, %363 : vector<64x256xi32>
    %c15_i32_249 = arith.constant 15 : i32
    %365 = vector.broadcast %c15_i32_249 : i32 to vector<64x256xi32>
    %366 = arith.andi %362, %365 : vector<64x256xi32>
    %c1_i32_250 = arith.constant 1 : i32
    %367 = vector.broadcast %c1_i32_250 : i32 to vector<64x256xi32>
    %368 = arith.shrui %364, %367 : vector<64x256xi32>
    %c8_i32_251 = arith.constant 8 : i32
    %369 = vector.broadcast %c8_i32_251 : i32 to vector<64x256xi32>
    %370 = arith.muli %368, %369 : vector<64x256xi32>
    %c1_i32_252 = arith.constant 1 : i32
    %371 = vector.broadcast %c1_i32_252 : i32 to vector<64x256xi32>
    %372 = arith.shrui %366, %371 : vector<64x256xi32>
    %373 = arith.addi %370, %372 : vector<64x256xi32>
    %374 = arith.cmpi eq, %361, %373 : vector<64x256xi32>
    %375 = arith.extui %374 : vector<64x256xi1> to vector<64x256xi32>
    %376 = arith.sitofp %375 : vector<64x256xi32> to vector<64x256xf32>
    %cst_253 = arith.constant dense<0.000000e+00> : vector<32x256xf32>
    %377 = tpu.matmul %360, %376, %cst_253 {dimension_numbers = #tpu.dot_dimension_numbers<[1], [0], [0], [1], [0, 0, 1, 1], [], []>} : vector<32x64xf32>, vector<64x256xf32>, vector<32x256xf32> -> vector<32x256xf32>
    %c4_254 = arith.constant 4 : index
    %c0_255 = arith.constant 0 : index
    %c0_256 = arith.constant 0 : index
    %378 = vector.load %arg2[%c4_254, %c0_255, %c0_256] : memref<5x32x289xf32, #tpu.memory_space<vmem>>, vector<1x1x289xf32>
    %379 = vector.shape_cast %378 : vector<1x1x289xf32> to vector<1x289xf32>
    %c0_257 = arith.constant 0 : index
    %c17_258 = arith.constant 17 : index
    %380 = vector.load %arg4[%c0_257, %c17_258] : memref<32x290xf32, #tpu.memory_space<vmem>>, vector<32x256xf32>
    tpu.vector_store %arg4[%c0_257, %c17_258], %377 {strides = array<i32>} : memref<32x290xf32, #tpu.memory_space<vmem>>, vector<32x256xf32>,
    %c0_259 = arith.constant 0 : index
    %c0_260 = arith.constant 0 : index
    %381 = vector.load %arg4[%c0_259, %c0_260] : memref<32x290xf32, #tpu.memory_space<vmem>>, vector<32x256xf32>
    %cst_261 = arith.constant 0.000000e+00 : f32
    %382 = vector.shape_cast %13 : vector<1x256xi1> to vector<1x256xi1>
    %383 = vector.broadcast %382 : vector<1x256xi1> to vector<32x256xi1>
    %384 = vector.broadcast %cst_261 : f32 to vector<32x256xf32>
    %385 = arith.select %383, %381, %384 : vector<32x256xi1>, vector<32x256xf32>
    %c0_262 = arith.constant 0 : index
    %c0_263 = arith.constant 0 : index
    %386 = vector.load %arg5[%c0_262, %c0_263] : memref<289x256xf32, #tpu.memory_space<vmem>>, vector<32x256xf32>
    tpu.vector_store %arg5[%c0_262, %c0_263], %385 {strides = array<i32>} : memref<289x256xf32, #tpu.memory_space<vmem>>, vector<32x256xf32>,
    %c0_264 = arith.constant 0 : index
    %c1_265 = arith.constant 1 : index
    %387 = vector.load %arg4[%c0_264, %c1_265] : memref<32x290xf32, #tpu.memory_space<vmem>>, vector<32x256xf32>
    %cst_266 = arith.constant 0.000000e+00 : f32
    %388 = vector.shape_cast %10 : vector<1x256xi1> to vector<1x256xi1>
    %389 = vector.broadcast %388 : vector<1x256xi1> to vector<32x256xi1>
    %390 = vector.broadcast %cst_266 : f32 to vector<32x256xf32>
    %391 = arith.select %389, %387, %390 : vector<32x256xi1>, vector<32x256xf32>
    %c32_267 = arith.constant 32 : index
    %c0_268 = arith.constant 0 : index
    %392 = vector.load %arg5[%c32_267, %c0_268] : memref<289x256xf32, #tpu.memory_space<vmem>>, vector<32x256xf32>
    tpu.vector_store %arg5[%c32_267, %c0_268], %391 {strides = array<i32>} : memref<289x256xf32, #tpu.memory_space<vmem>>, vector<32x256xf32>,
    %c0_269 = arith.constant 0 : index
    %c2_270 = arith.constant 2 : index
    %393 = vector.load %arg4[%c0_269, %c2_270] : memref<32x290xf32, #tpu.memory_space<vmem>>, vector<32x256xf32>
    %cst_271 = arith.constant 0.000000e+00 : f32
    %394 = vector.shape_cast %14 : vector<1x256xi1> to vector<1x256xi1>
    %395 = vector.broadcast %394 : vector<1x256xi1> to vector<32x256xi1>
    %396 = vector.broadcast %cst_271 : f32 to vector<32x256xf32>
    %397 = arith.select %395, %393, %396 : vector<32x256xi1>, vector<32x256xf32>
    %c64_272 = arith.constant 64 : index
    %c0_273 = arith.constant 0 : index
    %398 = vector.load %arg5[%c64_272, %c0_273] : memref<289x256xf32, #tpu.memory_space<vmem>>, vector<32x256xf32>
    tpu.vector_store %arg5[%c64_272, %c0_273], %397 {strides = array<i32>} : memref<289x256xf32, #tpu.memory_space<vmem>>, vector<32x256xf32>,
    %c0_274 = arith.constant 0 : index
    %c16_275 = arith.constant 16 : index
    %399 = vector.load %arg4[%c0_274, %c16_275] : memref<32x290xf32, #tpu.memory_space<vmem>>, vector<32x256xf32>
    %cst_276 = arith.constant 0.000000e+00 : f32
    %400 = vector.shape_cast %6 : vector<1x256xi1> to vector<1x256xi1>
    %401 = vector.broadcast %400 : vector<1x256xi1> to vector<32x256xi1>
    %402 = vector.broadcast %cst_276 : f32 to vector<32x256xf32>
    %403 = arith.select %401, %399, %402 : vector<32x256xi1>, vector<32x256xf32>
    %c96_277 = arith.constant 96 : index
    %c0_278 = arith.constant 0 : index
    %404 = vector.load %arg5[%c96_277, %c0_278] : memref<289x256xf32, #tpu.memory_space<vmem>>, vector<32x256xf32>
    tpu.vector_store %arg5[%c96_277, %c0_278], %403 {strides = array<i32>} : memref<289x256xf32, #tpu.memory_space<vmem>>, vector<32x256xf32>,
    %c0_279 = arith.constant 0 : index
    %c17_280 = arith.constant 17 : index
    %405 = vector.load %arg4[%c0_279, %c17_280] : memref<32x290xf32, #tpu.memory_space<vmem>>, vector<32x256xf32>
    %c128_281 = arith.constant 128 : index
    %c0_282 = arith.constant 0 : index
    %406 = vector.load %arg5[%c128_281, %c0_282] : memref<289x256xf32, #tpu.memory_space<vmem>>, vector<32x256xf32>
    tpu.vector_store %arg5[%c128_281, %c0_282], %405 {strides = array<i32>} : memref<289x256xf32, #tpu.memory_space<vmem>>, vector<32x256xf32>,
    %c0_283 = arith.constant 0 : index
    %c18_284 = arith.constant 18 : index
    %407 = vector.load %arg4[%c0_283, %c18_284] : memref<32x290xf32, #tpu.memory_space<vmem>>, vector<32x256xf32>
    %cst_285 = arith.constant 0.000000e+00 : f32
    %408 = vector.shape_cast %8 : vector<1x256xi1> to vector<1x256xi1>
    %409 = vector.broadcast %408 : vector<1x256xi1> to vector<32x256xi1>
    %410 = vector.broadcast %cst_285 : f32 to vector<32x256xf32>
    %411 = arith.select %409, %407, %410 : vector<32x256xi1>, vector<32x256xf32>
    %c160_286 = arith.constant 160 : index
    %c0_287 = arith.constant 0 : index
    %412 = vector.load %arg5[%c160_286, %c0_287] : memref<289x256xf32, #tpu.memory_space<vmem>>, vector<32x256xf32>
    tpu.vector_store %arg5[%c160_286, %c0_287], %411 {strides = array<i32>} : memref<289x256xf32, #tpu.memory_space<vmem>>, vector<32x256xf32>,
    %c0_288 = arith.constant 0 : index
    %c32_289 = arith.constant 32 : index
    %413 = vector.load %arg4[%c0_288, %c32_289] : memref<32x290xf32, #tpu.memory_space<vmem>>, vector<32x256xf32>
    %cst_290 = arith.constant 0.000000e+00 : f32
    %414 = vector.shape_cast %15 : vector<1x256xi1> to vector<1x256xi1>
    %415 = vector.broadcast %414 : vector<1x256xi1> to vector<32x256xi1>
    %416 = vector.broadcast %cst_290 : f32 to vector<32x256xf32>
    %417 = arith.select %415, %413, %416 : vector<32x256xi1>, vector<32x256xf32>
    %c192_291 = arith.constant 192 : index
    %c0_292 = arith.constant 0 : index
    %418 = vector.load %arg5[%c192_291, %c0_292] : memref<289x256xf32, #tpu.memory_space<vmem>>, vector<32x256xf32>
    tpu.vector_store %arg5[%c192_291, %c0_292], %417 {strides = array<i32>} : memref<289x256xf32, #tpu.memory_space<vmem>>, vector<32x256xf32>,
    %c0_293 = arith.constant 0 : index
    %c33_294 = arith.constant 33 : index
    %419 = vector.load %arg4[%c0_293, %c33_294] : memref<32x290xf32, #tpu.memory_space<vmem>>, vector<32x256xf32>
    %cst_295 = arith.constant 0.000000e+00 : f32
    %420 = vector.shape_cast %12 : vector<1x256xi1> to vector<1x256xi1>
    %421 = vector.broadcast %420 : vector<1x256xi1> to vector<32x256xi1>
    %422 = vector.broadcast %cst_295 : f32 to vector<32x256xf32>
    %423 = arith.select %421, %419, %422 : vector<32x256xi1>, vector<32x256xf32>
    %c224_296 = arith.constant 224 : index
    %c0_297 = arith.constant 0 : index
    %424 = vector.load %arg5[%c224_296, %c0_297] : memref<289x256xf32, #tpu.memory_space<vmem>>, vector<32x256xf32>
    tpu.vector_store %arg5[%c224_296, %c0_297], %423 {strides = array<i32>} : memref<289x256xf32, #tpu.memory_space<vmem>>, vector<32x256xf32>,
    %c0_298 = arith.constant 0 : index
    %c34_299 = arith.constant 34 : index
    %425 = vector.load %arg4[%c0_298, %c34_299] : memref<32x290xf32, #tpu.memory_space<vmem>>, vector<32x256xf32>
    %cst_300 = arith.constant 0.000000e+00 : f32
    %426 = vector.shape_cast %16 : vector<1x256xi1> to vector<1x256xi1>
    %427 = vector.broadcast %426 : vector<1x256xi1> to vector<32x256xi1>
    %428 = vector.broadcast %cst_300 : f32 to vector<32x256xf32>
    %429 = arith.select %427, %425, %428 : vector<32x256xi1>, vector<32x256xf32>
    %c256_301 = arith.constant 256 : index
    %c0_302 = arith.constant 0 : index
    %430 = vector.load %arg5[%c256_301, %c0_302] : memref<289x256xf32, #tpu.memory_space<vmem>>, vector<32x256xf32>
    tpu.vector_store %arg5[%c256_301, %c0_302], %429 {strides = array<i32>} : memref<289x256xf32, #tpu.memory_space<vmem>>, vector<32x256xf32>,
    %cst_303 = arith.constant 1.000000e+00 : f32
    %431 = vector.broadcast %cst_303 : f32 to vector<1x256xf32>
    %c288_304 = arith.constant 288 : index
    %c0_305 = arith.constant 0 : index
    %432 = vector.load %arg5[%c288_304, %c0_305] : memref<289x256xf32, #tpu.memory_space<vmem>>, vector<1x256xf32>
    tpu.vector_store %arg5[%c288_304, %c0_305], %431 {strides = array<i32>} : memref<289x256xf32, #tpu.memory_space<vmem>>, vector<1x256xf32>,
    %c0_306 = arith.constant 0 : index
    %c0_307 = arith.constant 0 : index
    %433 = vector.load %arg5[%c0_306, %c0_307] : memref<289x256xf32, #tpu.memory_space<vmem>>, vector<289x256xf32>
    %cst_308 = arith.constant dense<0.000000e+00> : vector<1x256xf32>
    %434 = tpu.matmul %379, %433, %cst_308 {dimension_numbers = #tpu.dot_dimension_numbers<[1], [0], [0], [1], [0, 0, 1, 1], [], []>} : vector<1x289xf32>, vector<289x256xf32>, vector<1x256xf32> -> vector<1x256xf32>
    %c0_309 = arith.constant 0 : index
    %c0_310 = arith.constant 0 : index
    %435 = vector.load %arg3[%c0_309, %c0_310] : memref<1x256xf32, #tpu.memory_space<vmem>>, vector<1x256xf32>
    tpu.vector_store %arg3[%c0_309, %c0_310], %434 {strides = array<i32>} : memref<1x256xf32, #tpu.memory_space<vmem>>, vector<1x256xf32>,
    return
  }
  func.func @transform_0(%arg0: i32) -> (i32, i32) {
    %c0_i32 = arith.constant 0 : i32
    %c0_i32_0 = arith.constant 0 : i32
    %c0_i32_1 = arith.constant 0 : i32
    return %c0_i32, %c0_i32_0 : i32, i32
  }
  func.func @transform_1(%arg0: i32) -> (i32, i32, i32) {
    %c0_i32 = arith.constant 0 : i32
    %c0_i32_0 = arith.constant 0 : i32
    %c0_i32_1 = arith.constant 0 : i32
    %c0_i32_2 = arith.constant 0 : i32
    return %c0_i32, %c0_i32_0, %c0_i32_1 : i32, i32, i32
  }
  func.func @transform_2(%arg0: i32) -> (i32, i32) {
    %c0_i32 = arith.constant 0 : i32
    %c0_i32_0 = arith.constant 0 : i32
    %c0_i32_1 = arith.constant 0 : i32
    return %c0_i32, %c0_i32_0 : i32, i32
  }
}

</mosaic_0001>

<bundles_post_ra>
// kernel: denoising_encoder_forward.1
= control target key start
LH: loop header
LB: loop body
LE: loop exit
PB: predicated region body
PF: predicated region fallthrough
CT: control target
= control target key end

     0   :  { %s4638_s11 = smov 17   ;;  %v11_v1 = vlaneseq  ;;  %vm6606_vm2 = vcmask 138240   ;;  %v4639_v12 = vmov 1966171168   ;;  %s4641_s12 = smov 127   ;;  %v6658_v30 = vmov 0  ;;  %s6596_s0 = inlined_call_operand.vmem [shape: f32[1,256], index: 0, kind: input, shape index: {}]   ;;  %s6597_s1 = inlined_call_operand.vmem [shape: f32[5,32,289], index: 1, kind: input, shape index: {}]   ;;  %s6598_s2 = inlined_call_operand.vmem [shape: f32[1,256], index: 2, kind: output, shape index: {}]  }
   0x1   :  { %v54_v0 = vld [vmem:[%s6596_s0] sm:$0x3]  ;;  %v90_v13 = vunpack.c.l.s4 %v4639_v12  ;;  %s4640_s0 = smov 94   ;;  %v6613_v35 = vmov 1.0   ;;  %s4643_s13 = smov 126   ;;  %v6609_v59 = vmov 0.0  }
   0x2   :  { %60 = vrot.lane.b32.xlu0 %v54_v0, %s4638_s11  ;;  %vm67_vm0 = vcmp.ge.s32.totalorder %v11_v1, 17  ;;  %vm68_vm1 = vcmp.lt.s32.totalorder %v11_v1, 273  ;;  %v4678_v5 = vand.u32 127, %v11_v1  ;;  %v4680_v6 = vshrl.u32 %v11_v1, 7  ;;  %s4644_s14 = smov 112   ;;  %s4645_s15 = smov 110   ;;  %547 = vmatprep.mubr.f32.mxu1 %v6609_v59 }
   0x3   :  { %vm69_vm3 = vmand %vm67_vm0, %vm68_vm1  ;;  %v91_v22 = vunpack.c.0.s8 %v90_v13  ;;  %vm4733_vm8 = vcmp.lt.s32.totalorder %v11_v1, 256  ;;  %s4646_s16 = smov 96   ;;  %s4647_s17 = smov 95   ;;  %vm6599_vm10 = vcmask 769024   ;;  %v6661_v63 = vmov 0 }
   0x4   :  { %v4683_v7 = vadd.s32 128, %v4678_v5  ;;  %v4686_v8 = vsub.s32 0, %v4680_v6  ;;  %v4689_v9 = vsub.s32 1, %v4680_v6  ;;  %v4692_v10 = vand.u32 15, %v4678_v5  ;;  %s4648_s18 = smov 111   ;;  %s4650_s27 = smov 9  }
   0x5   :  { %v6611_v11 = vshrl.u32 %v4678_v5, 4  ;;  %v4701_v19 = vsub.s32 2, %v4680_v6  ;;  %v4731_v29 = vsub.s32 %v91_v22, %v4680_v6  ;;  %v6659_v30 = vsel %vm4733_vm8, 4294967295, %v6658_v30  ;;  %457 = vst.msk [vmem:[#allocation3 + $0x11] ss:$8 sm:$0x3] %vm4733_vm8, %v6613_v35 }
   0x6   :  { %6651 = vst [vmem:[#allocation4_spill] sm:$0xff] %v4686_v8  ;;  %v4696_v15 = vand.u32 15, %v4683_v7  ;;  %vm6603_vm5 = vcmp.ge.s32.totalorder %v4692_v10, 1  ;;  %6660 = vst [vmem:[#allocation7_spill] sm:$0xff] %v6659_v30  ;;  %v6612_v60 = vshrl.u32 %v4683_v7, 4  ;;  %vm6607_vm12 = vcmp.le.s32.totalorder %v4692_v10, 14 }
   0x7   :  { %6652 = vst [vmem:[#allocation5_spill] sm:$0xff] %v4701_v19  ;;  %vm4707_vm4 = vcmp.ge.s32.totalorder %v6611_v11, 1  ;;  %6657 = vst [vmem:[#allocation6_spill] sm:$0xff] %v4731_v29  ;;  %v6663_v1 = vmov 0  ;;  %vm6601_vm14 = vcmask 1031168   ;;  %v6666_v22 = vmov 0 }
   0x8   :  { %vm6605_vm6 = vcmp.ge.s32.totalorder %v4696_v15, 1  ;;  %vm4724_vm7 = vmand %vm4707_vm4, %vm6603_vm5  ;;  %vm6615_vm9 = vcmp.le.s32.totalorder %v4696_v15, 14  ;;  %vm4790_vm11 = vcmp.le.s32.totalorder %v6612_v60, 14  ;;  %vm6616_vm0 = vcmask 916480   ;;  %s4651_s28 = smov 120   ;;  %s4652_s29 = smov 118  }
   0x9   :  { %v6662_v63 = vsel %vm4790_vm11, 4294967295, %v6661_v63  ;;  %vm4800_vm13 = vmand %vm4790_vm11, %vm6615_vm9  ;;  %vm476_vm1 = vcmask 1041408   ;;  %s4653_s30 = smov 119   ;;  %s4654_s19 = smov 5  }
   0xa   :  { %v6664_v1 = vsel %vm4800_vm13, 4294967295, %v6663_v1  ;;  %vm4817_vm15 = vmand %vm4707_vm4, %vm6607_vm12  ;;  %s4655_s20 = smov 124   ;;  %s4656_s21 = smov 122  }
   0xb   :  { %6665 = vst [vmem:[#allocation8_spill] sm:$0xff] %v6664_v1  ;;  %v6667_v22 = vsel %vm4817_vm15, 4294967295, %v6666_v22  ;;  %s4657_s22 = smov 123  }
  0x74   :  { %v61_v2 = vpop.permute.xlu0 %60 }
  0x75   :  { %v62_v3 = vrot.slane %v61_v2, 7 }
  0x77   :  { %v64_v4 = vsel %vm6606_vm2, %v62_v3, %v61_v2 }
  0x78   :  { %70 = vst.msk [vmem:[#allocation2] ss:$8 sm:$0x7] %vm69_vm3, %v64_v4  ;;  %vm6600_vm3 = vcmask 900096  }
  0x7f   :  { %v408_v14 = vld [vmem:[#allocation2] ss:$8 sm:$0x7] }
  0x80   :  { %v72_v16 = vld [vmem:[#allocation2] ss:$8 sm:$0x3]  ;;  %v417_v17 = vrot.slane %v408_v14, %v4689_v9  ;;  %v413_v18 = vrot.slane %v408_v14, %v4686_v8  ;;  %v421_v25 = vrot.slane %v408_v14, %v4701_v19 }
  0x81   :  { %v4703_v20 = vld [vmem:[#allocation2] ss:$8 sm:$0x7]  ;;  %v77_v23 = vrot.slane %v72_v16, %v4686_v8  ;;  %v81_v24 = vrot.slane %v72_v16, %v4689_v9 }
  0x82   :  { %424 = vrot.lane.b32.xlu1 %v417_v17, %s4640_s0  ;;  %422 = vrot.lane.b32.xlu0 %v413_v18, %s4640_s0  ;;  %v114_v26 = vrot.slane %v4703_v20, %v4686_v8  ;;  %v157_v28 = vld [vmem:[#allocation2] ss:$8 sm:$0x7]  ;;  %v118_v33 = vrot.slane %v4703_v20, %v4689_v9  ;;  %v122_v56 = vrot.slane %v4703_v20, %v4701_v19 }
  0x83   :  { %v84_v31 = vsel %vm4724_vm7, %v77_v23, 0.0  ;;  %v85_v32 = vsel %vm6605_vm6, %v81_v24, 0.0  ;;  %v162_v34 = vrot.slane %v157_v28, %v4686_v8  ;;  %v166_v38 = vrot.slane %v157_v28, %v4689_v9  ;;  %v205_v41 = vld [vmem:[#allocation2] ss:$8 sm:$0x7] }
  0x84   :  { %v88_v36 = vcombine.low %v84_v31, %v85_v32  ;;  %v170_v39 = vrot.slane %v157_v28, %v4701_v19  ;;  %v210_v42 = vrot.slane %v205_v41, %v4686_v8  ;;  %v214_v43 = vrot.slane %v205_v41, %v4689_v9  ;;  %v264_v44 = vld [vmem:[#allocation2] ss:$8 sm:$0x7] }
  0x85   :  { %v218_v45 = vrot.slane %v205_v41, %v4701_v19  ;;  %v269_v46 = vrot.slane %v264_v44, %v4686_v8  ;;  %v273_v47 = vrot.slane %v264_v44, %v4689_v9  ;;  %v277_v48 = vrot.slane %v264_v44, %v4701_v19  ;;  %v312_v49 = vld [vmem:[#allocation2] ss:$8 sm:$0x7] }
  0x86   :  { %426 = vrot.lane.b32.xlu1 %v421_v25, %s4640_s0  ;;  %123 = vrot.lane.b32.xlu0 %v114_v26, %s4641_s12  ;;  %v95_v37 = vrot.slane %v88_v36, %v4731_v29  ;;  %v317_v50 = vrot.slane %v312_v49, %v4686_v8  ;;  %v321_v51 = vrot.slane %v312_v49, %v4689_v9  ;;  %v360_v52 = vld [vmem:[#allocation2] ss:$8 sm:$0x7] }
  0x87   :  { %v325_v53 = vrot.slane %v312_v49, %v4701_v19  ;;  %v369_v54 = vrot.slane %v360_v52, %v4689_v9  ;;  %v373_v55 = vrot.slane %v360_v52, %v4701_v19  ;;  %v365_v57 = vrot.slane %v360_v52, %v4686_v8  ;;  %v253_v58 = vld [vmem:[#allocation2] ss:$8 sm:$0x7] }
  0x88   :  { %v102_v40 = vrot.slane %v95_v37, %v4731_v29 }
  0x8a   :  { %125 = vrot.lane.b32.xlu1 %v118_v33, %s4641_s12  ;;  %171 = vrot.lane.b32.xlu0 %v162_v34, %s4643_s13  ;;  %107 = vst.msk [vmem:[#allocation3] ss:$8 sm:$0x3] %vm4733_vm8, %v102_v40 }
  0x8e   :  { %173 = vrot.lane.b32.xlu1 %v166_v38, %s4643_s13  ;;  %175 = vrot.lane.b32.xlu0 %v170_v39, %s4643_s13 }
  0x92   :  { %219 = vrot.lane.b32.xlu1 %v210_v42, %s4644_s14  ;;  %221 = vrot.lane.b32.xlu0 %v214_v43, %s4644_s14 }
  0x96   :  { %223 = vrot.lane.b32.xlu1 %v218_v45, %s4644_s14  ;;  %278 = vrot.lane.b32.xlu0 %v269_v46, %s4645_s15 }
  0x9a   :  { %280 = vrot.lane.b32.xlu1 %v273_v47, %s4645_s15  ;;  %282 = vrot.lane.b32.xlu0 %v277_v48, %s4645_s15 }
  0x9e   :  { %326 = vrot.lane.b32.xlu1 %v317_v50, %s4646_s16  ;;  %328 = vrot.lane.b32.xlu0 %v321_v51, %s4646_s16 }
  0xa2   :  { %330 = vrot.lane.b32.xlu1 %v325_v53, %s4646_s16  ;;  %376 = vrot.lane.b32.xlu0 %v369_v54, %s4647_s17 }
  0xa6   :  { %378 = vrot.lane.b32.xlu1 %v373_v55, %s4647_s17  ;;  %127 = vrot.lane.b32.xlu0 %v122_v56, %s4641_s12 }
  0xaa   :  { %374 = vrot.lane.b32.xlu1 %v365_v57, %s4647_s17  ;;  %255 = vrot.lane.b32.xlu0 %v253_v58, %s4648_s18 }
  0xf4   :  { %v425_v61 = vpop.permute.xlu1 %424  ;;  %v423_v62 = vpop.permute.xlu0 %422 }
  0xf5   :  { %v429_v0 = vsel %vm6599_vm10, %v423_v62, %v425_v61 }
  0xf6   :  { %v433_v12 = vsel %vm6607_vm12, %v429_v0, 0.0  ;;  %v6668_v0 = vmov 0 }
  0xf8   :  { %v427_v2 = vpop.permute.xlu1 %426  ;;  %v124_v3 = vpop.permute.xlu0 %123 }
  0xf9   :  { %v430_v4 = vsel %vm6599_vm10, %v425_v61, %v427_v2  ;;  %vm6617_vm10 = vcmask 1039360  }
  0xfa   :  { %v434_v13 = vsel %vm4800_vm13, %v430_v4, 0.0 }
  0xfb   :  { %v437_v14 = vcombine.low %v433_v12, %v434_v13 }
  0xfc   :  { %v4809_v16 = vpop.permute.xlu1 %125  ;;  %v172_v17 = vpop.permute.xlu0 %171 }
  0xfd   :  { %v444_v18 = vrot.slane %v437_v14, %v4731_v29  ;;  %v130_v13 = vsel %vm6617_vm10, %v124_v3, %v4809_v16 }
  0xff   :  { %v451_v20 = vrot.slane %v444_v18, %v4731_v29 }
 0x100   :  { %v174_v23 = vpop.permute.xlu1 %173  ;;  %v176_v24 = vpop.permute.xlu0 %175 }
 0x101   :  { %454 = vst.msk [vmem:[#allocation3 + $0x10] ss:$8 sm:$0x3] %vm4733_vm8, %v451_v20  ;;  %v178_v25 = vsel %vm6601_vm14, %v172_v17, %v174_v23  ;;  %v179_v26 = vsel %vm6601_vm14, %v174_v23, %v176_v24  ;;  %vm6604_vm14 = vcmask 777216  }
 0x102   :  { %v182_v28 = vsel %vm4817_vm15, %v178_v25, 0.0  ;;  %v183_v31 = vsel %vm6615_vm9, %v179_v26, 0.0  ;;  %v134_v25 = vsel %vm4707_vm4, %v130_v13, 0.0  ;;  %v804_v13 = vadd.s32 88, %v4680_v6 }
 0x103   :  { %v186_v32 = vcombine.low %v182_v28, %v183_v31 }
 0x104   :  { %v220_v33 = vpop.permute.xlu1 %219  ;;  %v222_v34 = vpop.permute.xlu0 %221 }
 0x105   :  { %v193_v36 = vrot.slane %v186_v32, %v4731_v29  ;;  %v226_v38 = vsel %vm6616_vm0, %v220_v33, %v222_v34 }
 0x106   :  { %v230_v44 = vsel %vm6603_vm5, %v226_v38, 0.0 }
 0x107   :  { %v200_v37 = vrot.slane %v193_v36, %v4731_v29 }
 0x108   :  { %v224_v39 = vpop.permute.xlu1 %223  ;;  %v279_v40 = vpop.permute.xlu0 %278  ;;  %v462_v41 = vld [vmem:[#allocation3 + $0x18] sm:$0x3]  ;;  %v461_v42 = vld [vmem:[#allocation3 + $0x10] sm:$0x3] }
 0x109   :  { %203 = vst.msk [vmem:[#allocation3 + $0x2] ss:$8 sm:$0x3] %vm4733_vm8, %v200_v37  ;;  %v227_v43 = vsel %vm6616_vm0, %v222_v34, %v224_v39  ;;  %3983 = vmatprep.subr.msk.mxu1 %vm476_vm1, %v462_v41 }
 0x10a   :  { %v231_v45 = vsel %vm6605_vm6, %v227_v43, 0.0  ;;  %3984 = vmatpush1.msk.msra.mxu1 %vm476_vm1, %v461_v42  ;;  %vm6602_vm1 = vcmask 785408  }
 0x10b   :  { %v234_v46 = vcombine.low %v230_v44, %v231_v45  ;;  %v55_v45 = vld [vmem:[%s6597_s1] sm:$0xff] }
 0x10c   :  { %v281_v47 = vpop.permute.xlu1 %280  ;;  %v283_v48 = vpop.permute.xlu0 %282 }
 0x10d   :  { %v241_v49 = vrot.slane %v234_v46, %v4731_v29  ;;  %v285_v50 = vsel %vm6600_vm3, %v279_v40, %v281_v47  ;;  %v286_v51 = vsel %vm6600_vm3, %v281_v47, %v283_v48  ;;  %vm4856_vm3 = vmand %vm4790_vm11, %vm6605_vm6  ;;  %v56_v46 = vld [vmem:[%s6597_s1 + $0x18] sm:$0xff]  ;;  %v57_v47 = vld [vmem:[%s6597_s1 + $0x30] sm:$0xff] }
 0x10e   :  { %v289_v52 = vsel %vm6607_vm12, %v285_v50, 0.0  ;;  %v290_v53 = vsel %vm6615_vm9, %v286_v51, 0.0  ;;  %v6669_v0 = vsel %vm4856_vm3, 4294967295, %v6668_v0  ;;  %v58_v48 = vld [vmem:[%s6597_s1 + $0x48] sm:$0xff]  ;;  %v4911_v50 = vand.u32 7, %v4678_v5 }
 0x10f   :  { %v248_v54 = vrot.slane %v241_v49, %v4731_v29  ;;  %v293_v55 = vcombine.low %v289_v52, %v290_v53  ;;  %v4908_v49 = vshrl.u32 %v4678_v5, 3 }
 0x110   :  { %v327_v56 = vpop.permute.xlu1 %326  ;;  %v329_v57 = vpop.permute.xlu0 %328  ;;  %v827_v53 = vmul.u32 2, %v4911_v50 }
 0x111   :  { %251 = vst.msk [vmem:[#allocation3 + $0x3] ss:$8 sm:$0x3] %vm4733_vm8, %v248_v54  ;;  %v300_v58 = vrot.slane %v293_v55, %v4731_v29  ;;  %v333_v62 = vsel %vm6602_vm1, %v327_v56, %v329_v57  ;;  %v825_v51 = vmul.u32 2, %v4908_v49  ;;  %v824_v55 = vadd.s32 248, %v4680_v6 }
 0x112   :  { %v337_v14 = vsel %vm6603_vm5, %v333_v62, 0.0  ;;  %vm463_vm5 = vcmask 80896   ;;  %v808_v56 = vadd.s32 120, %v4680_v6  ;;  %v806_v62 = vadd.s32 104, %v4680_v6 }
 0x113   :  { %v307_v61 = vrot.slane %v300_v58, %v4731_v29  ;;  %v826_v52 = vmul.u32 16, %v825_v51  ;;  %v807_v58 = vadd.s32 112, %v4680_v6  ;;  %v813_v51 = vadd.s32 160, %v4680_v6 }
 0x114   :  { %v331_v2 = vpop.permute.xlu1 %330  ;;  %v377_v4 = vpop.permute.xlu0 %376 }
 0x115   :  { %310 = vst.msk [vmem:[#allocation3 + $0x5] ss:$8 sm:$0x3] %vm4733_vm8, %v307_v61  ;;  %v334_v12 = vsel %vm6602_vm1, %v329_v57, %v331_v2  ;;  %vm6608_vm1 = vcmask 908288   ;;  %v4915_v54 = vadd.s32 %v827_v53, %v826_v52  ;;  %v823_v57 = vadd.s32 240, %v4680_v6 }
 0x116   :  { %v338_v17 = vsel %vm4856_vm3, %v334_v12, 0.0  ;;  %v822_v61 = vadd.s32 232, %v4680_v6  ;;  %v821_v2 = vadd.s32 224, %v4680_v6  ;;  %v820_v12 = vadd.s32 216, %v4680_v6 }
 0x117   :  { %v341_v18 = vcombine.low %v337_v14, %v338_v17  ;;  %vm859_vm6 = vcmp.eq.s32.totalorder %v823_v57, %v4915_v54  ;;  %vm843_vm2 = vcmp.eq.s32.totalorder %v807_v58, %v4915_v54  ;;  %v819_v14 = vadd.s32 208, %v4680_v6 }
 0x118   :  { %v379_v20 = vpop.permute.xlu1 %378  ;;  %v128_v23 = vpop.permute.xlu0 %127  ;;  %vm858_vm12 = vcmp.eq.s32.totalorder %v822_v61, %v4915_v54  ;;  %v803_v17 = vadd.s32 80, %v4680_v6  ;;  %v5032_v57 = vadd.s32 24, %v4680_v6  ;;  %v811_v61 = vadd.s32 144, %v4680_v6 }
 0x119   :  { %v348_v24 = vrot.slane %v341_v18, %v4731_v29  ;;  %v131_v26 = vsel %vm6617_vm10, %v4809_v16, %v128_v23  ;;  %v382_v3 = vsel %vm6604_vm14, %v377_v4, %v379_v20  ;;  %v818_v18 = vadd.s32 200, %v4680_v6 }
 0x11a   :  { %v138_v28 = vcombine.low %v134_v25, %v131_v26  ;;  %v386_v36 = vsel %vm4790_vm11, %v382_v3, 0.0  ;;  %v802_v20 = vadd.s32 72, %v4680_v6 }
 0x11b   :  { %v355_v31 = vrot.slane %v348_v24, %v4731_v29 }
 0x11c   :  { %v145_v32 = vrot.slane %v138_v28, %v4731_v29  ;;  %v375_v33 = vpop.permute.xlu1 %374  ;;  %v256_v34 = vpop.permute.xlu0 %255  ;;  %v590_v28 = vld [vmem:[#allocation2 + $0x10] sm:$0xff] }
 0x11d   :  { %358 = vst.msk [vmem:[#allocation3 + $0x6] ss:$8 sm:$0x3] %vm4733_vm8, %v355_v31  ;;  %v381_v37 = vsel %vm6604_vm14, %v375_v33, %v377_v4  ;;  %v257_v38 = vrot.slane %v256_v34, 1  ;;  %vm844_vm14 = vcmp.eq.s32.totalorder %v808_v56, %v4915_v54  ;;  %v805_v4 = vadd.s32 96, %v4680_v6  ;;  %v593_v31 = vld [vmem:[#allocation2 + $0x28] sm:$0xff] }
 0x11e   :  { %v152_v16 = vrot.slane %v145_v32, %v4731_v29  ;;  %v389_v39 = vcombine.low %v381_v37, %v386_v36  ;;  %v817_v32 = vadd.s32 192, %v4680_v6  ;;  %v801_v33 = vadd.s32 64, %v4680_v6 }
 0x11f   :  { %v259_v40 = vsel %vm6608_vm1, %v256_v34, %v257_v38  ;;  %vm842_vm1 = vcmp.eq.s32.totalorder %v806_v62, %v4915_v54  ;;  %v816_v34 = vadd.s32 184, %v4680_v6  ;;  %v4967_v36 = vadd.s32 56, %v4680_v6  ;;  %v596_v62 = vld [vmem:[#allocation2 + $0x40] sm:$0xff] }
 0x120   :  { %155 = vst.msk [vmem:[#allocation3 + $0x1] ss:$8 sm:$0x3] %vm4733_vm8, %v152_v16  ;;  %v396_v41 = vrot.slane %v389_v39, %v4731_v29  ;;  %262 = vst.msk [vmem:[#allocation3 + $0x4] ss:$8 sm:$0x3] %vm4733_vm8, %v259_v40 }
 0x121   :  { %v812_v56 = vadd.s32 152, %v4680_v6 }
 0x122   :  { %v403_v42 = vrot.slane %v396_v41, %v4731_v29  ;;  %v815_v41 = vadd.s32 176, %v4680_v6 }
 0x124   :  { %406 = vst.msk [vmem:[#allocation3 + $0x7] ss:$8 sm:$0x3] %vm4733_vm8, %v403_v42 }
 0x12b   :  { %v460_v43 = vld [vmem:[#allocation3 + $0x8] sm:$0xff]  ;;  %v459_v44 = vld [vmem:[#allocation3] sm:$0xff] }
 0x12c   :  { %513 = vmatprep.subr.mxu1 %v460_v43 }
 0x12d   :  { %514 = vmatpush1.msra.mxu1 %v459_v44  ;;  %v4993_v44 = vadd.s32 48, %v4680_v6 }
 0x12e   :  { %3985 = vmatmul.mubr.msk.f32.vlgmr.msra.gmra.mxu1 %vm463_vm5, %v55_v45  ;;  %v814_v45 = vadd.s32 168, %v4680_v6 }
 0x12f   :  { %553 = vmatprep.mubr.f32.mxu1 %v6609_v59 }
 0x132   :  { %3986 = vmatmul.mubr.msk.f32.gmra.mxu1 %vm463_vm5, %v56_v46 }
 0x133   :  { %559 = vmatprep.mubr.f32.mxu1 %v6609_v59 }
 0x136   :  { %3987 = vmatmul.mubr.msk.f32.gmra.mxu1 %vm463_vm5, %v57_v47  ;;  %v5001_v47 = vadd.s32 40, %v4680_v6 }
 0x137   :  { %565 = vmatprep.mubr.f32.mxu1 %v6609_v59 }
 0x13a   :  { %3988 = vmatmul.mubr.msk.f32.gmra.mxu1 %vm463_vm5, %v58_v48  ;;  %vm860_vm5 = vcmp.eq.s32.totalorder %v824_v55, %v4915_v54  ;;  %v5021_v55 = vadd.s32 32, %v4680_v6 }
 0x13b   :  { %4172 = vmatprep.subr.msk.mxu1 %vm860_vm5, %v6613_v35  ;;  %vm856_vm5 = vcmp.eq.s32.totalorder %v820_v12, %v4915_v54  ;;  %v599_v12 = vld [vmem:[#allocation2 + $0x58] sm:$0xff] }
 0x13c   :  { %4173 = vmatpush3.msk.msra.mxu1 %vm844_vm14, %v6613_v35  ;;  %vm857_vm14 = vcmp.eq.s32.totalorder %v821_v2, %v4915_v54  ;;  %v5043_v2 = vadd.s32 16, %v4680_v6 }
 0x13d   :  { %4174 = vmatprep.subr.msk.mxu1 %vm859_vm6, %v6613_v35  ;;  %vm841_vm6 = vcmp.eq.s32.totalorder %v805_v4, %v4915_v54  ;;  %v810_v4 = vadd.s32 136, %v4680_v6 }
 0x13e   :  { %4175 = vmatpush3.msk.msra.mxu1 %vm843_vm2, %v6613_v35  ;;  %vm840_vm2 = vcmp.eq.s32.totalorder %v804_v13, %v4915_v54 }
 0x13f   :  { %4176 = vmatprep.subr.msk.mxu1 %vm858_vm12, %v6613_v35  ;;  %vm855_vm12 = vcmp.eq.s32.totalorder %v819_v14, %v4915_v54  ;;  %v5056_v14 = vadd.s32 8, %v4680_v6 }
 0x140   :  { %4177 = vmatpush3.msk.msra.mxu1 %vm842_vm1, %v6613_v35  ;;  %vm839_vm1 = vcmp.eq.s32.totalorder %v803_v17, %v4915_v54 }
 0x141   :  { %4178 = vmatprep.subr.msk.mxu1 %vm857_vm14, %v6613_v35  ;;  %vm854_vm14 = vcmp.eq.s32.totalorder %v818_v18, %v4915_v54  ;;  %v809_v18 = vadd.s32 128, %v4680_v6 }
 0x142   :  { %4179 = vmatpush3.msk.msra.mxu1 %vm841_vm6, %v6613_v35  ;;  %vm838_vm6 = vcmp.eq.s32.totalorder %v802_v20, %v4915_v54 }
 0x143   :  { %4180 = vmatprep.subr.msk.mxu1 %vm856_vm5, %v6613_v35  ;;  %vm853_vm5 = vcmp.eq.s32.totalorder %v817_v32, %v4915_v54 }
 0x144   :  { %4181 = vmatpush3.msk.msra.mxu1 %vm840_vm2, %v6613_v35  ;;  %vm837_vm2 = vcmp.eq.s32.totalorder %v801_v33, %v4915_v54 }
 0x145   :  { %4182 = vmatprep.subr.msk.mxu1 %vm855_vm12, %v6613_v35  ;;  %vm852_vm12 = vcmp.eq.s32.totalorder %v816_v34, %v4915_v54 }
 0x146   :  { %4183 = vmatpush3.msk.msra.mxu1 %vm839_vm1, %v6613_v35  ;;  %vm836_vm1 = vcmp.eq.s32.totalorder %v4967_v36, %v4915_v54 }
 0x147   :  { %4184 = vmatprep.subr.msk.mxu1 %vm854_vm14, %v6613_v35  ;;  %vm851_vm14 = vcmp.eq.s32.totalorder %v815_v41, %v4915_v54 }
 0x148   :  { %4185 = vmatpush3.msk.msra.mxu1 %vm838_vm6, %v6613_v35  ;;  %vm835_vm6 = vcmp.eq.s32.totalorder %v4993_v44, %v4915_v54 }
 0x149   :  { %4186 = vmatprep.subr.msk.mxu1 %vm853_vm5, %v6613_v35  ;;  %vm850_vm5 = vcmp.eq.s32.totalorder %v814_v45, %v4915_v54 }
 0x14a   :  { %4187 = vmatpush3.msk.msra.mxu1 %vm837_vm2, %v6613_v35  ;;  %vm834_vm2 = vcmp.eq.s32.totalorder %v5001_v47, %v4915_v54 }
 0x14b   :  { %4188 = vmatprep.subr.msk.mxu1 %vm852_vm12, %v6613_v35  ;;  %vm849_vm12 = vcmp.eq.s32.totalorder %v813_v51, %v4915_v54 }
 0x14c   :  { %4189 = vmatpush3.msk.msra.mxu1 %vm836_vm1, %v6613_v35  ;;  %vm833_vm1 = vcmp.eq.s32.totalorder %v5021_v55, %v4915_v54 }
 0x14d   :  { %4190 = vmatprep.subr.msk.mxu1 %vm851_vm14, %v6613_v35  ;;  %vm848_vm14 = vcmp.eq.s32.totalorder %v812_v56, %v4915_v54 }
 0x14e   :  { %4191 = vmatpush3.msk.msra.mxu1 %vm835_vm6, %v6613_v35  ;;  %vm832_vm6 = vcmp.eq.s32.totalorder %v5032_v57, %v4915_v54 }
 0x14f   :  { %4192 = vmatprep.subr.msk.mxu1 %vm850_vm5, %v6613_v35  ;;  %vm847_vm5 = vcmp.eq.s32.totalorder %v811_v61, %v4915_v54 }
 0x150   :  { %4193 = vmatpush3.msk.msra.mxu1 %vm834_vm2, %v6613_v35  ;;  %vm831_vm2 = vcmp.eq.s32.totalorder %v5043_v2, %v4915_v54 }
 0x151   :  { %4194 = vmatprep.subr.msk.mxu1 %vm849_vm12, %v6613_v35  ;;  %vm846_vm12 = vcmp.eq.s32.totalorder %v810_v4, %v4915_v54 }
 0x152   :  { %4195 = vmatpush3.msk.msra.mxu1 %vm833_vm1, %v6613_v35  ;;  %vm830_vm1 = vcmp.eq.s32.totalorder %v5056_v14, %v4915_v54 }
 0x153   :  { %4196 = vmatprep.subr.msk.mxu1 %vm848_vm14, %v6613_v35  ;;  %vm845_vm14 = vcmp.eq.s32.totalorder %v809_v18, %v4915_v54 }
 0x154   :  { %4197 = vmatpush3.msk.msra.mxu1 %vm832_vm6, %v6613_v35  ;;  %vm829_vm6 = vcmp.eq.s32.totalorder %v4680_v6, %v4915_v54 }
 0x155   :  { %4198 = vmatprep.subr.msk.mxu1 %vm847_vm5, %v6613_v35  ;;  %vm6670_vm5 = vcmask 908288  }
 0x156   :  { %4199 = vmatpush3.msk.msra.mxu1 %vm831_vm2, %v6613_v35  ;;  %vm6671_vm2 = vmmov %vm6670_vm5 }
 0x157   :  { %4200 = vmatprep.subr.msk.mxu1 %vm846_vm12, %v6613_v35  ;;  %vm6672_vm12 = vcmp.le.s32.totalorder %v4692_v10, 14 }
 0x158   :  { %4201 = vmatpush3.msk.msra.mxu1 %vm830_vm1, %v6613_v35  ;;  %vm6673_vm1 = vmmov %vm6671_vm2 }
 0x159   :  { %4202 = vmatprep.subr.msk.mxu1 %vm845_vm14, %v6613_v35  ;;  %vm6674_vm14 = vmmov %vm6672_vm12 }
 0x15a   :  { %4203 = vmatpush3.msk.msra.mxu1 %vm829_vm6, %v6613_v35  ;;  %vm6675_vm6 = vmmov %vm6672_vm12 }
 0x1ee   :  { %v549_v23 = vpop.f32.mrf.mxu1 }
 0x1ef   :  { %v4949_v24 = vmax.f32 %v549_v23, 0.0 }
 0x1f0   :  { %v4954_v25 = vpop.f32.mrf.mxu1 }
 0x1f1   :  { %580 = vst [vmem:[#allocation2] sm:$0xff] %v4949_v24  ;;  %v573_v26 = vmax.f32 %v4954_v25, 0.0 }
 0x1f2   :  { %v555_v3 = vpop.f32.mrf.mxu1 }
 0x1f3   :  { %v4969_v37 = vmax.f32 %v555_v3, 0.0  ;;  %v4503_v38 = vpack.i.bf16 %v590_v28, %v573_v26 }
 0x1f4   :  { %v4974_v16 = vpop.f32.mrf.mxu1 }
 0x1f5   :  { %582 = vst [vmem:[#allocation2 + $0x18] sm:$0xff] %v4969_v37  ;;  %4504 = vrot.lane.b32.xlu0 %v4503_v38, %s4648_s18  ;;  %4494 = vrot.lane.b32.xlu1 %v4503_v38, %s4641_s12  ;;  %v4508_v39 = vpack.i.bf16 %v4969_v37, %v593_v31  ;;  %v575_v42 = vmax.f32 %v4974_v16, 0.0 }
 0x1f6   :  { %v561_v40 = vpop.f32.mrf.mxu1 }
 0x1f7   :  { %v4989_v43 = vmax.f32 %v561_v40, 0.0  ;;  %v4528_v53 = vpack.i.bf16 %v575_v42, %v4949_v24 }
 0x1f8   :  { %v4996_v46 = vpop.f32.mrf.mxu1 }
 0x1f9   :  { %584 = vst [vmem:[#allocation2 + $0x30] sm:$0xff] %v4989_v43  ;;  %4499 = vrot.lane.b32.xlu1 %v4503_v38, %s4644_s14  ;;  %4509 = vrot.lane.b32.xlu0 %v4508_v39, %s4641_s12  ;;  %v577_v58 = vmax.f32 %v4996_v46, 0.0 }
 0x1fa   :  { %v567_v48 = vpop.f32.mrf.mxu1 }
 0x1fb   :  { %v5013_v52 = vmax.f32 %v567_v48, 0.0  ;;  %v4538_v13 = vpack.i.bf16 %v596_v62, %v577_v58 }
 0x1fc   :  { %v5058_v17 = vpop.f32.mrf.mxu1 }
 0x1fd   :  { %586 = vst [vmem:[#allocation2 + $0x48] sm:$0xff] %v5013_v52  ;;  %4514 = vrot.lane.b32.xlu0 %v4508_v39, %s4644_s14  ;;  %4529 = vrot.lane.b32.xlu1 %v4528_v53, %s4644_s14  ;;  %v4548_v20 = vpack.i.bf16 %v5013_v52, %v599_v12  ;;  %v579_v23 = vmax.f32 %v5058_v17, 0.0 }
 0x1ff   :  { %v4568_v3 = vpack.i.bf16 %v579_v23, %v4989_v43 }
 0x201   :  { %4519 = vrot.lane.b32.xlu0 %v4508_v39, %s4648_s18  ;;  %4534 = vrot.lane.b32.xlu1 %v4528_v53, %s4648_s18 }
 0x205   :  { %4524 = vrot.lane.b32.xlu0 %v4528_v53, %s4641_s12  ;;  %4539 = vrot.lane.b32.xlu1 %v4538_v13, %s4641_s12 }
 0x209   :  { %4544 = vrot.lane.b32.xlu0 %v4538_v13, %s4644_s14  ;;  %4549 = vrot.lane.b32.xlu1 %v4548_v20, %s4641_s12 }
 0x20d   :  { %4569 = vrot.lane.b32.xlu0 %v4568_v3, %s4644_s14  ;;  %4554 = vrot.lane.b32.xlu1 %v4568_v3, %s4641_s12 }
 0x211   :  { %4574 = vrot.lane.b32.xlu0 %v4568_v3, %s4648_s18  ;;  %4559 = vrot.lane.b32.xlu1 %v4538_v13, %s4648_s18 }
 0x215   :  { %4579 = vrot.lane.b32.xlu0 %v4548_v20, %s4648_s18  ;;  %4564 = vrot.lane.b32.xlu1 %v4548_v20, %s4644_s14 }
 0x267   :  { %v4505_v54 = vpop.permute.xlu0 %4504  ;;  %v4495_v28 = vpop.permute.xlu1 %4494 }
 0x268   :  { %v4497_v31 = vunpack.i.h.bf16 %v4495_v28  ;;  %v4496_v32 = vunpack.i.l.bf16 %v4495_v28  ;;  %v4507_v34 = vunpack.i.h.bf16 %v4505_v54  ;;  %v4506_v38 = vunpack.i.l.bf16 %v4505_v54 }
 0x26a   :  { %v641_v33 = vsel %vm6617_vm10, %v4496_v32, %v4497_v31  ;;  %v761_v4 = vsel %vm6670_vm5, %v4506_v38, %v4507_v34  ;;  %vm6676_vm5 = vmmov %vm6673_vm1 }
 0x26b   :  { %v4500_v39 = vpop.permute.xlu1 %4499  ;;  %v4510_v40 = vpop.permute.xlu0 %4509  ;;  %v657_v48 = vsel %vm6615_vm9, %v641_v33, 0.0  ;;  %v777_v13 = vsel %vm4800_vm13, %v761_v4, 0.0 }
 0x26c   :  { %v4502_v41 = vunpack.i.h.bf16 %v4500_v39  ;;  %v4501_v45 = vunpack.i.l.bf16 %v4500_v39  ;;  %v665_v61 = vmax.f32 %v573_v26, %v657_v48  ;;  %v4512_v33 = vunpack.i.h.bf16 %v4510_v40 }
 0x26d   :  { %v4511_v39 = vunpack.i.l.bf16 %v4510_v40 }
 0x26e   :  { %v701_v51 = vsel %vm6616_vm0, %v4501_v45, %v4502_v41 }
 0x26f   :  { %v4515_v53 = vpop.permute.xlu0 %4514  ;;  %v4530_v56 = vpop.permute.xlu1 %4529  ;;  %v717_v62 = vsel %vm4790_vm11, %v701_v51, 0.0 }
 0x270   :  { %v725_v12 = vmax.f32 %v665_v61, %v717_v62  ;;  %v4516_v54 = vunpack.i.l.bf16 %v4515_v53  ;;  %v4532_v28 = vunpack.i.h.bf16 %v4530_v56  ;;  %v4517_v62 = vunpack.i.h.bf16 %v4515_v53 }
 0x271   :  { %v4531_v11 = vunpack.i.l.bf16 %v4530_v56 }
 0x272   :  { %v785_v3 = vmax.f32 %v725_v12, %v777_v13  ;;  %v703_v60 = vsel %vm6616_vm0, %v4532_v28, %v4516_v54 }
 0x273   :  { %v4520_v18 = vpop.permute.xlu0 %4519  ;;  %v4535_v20 = vpop.permute.xlu1 %4534 }
 0x274   :  { %989 = vmatprep.mubr.f32.mxu1 %v785_v3  ;;  %v4536_v31 = vunpack.i.l.bf16 %v4535_v20  ;;  %v4521_v25 = vunpack.i.l.bf16 %v4520_v18  ;;  %v4537_v26 = vunpack.i.h.bf16 %v4535_v20  ;;  %v4522_v4 = vunpack.i.h.bf16 %v4520_v18 }
 0x276   :  { %v760_v12 = vsel %vm6671_vm2, %v4536_v31, %v4506_v38  ;;  %v763_v56 = vsel %vm6673_vm1, %v4537_v26, %v4521_v25  ;;  %vm6677_vm2 = vmmov %vm6675_vm6 }
 0x277   :  { %v4525_v41 = vpop.permute.xlu0 %4524  ;;  %v4540_v48 = vpop.permute.xlu1 %4539  ;;  %v776_v25 = vsel %vm6675_vm6, %v760_v12, 0.0  ;;  %vm6680_vm6 = vmmov %vm6677_vm2 }
 0x278   :  { %v4527_v51 = vunpack.i.h.bf16 %v4525_v41  ;;  %v4526_v59 = vunpack.i.l.bf16 %v4525_v41  ;;  %v4542_v34 = vunpack.i.h.bf16 %v4540_v48  ;;  %v4541_v61 = vunpack.i.l.bf16 %v4540_v48 }
 0x279   :  { %v702_v48 = vsel %vm6616_vm0, %v4517_v62, %v4532_v28 }
 0x27a   :  { %v642_v13 = vsel %vm6617_vm10, %v4512_v33, %v4527_v51  ;;  %v643_v3 = vsel %vm6617_vm10, %v4527_v51, %v4511_v39  ;;  %v640_v40 = vsel %vm6617_vm10, %v4526_v59, %v4496_v32  ;;  %v645_v54 = vsel %vm6617_vm10, %v4541_v61, %v4542_v34 }
 0x27b   :  { %v656_v20 = vsel %vm6672_vm12, %v640_v40, 0.0  ;;  %v4545_v35 = vpop.permute.xlu0 %4544  ;;  %v4550_v41 = vpop.permute.xlu1 %4549  ;;  %v659_v53 = vsel %vm6615_vm9, %v643_v3, 0.0  ;;  %v658_v18 = vsel %vm6674_vm14, %v642_v13, 0.0  ;;  %v700_v59 = vsel %vm6616_vm0, %v4531_v11, %v4501_v45  ;;  %vm6678_vm12 = vmmov %vm6677_vm2 }
 0x27c   :  { %v664_v38 = vmax.f32 %v4949_v24, %v656_v20  ;;  %v4547_v31 = vunpack.i.h.bf16 %v4545_v35  ;;  %v4546_v33 = vunpack.i.l.bf16 %v4545_v35  ;;  %v667_v32 = vmax.f32 %v575_v42, %v659_v53  ;;  %vm6679_vm14 = vmmov %vm6673_vm1 }
 0x27d   :  { %v666_v39 = vmax.f32 %v4969_v37, %v658_v18  ;;  %v719_v24 = vsel %vm4790_vm11, %v703_v60, 0.0  ;;  %v762_v34 = vsel %vm6676_vm5, %v4522_v4, %v4537_v26  ;;  %v779_v11 = vsel %vm4800_vm13, %v763_v56, 0.0  ;;  %vm6681_vm5 = vmmov %vm6677_vm2 }
 0x27e   :  { %v724_v51 = vmax.f32 %v664_v38, %v700_v59  ;;  %v727_v3 = vmax.f32 %v667_v32, %v719_v24  ;;  %v661_v37 = vsel %vm6615_vm9, %v645_v54, 0.0  ;;  %v705_v16 = vsel %vm6616_vm0, %v4546_v33, %v4547_v31 }
 0x27f   :  { %v4570_v13 = vpop.permute.xlu0 %4569  ;;  %v4555_v35 = vpop.permute.xlu1 %4554  ;;  %v4552_v42 = vunpack.i.h.bf16 %v4550_v41  ;;  %v4551_v45 = vunpack.i.l.bf16 %v4550_v41  ;;  %v726_v20 = vmax.f32 %v666_v39, %v702_v48  ;;  %v778_v4 = vsel %vm6677_vm2, %v762_v34, 0.0  ;;  %vm6682_vm2 = vmmov %vm6673_vm1 }
 0x280   :  { %v4557_v28 = vunpack.i.h.bf16 %v4555_v35  ;;  %v4556_v62 = vunpack.i.l.bf16 %v4555_v35  ;;  %v4571_v12 = vunpack.i.l.bf16 %v4570_v13  ;;  %v784_v40 = vmax.f32 %v724_v51, %v776_v25 }
 0x281   :  { %v787_v60 = vmax.f32 %v727_v3, %v779_v11  ;;  %v721_v53 = vsel %vm4790_vm11, %v705_v16, 0.0  ;;  %v669_v54 = vmax.f32 %v577_v58, %v661_v37  ;;  %v786_v48 = vmax.f32 %v726_v20, %v778_v4 }
 0x282   :  { %v644_v26 = vsel %vm6617_vm10, %v4556_v62, %v4541_v61  ;;  %v646_v56 = vsel %vm6617_vm10, %v4552_v42, %v4557_v28  ;;  %v647_v18 = vsel %vm6617_vm10, %v4557_v28, %v4551_v45  ;;  %990 = vmatmul.mubr.f32.vlgmr.msra.gmra.mxu1 %v784_v40  ;;  %v4572_v61 = vunpack.i.h.bf16 %v4570_v13 }
 0x283   :  { %v4575_v41 = vpop.permute.xlu0 %4574  ;;  %v4560_v38 = vpop.permute.xlu1 %4559  ;;  %v660_v31 = vsel %vm6678_vm12, %v644_v26, 0.0  ;;  %994 = vmatprep.mubr.f32.mxu1 %v787_v60  ;;  %v729_v25 = vmax.f32 %v669_v54, %v721_v53  ;;  %v704_v24 = vsel %vm6616_vm0, %v4571_v12, %v4546_v33  ;;  %v663_v46 = vsel %vm6615_vm9, %v647_v18, 0.0  ;;  %vm6683_vm12 = vmmov %vm6673_vm1 }
 0x284   :  { %v4576_v59 = vunpack.i.l.bf16 %v4575_v41  ;;  %v4562_v32 = vunpack.i.h.bf16 %v4560_v38  ;;  %v4561_v39 = vunpack.i.l.bf16 %v4560_v38  ;;  %v668_v51 = vmax.f32 %v4989_v43, %v660_v31 }
 0x285   :  { %v662_v58 = vsel %vm6680_vm6, %v646_v56, 0.0  ;;  %v4577_v13 = vunpack.i.h.bf16 %v4575_v41  ;;  %v671_v40 = vmax.f32 %v579_v23, %v663_v46  ;;  %vm6622_vm6 = vcmp.ge.s32.totalorder %v4911_v50, 1 }
 0x286   :  { %v765_v34 = vsel %vm6673_vm1, %v4561_v39, %v4562_v32  ;;  %v764_v35 = vsel %vm6679_vm14, %v4576_v59, %v4561_v39  ;;  %995 = vmatmul.mubr.f32.gmra.mxu1 %v786_v48  ;;  %v728_v43 = vmax.f32 %v668_v51, %v704_v24  ;;  %v670_v60 = vmax.f32 %v5013_v52, %v662_v58  ;;  %vm6684_vm1 = vmmov %vm6681_vm5 }
 0x287   :  { %v4580_v3 = vpop.permute.xlu0 %4579  ;;  %v4565_v11 = vpop.permute.xlu1 %4564  ;;  %v781_v37 = vsel %vm4800_vm13, %v765_v34, 0.0  ;;  %v780_v33 = vsel %vm6681_vm5, %v764_v35, 0.0  ;;  %vm6618_vm14 = vcmask 597064   ;;  %vm6621_vm5 = vcmp.ge.s32.totalorder %v4908_v49, 1 }
 0x288   :  { %v4582_v16 = vunpack.i.h.bf16 %v4580_v3  ;;  %v4581_v42 = vunpack.i.l.bf16 %v4580_v3  ;;  %v4567_v45 = vunpack.i.h.bf16 %v4565_v11  ;;  %v4566_v28 = vunpack.i.l.bf16 %v4565_v11 }
 0x289   :  { %v789_v62 = vmax.f32 %v729_v25, %v781_v37  ;;  %v788_v12 = vmax.f32 %v728_v43, %v780_v33  ;;  %vm6620_vm9 = vcmask 1040384   ;;  %vm6623_vm10 = vcmask 269312  }
 0x28a   :  { %v707_v20 = vsel %vm6616_vm0, %v4572_v61, %v4566_v28  ;;  %v767_v26 = vsel %vm6682_vm2, %v4577_v13, %v4581_v42  ;;  %v706_v4 = vsel %vm6616_vm0, %v4567_v45, %v4572_v61  ;;  %v766_v53 = vsel %vm6683_vm12, %v4582_v16, %v4577_v13  ;;  %vm5180_vm2 = vmand %vm6621_vm5, %vm6622_vm6 }
 0x28b   :  { %999 = vmatprep.mubr.f32.mxu1 %v789_v62  ;;  %v723_v56 = vsel %vm4790_vm11, %v707_v20, 0.0  ;;  %v730_v18 = vmax.f32 %v670_v60, %v706_v4  ;;  %v782_v17 = vsel %vm6684_vm1, %v766_v53, 0.0  ;;  %v783_v52 = vsel %vm4800_vm13, %v767_v26, 0.0  ;;  %v4055_v20 = vld [vmem:[%s6597_s1 + $0x70] sm:$0xff] }
 0x28c   :  { %1000 = vmatmul.mubr.f32.gmra.mxu1 %v788_v12  ;;  %v731_v41 = vmax.f32 %v671_v40, %v723_v56  ;;  %vm6626_vm12 = vcmask 523264   ;;  %vm6619_vm1 = vcmask 516096   ;;  %v6687_v12 = vmov 1.0   ;;  %v4054_v40 = vld [vmem:[%s6597_s1 + $0x68] sm:$0xff] }
 0x28d   :  { %v790_v38 = vmax.f32 %v730_v18, %v782_v17  ;;  %1294 = vst.msk [vmem:[#allocation3 + $0x240] sm:$0x1] %vm6619_vm1, %v6687_v12  ;;  %1413 = vmatprep.mubr.f32.mxu0 %v4054_v40  ;;  %vm2003_vm0 = vcmask 122880  }
 0x28e   :  { %v791_v23 = vmax.f32 %v731_v41, %v783_v52 }
 0x290   :  { %1004 = vmatprep.mubr.f32.mxu1 %v791_v23 }
 0x291   :  { %1005 = vmatmul.mubr.f32.gmra.mxu1 %v790_v38 }
 0x292   :  { %4403 = vmatprep.mubr.msk.f32.mxu1 %vm6623_vm10, %v4055_v20 }
 0x294   :  { %v1331_v60 = vld [vmem:[#allocation3 + $0x240] sm:$0x1] }
 0x295   :  { %4393 = vmatprep.subr.msk.mxu1 %vm6620_vm9, %v1331_v60  ;;  %2004 = vst.msk [vmem:[#allocation3 + $0x240] sm:$0x1] %vm2003_vm0, %v6687_v12  ;;  %vm6625_vm0 = vcmp.le.s32.totalorder %v4911_v50, 6 }
 0x296   :  { %4394 = vmatpush3.msk.msra.mxu1 %vm6620_vm9, %v1331_v60  ;;  %vm5267_vm9 = vmand %vm6621_vm5, %vm6625_vm0 }
 0x342   :  { %v4204_v54 = vpop.f32.mrf.mxu1 }
 0x344   :  { %v4205_v31 = vpop.f32.mrf.mxu1 }
 0x345   :  { %v4206_v51 = vadd.f32 %v4205_v31, %v4204_v54 }
 0x346   :  { %v4207_v61 = vpop.f32.mrf.mxu1 }
 0x348   :  { %v4208_v59 = vpop.f32.mrf.mxu1 }
 0x349   :  { %v4209_v35 = vadd.f32 %v4208_v59, %v4207_v61 }
 0x34c   :  { %v4210_v32 = vpop.f32.mrf.mxu1 }
 0x34e   :  { %v4211_v39 = vpop.f32.mrf.mxu1 }
 0x34f   :  { %v4212_v48 = vadd.f32 %v4211_v39, %v4210_v32 }
 0x351   :  { %1031 = vrot.lane.b32.xlu0 %v4212_v48, %s4650_s27  ;;  %v4213_v25 = vpop.f32.mrf.mxu1 }
 0x353   :  { %v4214_v24 = vpop.f32.mrf.mxu1 }
 0x354   :  { %v4215_v34 = vadd.f32 %v4214_v24, %v4213_v25 }
 0x355   :  { %1027 = vrot.lane.b32.xlu0 %v4206_v51, %s4650_s27 }
 0x356   :  { %1033 = vrot.lane.b32.xlu1 %v4215_v34, %s4650_s27 }
 0x35a   :  { %1029 = vrot.lane.b32.xlu1 %v4209_v35, %s4650_s27 }
 0x3c3   :  { %v1032_v46 = vpop.permute.xlu0 %1031 }
 0x3c4   :  { %1042 = vst.msk [vmem:[#allocation2 + $0x30] sm:$0xff] %vm6618_vm14, %v1032_v46 }
 0x3c7   :  { %v1028_v58 = vpop.permute.xlu0 %1027 }
 0x3c8   :  { %1040 = vst.msk [vmem:[#allocation2] sm:$0xff] %vm6618_vm14, %v1028_v58  ;;  %v1034_v13 = vpop.permute.xlu1 %1033 }
 0x3c9   :  { %1043 = vst.msk [vmem:[#allocation2 + $0x48] sm:$0xff] %vm6618_vm14, %v1034_v13 }
 0x3cb   :  { %v1046_v11 = vld [vmem:[#allocation2 + $0x30] sm:$0xff] }
 0x3cc   :  { %v1030_v37 = vpop.permute.xlu1 %1029  ;;  %v1052_v43 = vsel %vm5180_vm2, %v1046_v11, 0.0 }
 0x3cd   :  { %1041 = vst.msk [vmem:[#allocation2 + $0x18] sm:$0xff] %vm6618_vm14, %v1030_v37  ;;  %vm6624_vm14 = vcmp.le.s32.totalorder %v4908_v49, 6 }
 0x3ce   :  { %1057 = vst.msk [vmem:[#allocation3 + $0x20] sm:$0xff] %vm6626_vm12, %v1052_v43  ;;  %vm5257_vm1 = vmand %vm6624_vm14, %vm6622_vm6 }
 0x3cf   :  { %v1044_v33 = vld [vmem:[#allocation2] sm:$0xff] }
 0x3d0   :  { %v1047_v16 = vld [vmem:[#allocation2 + $0x48] sm:$0xff]  ;;  %1243 = vrot.lane.b32.xlu1 %v1044_v33, %s4648_s18  ;;  %1129 = vrot.lane.b32.xlu0 %v1044_v33, %s4651_s28  ;;  %v1050_v42 = vsel %vm5180_vm2, %v1044_v33, 0.0 }
 0x3d1   :  { %v1053_v45 = vsel %vm5180_vm2, %v1047_v16, 0.0  ;;  %1055 = vst.msk [vmem:[#allocation3] sm:$0xff] %vm6626_vm12, %v1050_v42 }
 0x3d2   :  { %1058 = vst.msk [vmem:[#allocation3 + $0x30] sm:$0xff] %vm6626_vm12, %v1053_v45 }
 0x3d4   :  { %v1045_v28 = vld [vmem:[#allocation2 + $0x18] sm:$0xff] }
 0x3d5   :  { %1245 = vrot.lane.b32.xlu1 %v1045_v28, %s4648_s18  ;;  %1131 = vrot.lane.b32.xlu0 %v1045_v28, %s4651_s28  ;;  %v1051_v62 = vsel %vm5180_vm2, %v1045_v28, 0.0 }
 0x3d6   :  { %1056 = vst.msk [vmem:[#allocation3 + $0x10] sm:$0xff] %vm6626_vm12, %v1051_v62 }
 0x3d9   :  { %1215 = vrot.lane.b32.xlu1 %v1045_v28, %s4644_s14  ;;  %1101 = vrot.lane.b32.xlu0 %v1045_v28, %s4643_s13 }
 0x3dd   :  { %1247 = vrot.lane.b32.xlu1 %v1046_v11, %s4648_s18  ;;  %1133 = vrot.lane.b32.xlu0 %v1046_v11, %s4651_s28 }
 0x3e1   :  { %1217 = vrot.lane.b32.xlu1 %v1046_v11, %s4644_s14  ;;  %1103 = vrot.lane.b32.xlu0 %v1046_v11, %s4643_s13 }
 0x3e5   :  { %1249 = vrot.lane.b32.xlu1 %v1047_v16, %s4648_s18  ;;  %1135 = vrot.lane.b32.xlu0 %v1047_v16, %s4651_s28 }
 0x3e9   :  { %1213 = vrot.lane.b32.xlu1 %v1044_v33, %s4644_s14  ;;  %1099 = vrot.lane.b32.xlu0 %v1044_v33, %s4643_s13 }
 0x3ed   :  { %1219 = vrot.lane.b32.xlu1 %v1047_v16, %s4644_s14  ;;  %1105 = vrot.lane.b32.xlu0 %v1047_v16, %s4643_s13 }
 0x3f1   :  { %1187 = vrot.lane.b32.xlu1 %v1046_v11, %s4652_s29  ;;  %1073 = vrot.lane.b32.xlu0 %v1046_v11, %s4641_s12 }
 0x3f5   :  { %1189 = vrot.lane.b32.xlu1 %v1047_v16, %s4652_s29  ;;  %1075 = vrot.lane.b32.xlu0 %v1047_v16, %s4641_s12 }
 0x3f9   :  { %1185 = vrot.lane.b32.xlu1 %v1045_v28, %s4652_s29  ;;  %1071 = vrot.lane.b32.xlu0 %v1045_v28, %s4641_s12 }
 0x3fd   :  { %1183 = vrot.lane.b32.xlu1 %v1044_v33, %s4652_s29  ;;  %1069 = vrot.lane.b32.xlu0 %v1044_v33, %s4641_s12 }
 0x401   :  { %1163 = vrot.lane.b32.xlu1 %v1047_v16, %s4653_s30  ;;  %1161 = vrot.lane.b32.xlu0 %v1046_v11, %s4653_s30 }
 0x405   :  { %1159 = vrot.lane.b32.xlu1 %v1045_v28, %s4653_s30  ;;  %1157 = vrot.lane.b32.xlu0 %v1044_v33, %s4653_s30 }
 0x409   :  { %1279 = vrot.lane.b32.xlu1 %v1047_v16, %s4645_s15  ;;  %1277 = vrot.lane.b32.xlu0 %v1046_v11, %s4645_s15 }
 0x40d   :  { %1275 = vrot.lane.b32.xlu1 %v1045_v28, %s4645_s15  ;;  %1273 = vrot.lane.b32.xlu0 %v1044_v33, %s4645_s15 }
 0x442   :  { %v1244_v26 = vpop.permute.xlu1 %1243  ;;  %v1130_v4 = vpop.permute.xlu0 %1129 }
 0x443   :  { %v1255_v53 = vsel %vm6624_vm14, %v1244_v26, 0.0  ;;  %v1141_v56 = vsel %vm6622_vm6, %v1130_v4, 0.0 }
 0x444   :  { %1259 = vst.msk [vmem:[#allocation3 + $0x1c0] sm:$0xff] %vm6626_vm12, %v1255_v53  ;;  %1145 = vst.msk [vmem:[#allocation3 + $0xc0] sm:$0xff] %vm6626_vm12, %v1141_v56 }
 0x447   :  { %v1246_v18 = vpop.permute.xlu1 %1245  ;;  %v1132_v41 = vpop.permute.xlu0 %1131 }
 0x448   :  { %v1256_v17 = vsel %vm6624_vm14, %v1246_v18, 0.0  ;;  %v1142_v52 = vsel %vm6622_vm6, %v1132_v41, 0.0 }
 0x449   :  { %1260 = vst.msk [vmem:[#allocation3 + $0x1d0] sm:$0xff] %vm6626_vm12, %v1256_v17  ;;  %1146 = vst.msk [vmem:[#allocation3 + $0xd0] sm:$0xff] %vm6626_vm12, %v1142_v52 }
 0x44b   :  { %v1216_v54 = vpop.permute.xlu1 %1215  ;;  %v1102_v31 = vpop.permute.xlu0 %1101  ;;  %v1323_v52 = vld [vmem:[#allocation3 + $0x1c0] sm:$0xff] }
 0x44c   :  { %v1226_v61 = vsel %vm5257_vm1, %v1216_v54, 0.0  ;;  %v1112_v59 = vsel %vm5267_vm9, %v1102_v31, 0.0 }
 0x44d   :  { %1230 = vst.msk [vmem:[#allocation3 + $0x190] sm:$0xff] %vm6626_vm12, %v1226_v61  ;;  %1116 = vst.msk [vmem:[#allocation3 + $0x90] sm:$0xff] %vm6626_vm12, %v1112_v59  ;;  %v1307_v61 = vld [vmem:[#allocation3 + $0xc0] sm:$0xff] }
 0x44f   :  { %v1248_v32 = vpop.permute.xlu1 %1247  ;;  %v1134_v39 = vpop.permute.xlu0 %1133 }
 0x450   :  { %v1257_v48 = vsel %vm6624_vm14, %v1248_v32, 0.0  ;;  %v1143_v25 = vsel %vm6622_vm6, %v1134_v39, 0.0  ;;  %v1324_v41 = vld [vmem:[#allocation3 + $0x1d0] sm:$0xff] }
 0x451   :  { %1261 = vst.msk [vmem:[#allocation3 + $0x1e0] sm:$0xff] %vm6626_vm12, %v1257_v48  ;;  %1147 = vst.msk [vmem:[#allocation3 + $0xe0] sm:$0xff] %vm6626_vm12, %v1143_v25  ;;  %v1308_v17 = vld [vmem:[#allocation3 + $0xd0] sm:$0xff] }
 0x453   :  { %v1218_v51 = vpop.permute.xlu1 %1217  ;;  %v1104_v24 = vpop.permute.xlu0 %1103 }
 0x454   :  { %v1227_v34 = vsel %vm5257_vm1, %v1218_v51, 0.0  ;;  %v1113_v35 = vsel %vm5267_vm9, %v1104_v24, 0.0 }
 0x455   :  { %1231 = vst.msk [vmem:[#allocation3 + $0x1a0] sm:$0xff] %vm6626_vm12, %v1227_v34  ;;  %1117 = vst.msk [vmem:[#allocation3 + $0xa0] sm:$0xff] %vm6626_vm12, %v1113_v35 }
 0x457   :  { %v1250_v46 = vpop.permute.xlu1 %1249  ;;  %v1136_v58 = vpop.permute.xlu0 %1135 }
 0x458   :  { %v1258_v13 = vsel %vm6624_vm14, %v1250_v46, 0.0  ;;  %v1144_v11 = vsel %vm6622_vm6, %v1136_v58, 0.0  ;;  %v1325_v20 = vld [vmem:[#allocation3 + $0x1e0] sm:$0xff]  ;;  %v1320_v58 = vld [vmem:[#allocation3 + $0x190] sm:$0xff] }
 0x459   :  { %1262 = vst.msk [vmem:[#allocation3 + $0x1f0] sm:$0xff] %vm6626_vm12, %v1258_v13  ;;  %1148 = vst.msk [vmem:[#allocation3 + $0xf0] sm:$0xff] %vm6626_vm12, %v1144_v11  ;;  %v1309_v53 = vld [vmem:[#allocation3 + $0xe0] sm:$0xff]  ;;  %v1304_v13 = vld [vmem:[#allocation3 + $0x90] sm:$0xff] }
 0x45b   :  { %v1214_v37 = vpop.permute.xlu1 %1213  ;;  %v1100_v43 = vpop.permute.xlu0 %1099 }
 0x45c   :  { %v1225_v33 = vsel %vm5257_vm1, %v1214_v37, 0.0  ;;  %v1111_v16 = vsel %vm5267_vm9, %v1100_v43, 0.0  ;;  %v1321_v25 = vld [vmem:[#allocation3 + $0x1a0] sm:$0xff] }
 0x45d   :  { %1229 = vst.msk [vmem:[#allocation3 + $0x180] sm:$0xff] %vm6626_vm12, %v1225_v33  ;;  %1115 = vst.msk [vmem:[#allocation3 + $0x80] sm:$0xff] %vm6626_vm12, %v1111_v16  ;;  %v1305_v34 = vld [vmem:[#allocation3 + $0xa0] sm:$0xff] }
 0x45f   :  { %v1220_v42 = vpop.permute.xlu1 %1219  ;;  %v1106_v45 = vpop.permute.xlu0 %1105 }
 0x460   :  { %v1228_v28 = vsel %vm5257_vm1, %v1220_v42, 0.0  ;;  %v1114_v62 = vsel %vm5267_vm9, %v1106_v45, 0.0  ;;  %v1326_v40 = vld [vmem:[#allocation3 + $0x1f0] sm:$0xff] }
 0x461   :  { %v1310_v60 = vld [vmem:[#allocation3 + $0xf0] sm:$0xff]  ;;  %1232 = vst.msk [vmem:[#allocation3 + $0x1b0] sm:$0xff] %vm6626_vm12, %v1228_v28  ;;  %1118 = vst.msk [vmem:[#allocation3 + $0xb0] sm:$0xff] %vm6626_vm12, %v1114_v62  ;;  %4216 = vmatprep.subr.mxu0 %v1326_v40 }
 0x462   :  { %4217 = vmatpush3.msra.mxu0 %v1310_v60 }
 0x463   :  { %v1188_v26 = vpop.permute.xlu1 %1187  ;;  %4218 = vmatprep.subr.mxu0 %v1325_v20  ;;  %v1074_v4 = vpop.permute.xlu0 %1073 }
 0x464   :  { %v1197_v56 = vsel %vm6625_vm0, %v1188_v26, 0.0  ;;  %v1083_v18 = vsel %vm6621_vm5, %v1074_v4, 0.0  ;;  %4219 = vmatpush3.msra.mxu0 %v1309_v53  ;;  %v1319_v11 = vld [vmem:[#allocation3 + $0x180] sm:$0xff] }
 0x465   :  { %1201 = vst.msk [vmem:[#allocation3 + $0x160] sm:$0xff] %vm6626_vm12, %v1197_v56  ;;  %1087 = vst.msk [vmem:[#allocation3 + $0x60] sm:$0xff] %vm6626_vm12, %v1083_v18  ;;  %4220 = vmatprep.subr.mxu0 %v1324_v41  ;;  %v1303_v33 = vld [vmem:[#allocation3 + $0x80] sm:$0xff] }
 0x466   :  { %4221 = vmatpush3.msra.mxu0 %v1308_v17 }
 0x467   :  { %v1190_v54 = vpop.permute.xlu1 %1189  ;;  %4222 = vmatprep.subr.mxu0 %v1323_v52  ;;  %v1076_v31 = vpop.permute.xlu0 %1075 }
 0x468   :  { %v1198_v59 = vsel %vm6625_vm0, %v1190_v54, 0.0  ;;  %v1084_v32 = vsel %vm6621_vm5, %v1076_v31, 0.0  ;;  %4223 = vmatpush3.msra.mxu0 %v1307_v61  ;;  %v1322_v39 = vld [vmem:[#allocation3 + $0x1b0] sm:$0xff] }
 0x469   :  { %v1306_v48 = vld [vmem:[#allocation3 + $0xb0] sm:$0xff]  ;;  %1202 = vst.msk [vmem:[#allocation3 + $0x170] sm:$0xff] %vm6626_vm12, %v1198_v59  ;;  %1088 = vst.msk [vmem:[#allocation3 + $0x70] sm:$0xff] %vm6626_vm12, %v1084_v32  ;;  %4224 = vmatprep.subr.mxu0 %v1322_v39 }
 0x46a   :  { %4225 = vmatpush3.msra.mxu0 %v1306_v48  ;;  %v1298_v32 = vld [vmem:[#allocation3 + $0x30] sm:$0xff]  ;;  %v1297_v48 = vld [vmem:[#allocation3 + $0x20] sm:$0xff] }
 0x46b   :  { %v1186_v51 = vpop.permute.xlu1 %1185  ;;  %4226 = vmatprep.subr.mxu0 %v1321_v25  ;;  %v1072_v24 = vpop.permute.xlu0 %1071 }
 0x46c   :  { %v1196_v35 = vsel %vm6625_vm0, %v1186_v51, 0.0  ;;  %v1082_v46 = vsel %vm6621_vm5, %v1072_v24, 0.0  ;;  %4227 = vmatpush3.msra.mxu0 %v1305_v34  ;;  %v1317_v62 = vld [vmem:[#allocation3 + $0x160] sm:$0xff] }
 0x46d   :  { %1200 = vst.msk [vmem:[#allocation3 + $0x150] sm:$0xff] %vm6626_vm12, %v1196_v35  ;;  %1086 = vst.msk [vmem:[#allocation3 + $0x50] sm:$0xff] %vm6626_vm12, %v1082_v46  ;;  %4228 = vmatprep.subr.mxu0 %v1320_v58  ;;  %v1301_v20 = vld [vmem:[#allocation3 + $0x60] sm:$0xff]  ;;  %v1296_v46 = vld [vmem:[#allocation3 + $0x10] sm:$0xff] }
 0x46e   :  { %4229 = vmatpush3.msra.mxu0 %v1304_v13  ;;  %v4053_v13 = vld [vmem:[%s6597_s1 + $0x60] sm:$0xff] }
 0x46f   :  { %v1184_v37 = vpop.permute.xlu1 %1183  ;;  %4230 = vmatprep.subr.mxu0 %v1319_v11  ;;  %v1070_v43 = vpop.permute.xlu0 %1069  ;;  %v1295_v11 = vld [vmem:[#allocation3] sm:$0xff] }
 0x470   :  { %v1195_v16 = vsel %vm6625_vm0, %v1184_v37, 0.0  ;;  %v1081_v42 = vsel %vm6621_vm5, %v1070_v43, 0.0  ;;  %4231 = vmatpush3.msra.mxu0 %v1303_v33  ;;  %v1318_v45 = vld [vmem:[#allocation3 + $0x170] sm:$0xff]  ;;  %vm5339_vm5 = vmand %vm6624_vm14, %vm6625_vm0  ;;  %v4057_v37 = vld [vmem:[%s6597_s1 + $0x80] sm:$0xff] }
 0x471   :  { %v1302_v28 = vld [vmem:[#allocation3 + $0x70] sm:$0xff]  ;;  %1199 = vst.msk [vmem:[#allocation3 + $0x140] sm:$0xff] %vm6626_vm12, %v1195_v16  ;;  %1085 = vst.msk [vmem:[#allocation3 + $0x40] sm:$0xff] %vm6626_vm12, %v1081_v42  ;;  %4232 = vmatprep.subr.mxu0 %v1318_v45  ;;  %v4056_v33 = vld [vmem:[%s6597_s1 + $0x78] sm:$0xff] }
 0x472   :  { %4233 = vmatpush3.msra.mxu0 %v1302_v28  ;;  %v4060_v42 = vld [vmem:[%s6597_s1 + $0x98] sm:$0xff]  ;;  %v4059_v28 = vld [vmem:[%s6597_s1 + $0x90] sm:$0xff] }
 0x473   :  { %v1164_v40 = vpop.permute.xlu1 %1163  ;;  %4234 = vmatprep.subr.mxu0 %v1317_v62  ;;  %v1162_v60 = vpop.permute.xlu0 %1161 }
 0x474   :  { %1172 = vst.msk [vmem:[#allocation3 + $0x130] sm:$0xff] %vm6626_vm12, %v1164_v40  ;;  %1171 = vst.msk [vmem:[#allocation3 + $0x120] sm:$0xff] %vm6626_vm12, %v1162_v60  ;;  %4235 = vmatpush3.msra.mxu0 %v1301_v20  ;;  %v1316_v26 = vld [vmem:[#allocation3 + $0x150] sm:$0xff]  ;;  %v4058_v40 = vld [vmem:[%s6597_s1 + $0x88] sm:$0xff] }
 0x475   :  { %v1300_v4 = vld [vmem:[#allocation3 + $0x50] sm:$0xff]  ;;  %4236 = vmatprep.subr.mxu0 %v1316_v26  ;;  %v4061_v20 = vld [vmem:[%s6597_s1 + $0xa0] sm:$0xff]  ;;  %v4062_v26 = vld [vmem:[%s6597_s1 + $0xa8] sm:$0xff] }
 0x476   :  { %4237 = vmatpush3.msra.mxu0 %v1300_v4  ;;  %v4063_v60 = vld [vmem:[%s6597_s1 + $0xb0] sm:$0xff]  ;;  %v4064_v4 = vld [vmem:[%s6597_s1 + $0xb8] sm:$0xff] }
 0x477   :  { %v1160_v53 = vpop.permute.xlu1 %1159  ;;  %v1158_v56 = vpop.permute.xlu0 %1157 }
 0x478   :  { %1170 = vst.msk [vmem:[#allocation3 + $0x110] sm:$0xff] %vm6626_vm12, %v1160_v53  ;;  %1169 = vst.msk [vmem:[#allocation3 + $0x100] sm:$0xff] %vm6626_vm12, %v1158_v56  ;;  %v1315_v18 = vld [vmem:[#allocation3 + $0x140] sm:$0xff]  ;;  %v5389_v53 = vand.u32 3, %v4678_v5  ;;  %v5392_v56 = vshrl.u32 %v4678_v5, 2 }
 0x479   :  { %v1299_v41 = vld [vmem:[#allocation3 + $0x40] sm:$0xff]  ;;  %4238 = vmatprep.subr.mxu0 %v1315_v18 }
 0x47a   :  { %4239 = vmatpush3.msra.mxu0 %v1299_v41  ;;  %v1595_v18 = vmul.u32 2, %v5392_v56  ;;  %v1597_v41 = vmul.u32 2, %v5389_v53  ;;  %vm6710_vm3 = vcmp.ge.s32.totalorder %v5392_v56, 1 }
 0x47b   :  { %v1280_v52 = vpop.permute.xlu1 %1279  ;;  %v1278_v54 = vpop.permute.xlu0 %1277  ;;  %v1314_v31 = vld [vmem:[#allocation3 + $0x130] sm:$0xff]  ;;  %v1313_v39 = vld [vmem:[#allocation3 + $0x120] sm:$0xff] }
 0x47c   :  { %v1288_v61 = vsel %vm5339_vm5, %v1280_v52, 0.0  ;;  %v1287_v59 = vsel %vm5339_vm5, %v1278_v54, 0.0  ;;  %4240 = vmatprep.subr.mxu0 %v1314_v31  ;;  %v1596_v52 = vmul.u32 8, %v1595_v18 }
 0x47d   :  { %1292 = vst.msk [vmem:[#allocation3 + $0x230] sm:$0xff] %vm6626_vm12, %v1288_v61  ;;  %1291 = vst.msk [vmem:[#allocation3 + $0x220] sm:$0xff] %vm6626_vm12, %v1287_v59  ;;  %4241 = vmatpush3.msra.mxu0 %v1298_v32 }
 0x47e   :  { %4242 = vmatprep.subr.mxu0 %v1313_v39  ;;  %v1598_v54 = vadd.s32 %v1597_v41, %v1596_v52 }
 0x47f   :  { %v1276_v25 = vpop.permute.xlu1 %1275  ;;  %4243 = vmatpush3.msra.mxu0 %v1297_v48  ;;  %v1274_v51 = vpop.permute.xlu0 %1273  ;;  %v1312_v24 = vld [vmem:[#allocation3 + $0x110] sm:$0xff]  ;;  %v1311_v58 = vld [vmem:[#allocation3 + $0x100] sm:$0xff] }
 0x480   :  { %v1286_v34 = vsel %vm5339_vm5, %v1276_v25, 0.0  ;;  %v1285_v35 = vsel %vm5339_vm5, %v1274_v51, 0.0  ;;  %4244 = vmatprep.subr.mxu0 %v1312_v24  ;;  %vm1606_vm6 = vcmp.eq.s32.totalorder %v4967_v36, %v1598_v54  ;;  %vm1603_vm14 = vcmp.eq.s32.totalorder %v5021_v55, %v1598_v54 }
 0x481   :  { %1290 = vst.msk [vmem:[#allocation3 + $0x210] sm:$0xff] %vm6626_vm12, %v1286_v34  ;;  %1289 = vst.msk [vmem:[#allocation3 + $0x200] sm:$0xff] %vm6626_vm12, %v1285_v35  ;;  %4245 = vmatpush3.msra.mxu0 %v1296_v46  ;;  %vm1602_vm0 = vcmp.eq.s32.totalorder %v5032_v57, %v1598_v54 }
 0x482   :  { %4246 = vmatprep.subr.mxu0 %v1311_v58 }
 0x483   :  { %4247 = vmatpush3.msra.mxu0 %v1295_v11 }
 0x484   :  { %1414 = vmatmul.mubr.f32.vlgmr.msra.gmra.mxu0 %v4053_v13  ;;  %v1330_v43 = vld [vmem:[#allocation3 + $0x230] sm:$0xff]  ;;  %v1329_v16 = vld [vmem:[#allocation3 + $0x220] sm:$0xff] }
 0x485   :  { %4395 = vmatprep.subr.mxu1 %v1330_v43  ;;  %1418 = vmatprep.mubr.f32.mxu0 %v4057_v37 }
 0x486   :  { %4396 = vmatpush3.msra.mxu1 %v1330_v43 }
 0x487   :  { %4397 = vmatprep.subr.mxu1 %v1329_v16 }
 0x488   :  { %4398 = vmatpush3.msra.mxu1 %v1329_v16  ;;  %1419 = vmatmul.mubr.f32.gmra.mxu0 %v4056_v33  ;;  %v1328_v45 = vld [vmem:[#allocation3 + $0x210] sm:$0xff]  ;;  %v1327_v62 = vld [vmem:[#allocation3 + $0x200] sm:$0xff] }
 0x489   :  { %4399 = vmatprep.subr.mxu1 %v1328_v45  ;;  %1423 = vmatprep.mubr.f32.mxu0 %v4060_v42 }
 0x48a   :  { %4400 = vmatpush3.msra.mxu1 %v1328_v45 }
 0x48b   :  { %4401 = vmatprep.subr.mxu1 %v1327_v62 }
 0x48c   :  { %4402 = vmatpush3.msra.mxu1 %v1327_v62  ;;  %1424 = vmatmul.mubr.f32.gmra.mxu0 %v4059_v28 }
 0x48d   :  { %4404 = vmatmul.mubr.msk.f32.vlgmr.msra.gmra.mxu1 %vm6623_vm10, %v4058_v40  ;;  %1428 = vmatprep.mubr.f32.mxu0 %v4063_v60 }
 0x48e   :  { %4406 = vmatprep.mubr.msk.f32.mxu1 %vm6623_vm10, %v4061_v20  ;;  %4409 = vmatprep.subr.msk.mxu1 %vm1606_vm6, %v6687_v12 }
 0x48f   :  { %4410 = vmatpush3.msk.msra.mxu1 %vm1606_vm6, %v6687_v12  ;;  %vm1604_vm6 = vcmp.eq.s32.totalorder %v5001_v47, %v1598_v54 }
 0x490   :  { %1429 = vmatmul.mubr.f32.gmra.mxu0 %v4062_v26 }
 0x491   :  { %4407 = vmatmul.mubr.msk.f32.gmra.mxu1 %vm6623_vm10, %v4064_v4  ;;  %vm1605_vm10 = vcmp.eq.s32.totalorder %v4993_v44, %v1598_v54 }
 0x492   :  { %4411 = vmatprep.subr.msk.mxu1 %vm1605_vm10, %v6687_v12 }
 0x493   :  { %4412 = vmatpush3.msk.msra.mxu1 %vm1605_vm10, %v6687_v12  ;;  %vm1601_vm10 = vcmp.eq.s32.totalorder %v5043_v2, %v1598_v54 }
 0x494   :  { %4413 = vmatprep.subr.msk.mxu1 %vm1604_vm6, %v6687_v12 }
 0x495   :  { %4414 = vmatpush3.msk.msra.mxu1 %vm1604_vm6, %v6687_v12  ;;  %vm1600_vm6 = vcmp.eq.s32.totalorder %v5056_v14, %v1598_v54 }
 0x496   :  { %4415 = vmatprep.subr.msk.mxu1 %vm1603_vm14, %v6687_v12 }
 0x497   :  { %4416 = vmatpush3.msk.msra.mxu1 %vm1603_vm14, %v6687_v12  ;;  %vm1599_vm14 = vcmp.eq.s32.totalorder %v4680_v6, %v1598_v54 }
 0x498   :  { %4417 = vmatprep.subr.msk.mxu1 %vm1602_vm0, %v6687_v12 }
 0x499   :  { %4418 = vmatpush3.msk.msra.mxu1 %vm1602_vm0, %v6687_v12  ;;  %vm6694_vm0 = vcmp.le.s32.totalorder %v4911_v50, 6 }
 0x49a   :  { %4419 = vmatprep.subr.msk.mxu1 %vm1601_vm10, %v6687_v12 }
 0x49b   :  { %4420 = vmatpush3.msk.msra.mxu1 %vm1601_vm10, %v6687_v12  ;;  %vm6695_vm10 = vcmp.le.s32.totalorder %v4908_v49, 6 }
 0x49c   :  { %4421 = vmatprep.subr.msk.mxu1 %vm1600_vm6, %v6687_v12 }
 0x49d   :  { %4422 = vmatpush3.msk.msra.mxu1 %vm1600_vm6, %v6687_v12  ;;  %vm6696_vm6 = vmmov %vm6694_vm0 }
 0x49e   :  { %4423 = vmatprep.subr.msk.mxu1 %vm1599_vm14, %v6687_v12 }
 0x49f   :  { %4424 = vmatpush3.msk.msra.mxu1 %vm1599_vm14, %v6687_v12  ;;  %vm6697_vm14 = vmmov %vm6695_vm10 }
 0x544   :  { %v4248_v31 = vpop.f32.mrf.mxu0 }
 0x546   :  { %v4249_v61 = vpop.f32.mrf.mxu0 }
 0x547   :  { %v4250_v51 = vadd.f32 %v4249_v61, %v4248_v31 }
 0x548   :  { %v4251_v59 = vpop.f32.mrf.mxu0 }
 0x54a   :  { %v4252_v32 = vpop.f32.mrf.mxu0 }
 0x54b   :  { %v4253_v39 = vadd.f32 %v4252_v32, %v4251_v59 }
 0x54c   :  { %v4254_v48 = vpop.f32.mrf.mxu0 }
 0x54d   :  { %v4405_v25 = vpop.f32.mrf.mxu1 }
 0x54e   :  { %v5399_v24 = vadd.f32 %v4405_v25, %v4253_v39  ;;  %v4255_v34 = vpop.f32.mrf.mxu0 }
 0x54f   :  { %v4256_v35 = vadd.f32 %v4255_v34, %v4254_v48  ;;  %v1500_v46 = vpop.f32.mrf.mxu1 }
 0x550   :  { %v1520_v58 = vmax.f32 %v5399_v24, 0.0  ;;  %v1501_v13 = vadd.f32 %v4250_v51, %v1500_v46  ;;  %v4257_v11 = vpop.f32.mrf.mxu0 }
 0x551   :  { %v4408_v37 = vpop.f32.mrf.mxu1 }
 0x552   :  { %1524 = vst.msk [vmem:[#allocation2 + $0x18] sm:$0xff] %vm6626_vm12, %v1520_v58  ;;  %v1519_v43 = vmax.f32 %v1501_v13, 0.0  ;;  %v4258_v33 = vpop.f32.mrf.mxu0 }
 0x553   :  { %v4259_v16 = vadd.f32 %v4258_v33, %v4257_v11  ;;  %v1510_v42 = vpop.f32.mrf.mxu1 }
 0x554   :  { %1523 = vst.msk [vmem:[#allocation2] sm:$0xff] %vm6626_vm12, %v1519_v43  ;;  %v5411_v45 = vadd.f32 %v4256_v35, %v1510_v42 }
 0x555   :  { %v5414_v28 = vadd.f32 %v4408_v37, %v4259_v16 }
 0x556   :  { %v1521_v62 = vmax.f32 %v5411_v45, 0.0 }
 0x557   :  { %v1522_v40 = vmax.f32 %v5414_v28, 0.0 }
 0x558   :  { %1525 = vst.msk [vmem:[#allocation2 + $0x30] sm:$0xff] %vm6626_vm12, %v1521_v62 }
 0x559   :  { %1526 = vst.msk [vmem:[#allocation2 + $0x48] sm:$0xff] %vm6626_vm12, %v1522_v40  ;;  %v1528_v20 = vld [vmem:[#allocation2 + $0x18] sm:$0xff] }
 0x55b   :  { %v1527_v60 = vld [vmem:[#allocation2] sm:$0xff] }
 0x55c   :  { %1575 = vrot.lane.b32.xlu0 %v1527_v60, %s4653_s30  ;;  %1535 = vrot.lane.b32.xlu1 %v1527_v60, %s4641_s12 }
 0x55f   :  { %v1529_v26 = vld [vmem:[#allocation2 + $0x30] sm:$0xff] }
 0x560   :  { %1537 = vrot.lane.b32.xlu0 %v1528_v20, %s4641_s12  ;;  %1555 = vrot.lane.b32.xlu1 %v1527_v60, %s4651_s28  ;;  %v1530_v4 = vld [vmem:[#allocation2 + $0x48] sm:$0xff] }
 0x564   :  { %1557 = vrot.lane.b32.xlu0 %v1528_v20, %s4651_s28  ;;  %1539 = vrot.lane.b32.xlu1 %v1529_v26, %s4641_s12 }
 0x568   :  { %1577 = vrot.lane.b32.xlu0 %v1528_v20, %s4653_s30  ;;  %1559 = vrot.lane.b32.xlu1 %v1529_v26, %s4651_s28 }
 0x56c   :  { %1561 = vrot.lane.b32.xlu0 %v1530_v4, %s4651_s28  ;;  %1541 = vrot.lane.b32.xlu1 %v1530_v4, %s4641_s12 }
 0x570   :  { %1581 = vrot.lane.b32.xlu0 %v1530_v4, %s4653_s30  ;;  %1579 = vrot.lane.b32.xlu1 %v1529_v26, %s4653_s30 }
 0x5ce   :  { %v1576_v18 = vpop.permute.xlu0 %1575  ;;  %v1536_v41 = vpop.permute.xlu1 %1535 }
 0x5cf   :  { %v1547_v52 = vsel %vm6694_vm0, %v1536_v41, 0.0  ;;  %v1587_v39 = vsel %vm5339_vm5, %v1576_v18, 0.0 }
 0x5d0   :  { %v1551_v54 = vmax.f32 %v1519_v43, %v1547_v52 }
 0x5d2   :  { %v1538_v31 = vpop.permute.xlu0 %1537  ;;  %v1556_v61 = vpop.permute.xlu1 %1555 }
 0x5d3   :  { %v1567_v59 = vsel %vm6695_vm10, %v1556_v61, 0.0  ;;  %v1548_v48 = vsel %vm6696_vm6, %v1538_v31, 0.0  ;;  %vm6698_vm6 = vmmov %vm6694_vm0 }
 0x5d4   :  { %v1571_v32 = vmax.f32 %v1551_v54, %v1567_v59  ;;  %v1552_v46 = vmax.f32 %v1520_v58, %v1548_v48 }
 0x5d6   :  { %v1591_v25 = vmax.f32 %v1571_v32, %v1587_v39  ;;  %v1558_v51 = vpop.permute.xlu0 %1557  ;;  %v1540_v34 = vpop.permute.xlu1 %1539 }
 0x5d7   :  { %v1568_v35 = vsel %vm6697_vm14, %v1558_v51, 0.0  ;;  %v1549_v16 = vsel %vm6694_vm0, %v1540_v34, 0.0  ;;  %vm6699_vm14 = vmmov %vm6695_vm10  ;;  %vm1749_vm0 = vcmask 171048  }
 0x5d8   :  { %4425 = vmatprep.mubr.msk.f32.mxu1 %vm6626_vm12, %v1591_v25  ;;  %v1572_v13 = vmax.f32 %v1552_v46, %v1568_v35  ;;  %v1553_v28 = vmax.f32 %v1521_v62, %v1549_v16 }
 0x5da   :  { %v1578_v11 = vpop.permute.xlu0 %1577  ;;  %v1560_v37 = vpop.permute.xlu1 %1559 }
 0x5db   :  { %v1588_v43 = vsel %vm5339_vm5, %v1578_v11, 0.0  ;;  %v1569_v24 = vsel %vm6695_vm10, %v1560_v37, 0.0  ;;  %vm6635_vm10 = vcmp.ge.s32.totalorder %v5389_v53, 1 }
 0x5dc   :  { %v1592_v33 = vmax.f32 %v1572_v13, %v1588_v43  ;;  %v1573_v26 = vmax.f32 %v1553_v28, %v1569_v24  ;;  %v4092_v24 = vld [vmem:[%s6597_s1 + $0xd0] sm:$0xff] }
 0x5de   :  { %v1562_v42 = vpop.permute.xlu0 %1561  ;;  %4426 = vmatmul.mubr.msk.f32.vlgmr.msra.gmra.mxu1 %vm6626_vm12, %v1592_v33  ;;  %v1542_v45 = vpop.permute.xlu1 %1541 }
 0x5df   :  { %v1550_v58 = vsel %vm6698_vm6, %v1542_v45, 0.0  ;;  %v1570_v20 = vsel %vm6699_vm14, %v1562_v42, 0.0  ;;  %vm6627_vm6 = vcmp.ge.s32.totalorder %v5392_v56, 1  ;;  %v2041_v42 = vld [vmem:[#allocation3 + $0x240] sm:$0x1]  ;;  %v4091_v45 = vld [vmem:[%s6597_s1 + $0xc8] sm:$0xff] }
 0x5e0   :  { %v1554_v60 = vmax.f32 %v1522_v40, %v1550_v58  ;;  %vm5483_vm14 = vmand %vm6627_vm6, %vm6635_vm10 }
 0x5e2   :  { %v1582_v4 = vpop.permute.xlu0 %1581  ;;  %v1574_v18 = vmax.f32 %v1554_v60, %v1570_v20  ;;  %v1580_v41 = vpop.permute.xlu1 %1579 }
 0x5e3   :  { %v1590_v52 = vsel %vm5339_vm5, %v1582_v4, 0.0  ;;  %v1589_v54 = vsel %vm5339_vm5, %v1580_v41, 0.0 }
 0x5e4   :  { %v1594_v31 = vmax.f32 %v1574_v18, %v1590_v52  ;;  %v1593_v61 = vmax.f32 %v1573_v26, %v1589_v54 }
 0x5e6   :  { %4428 = vmatprep.mubr.msk.f32.mxu1 %vm6626_vm12, %v1593_v61 }
 0x5e7   :  { %4429 = vmatmul.mubr.msk.f32.gmra.mxu1 %vm6626_vm12, %v1594_v31  ;;  %vm6628_vm12 = vcmask 130048  }
 0x5e8   :  { %2121 = vmatprep.mubr.f32.mxu1 %v4091_v45 }
 0x69e   :  { %v4427_v62 = vpop.f32.mrf.mxu1 }
 0x6a0   :  { %v1701_v40 = vpop.f32.mrf.mxu1 }
 0x6a7   :  { %v4430_v59 = vpop.f32.mrf.mxu1 }
 0x6a8   :  { %1743 = vrot.lane.b32.xlu1 %v4430_v59, %s4654_s19 }
 0x6a9   :  { %v1711_v32 = vpop.f32.mrf.mxu1 }
 0x6aa   :  { %1741 = vrot.lane.b32.xlu0 %v1711_v32, %s4654_s19 }
 0x6ac   :  { %1739 = vrot.lane.b32.xlu1 %v4427_v62, %s4654_s19 }
 0x6ae   :  { %1737 = vrot.lane.b32.xlu0 %v1701_v40, %s4654_s19 }
 0x71a   :  { %v1744_v39 = vpop.permute.xlu1 %1743 }
 0x71b   :  { %1753 = vst.msk [vmem:[#allocation2 + $0x48] sm:$0xff] %vm1749_vm0, %v1744_v39 }
 0x71c   :  { %v1742_v48 = vpop.permute.xlu0 %1741 }
 0x71d   :  { %1752 = vst.msk [vmem:[#allocation2 + $0x30] sm:$0xff] %vm1749_vm0, %v1742_v48 }
 0x71e   :  { %v1740_v25 = vpop.permute.xlu1 %1739 }
 0x71f   :  { %1751 = vst.msk [vmem:[#allocation2 + $0x18] sm:$0xff] %vm1749_vm0, %v1740_v25 }
 0x720   :  { %v1738_v51 = vpop.permute.xlu0 %1737 }
 0x721   :  { %1750 = vst.msk [vmem:[#allocation2] sm:$0xff] %vm1749_vm0, %v1738_v51  ;;  %vm6702_vm0 = vcmask 1040384  }
 0x722   :  { %v1946_v35 = vld [vmem:[#allocation2 + $0x48] sm:$0xff]  ;;  %4431 = vmatprep.subr.msk.mxu0 %vm6702_vm0, %v2041_v42  ;;  %vm6704_vm6 = vmmov %vm6702_vm0  ;;  %vm6637_vm0 = vcmp.le.s32.totalorder %v5392_v56, 2 }
 0x723   :  { %v1763_v46 = vsel %vm5483_vm14, %v1946_v35, 0.0  ;;  %4432 = vmatpush3.msk.msra.mxu0 %vm6704_vm6, %v2041_v42  ;;  %vm6705_vm6 = vcmask 269312  }
 0x724   :  { %v1945_v13 = vld [vmem:[#allocation2 + $0x30] sm:$0xff]  ;;  %1768 = vst.msk [vmem:[#allocation3 + $0x30] sm:$0xff] %vm6628_vm12, %v1763_v46  ;;  %4441 = vmatprep.mubr.msk.f32.mxu0 %vm6705_vm6, %v4092_v24  ;;  %vm6708_vm6 = vcmask 130048  }
 0x725   :  { %v1762_v11 = vsel %vm5483_vm14, %v1945_v13, 0.0  ;;  %vm6709_vm13 = vmmov %vm6708_vm6 }
 0x726   :  { %v1944_v37 = vld [vmem:[#allocation2 + $0x18] sm:$0xff]  ;;  %1767 = vst.msk [vmem:[#allocation3 + $0x20] sm:$0xff] %vm6628_vm12, %v1762_v11 }
 0x727   :  { %1955 = vrot.lane.b32.xlu1 %v1944_v37, %s4653_s30  ;;  %1841 = vrot.lane.b32.xlu0 %v1944_v37, %s4655_s20  ;;  %v1761_v43 = vsel %vm5483_vm14, %v1944_v37, 0.0 }
 0x728   :  { %v1943_v33 = vld [vmem:[#allocation2] sm:$0xff]  ;;  %1766 = vst.msk [vmem:[#allocation3 + $0x10] sm:$0xff] %vm6628_vm12, %v1761_v43 }
 0x729   :  { %v1760_v16 = vsel %vm5483_vm14, %v1943_v33, 0.0  ;;  %vm6703_vm14 = vcmask 516096  }
 0x72a   :  { %1765 = vst.msk [vmem:[#allocation3] sm:$0xff] %vm6628_vm12, %v1760_v16  ;;  %vm5540_vm12 = vmand %vm6637_vm0, %vm6635_vm10 }
 0x72b   :  { %1925 = vrot.lane.b32.xlu1 %v1944_v37, %s4651_s28  ;;  %1811 = vrot.lane.b32.xlu0 %v1944_v37, %s4643_s13  ;;  %2603 = vst.msk [vmem:[#allocation3 + $0x240] sm:$0x1] %vm6703_vm14, %v6687_v12  ;;  %vm6636_vm14 = vcmp.le.s32.totalorder %v5389_v53, 2 }
 0x72c   :  { %vm5550_vm11 = vmand %vm6710_vm3, %vm6636_vm14 }
 0x72d   :  { %vm6715_vm3 = vmmov %vm6708_vm6 }
 0x72e   :  { %vm6716_vm14 = vmmov %vm6715_vm3 }
 0x72f   :  { %1953 = vrot.lane.b32.xlu1 %v1943_v33, %s4653_s30  ;;  %1839 = vrot.lane.b32.xlu0 %v1943_v33, %s4655_s20 }
 0x732   :  { %v2640_v3 = vld [vmem:[#allocation3 + $0x240] sm:$0x1] }
 0x733   :  { %1923 = vrot.lane.b32.xlu1 %v1943_v33, %s4651_s28  ;;  %1809 = vrot.lane.b32.xlu0 %v1943_v33, %s4643_s13  ;;  %3719 = vst.msk [vmem:[#allocation3 + $0x240] ss:$8 sm:$0x3] %vm4733_vm8, %v6687_v12 }
 0x737   :  { %1959 = vrot.lane.b32.xlu1 %v1946_v35, %s4653_s30  ;;  %1845 = vrot.lane.b32.xlu0 %v1946_v35, %s4655_s20 }
 0x73b   :  { %1929 = vrot.lane.b32.xlu1 %v1946_v35, %s4651_s28  ;;  %1815 = vrot.lane.b32.xlu0 %v1946_v35, %s4643_s13 }
 0x73f   :  { %1957 = vrot.lane.b32.xlu1 %v1945_v13, %s4653_s30  ;;  %1843 = vrot.lane.b32.xlu0 %v1945_v13, %s4655_s20 }
 0x743   :  { %1899 = vrot.lane.b32.xlu1 %v1946_v35, %s4656_s21  ;;  %1785 = vrot.lane.b32.xlu0 %v1946_v35, %s4641_s12 }
 0x747   :  { %1927 = vrot.lane.b32.xlu1 %v1945_v13, %s4651_s28  ;;  %1813 = vrot.lane.b32.xlu0 %v1945_v13, %s4643_s13 }
 0x74b   :  { %1895 = vrot.lane.b32.xlu1 %v1944_v37, %s4656_s21  ;;  %1781 = vrot.lane.b32.xlu0 %v1944_v37, %s4641_s12 }
 0x74f   :  { %1897 = vrot.lane.b32.xlu1 %v1945_v13, %s4656_s21  ;;  %1783 = vrot.lane.b32.xlu0 %v1945_v13, %s4641_s12 }
 0x753   :  { %1893 = vrot.lane.b32.xlu1 %v1943_v33, %s4656_s21  ;;  %1779 = vrot.lane.b32.xlu0 %v1943_v33, %s4641_s12 }
 0x757   :  { %1873 = vrot.lane.b32.xlu1 %v1946_v35, %s4657_s22  ;;  %1871 = vrot.lane.b32.xlu0 %v1945_v13, %s4657_s22 }
 0x75b   :  { %1869 = vrot.lane.b32.xlu1 %v1944_v37, %s4657_s22  ;;  %1867 = vrot.lane.b32.xlu0 %v1943_v33, %s4657_s22 }
 0x75f   :  { %1989 = vrot.lane.b32.xlu1 %v1946_v35, %s4652_s29  ;;  %1987 = vrot.lane.b32.xlu0 %v1945_v13, %s4652_s29 }
 0x763   :  { %1985 = vrot.lane.b32.xlu1 %v1944_v37, %s4652_s29  ;;  %1983 = vrot.lane.b32.xlu0 %v1943_v33, %s4652_s29 }
 0x799   :  { %v1956_v58 = vpop.permute.xlu1 %1955  ;;  %v1842_v28 = vpop.permute.xlu0 %1841 }
 0x79a   :  { %v1966_v60 = vsel %vm6637_vm0, %v1956_v58, 0.0  ;;  %v1852_v20 = vsel %vm6635_vm10, %v1842_v28, 0.0  ;;  %vm6713_vm10 = vmmov %vm6708_vm6 }
 0x79b   :  { %1970 = vst.msk [vmem:[#allocation3 + $0x1d0] sm:$0xff] %vm6708_vm6, %v1966_v60 }
 0x79c   :  { %1856 = vst.msk [vmem:[#allocation3 + $0xd0] sm:$0xff] %vm6709_vm13, %v1852_v20  ;;  %vm6714_vm13 = vcmp.ge.s32.totalorder %v5389_v53, 1 }
 0x79d   :  { %v1926_v18 = vpop.permute.xlu1 %1925  ;;  %v1812_v41 = vpop.permute.xlu0 %1811 }
 0x79e   :  { %v1936_v52 = vsel %vm5540_vm12, %v1926_v18, 0.0  ;;  %v1822_v54 = vsel %vm5550_vm11, %v1812_v41, 0.0 }
 0x79f   :  { %1940 = vst.msk [vmem:[#allocation3 + $0x190] sm:$0xff] %vm6713_vm10, %v1936_v52  ;;  %vm6717_vm10 = vmmov %vm6715_vm3 }
 0x7a0   :  { %1826 = vst.msk [vmem:[#allocation3 + $0x90] sm:$0xff] %vm6708_vm6, %v1822_v54  ;;  %vm6718_vm6 = vmmov %vm6715_vm3 }
 0x7a1   :  { %v1954_v31 = vpop.permute.xlu1 %1953  ;;  %v1840_v61 = vpop.permute.xlu0 %1839 }
 0x7a2   :  { %v1965_v62 = vsel %vm6637_vm0, %v1954_v31, 0.0  ;;  %v1851_v40 = vsel %vm6714_vm13, %v1840_v61, 0.0 }
 0x7a3   :  { %1969 = vst.msk [vmem:[#allocation3 + $0x1c0] sm:$0xff] %vm6715_vm3, %v1965_v62  ;;  %v2034_v62 = vld [vmem:[#allocation3 + $0x1d0] sm:$0xff] }
 0x7a4   :  { %1855 = vst.msk [vmem:[#allocation3 + $0xc0] sm:$0xff] %vm6716_vm14, %v1851_v40  ;;  %vm6719_vm14 = vmmov %vm6715_vm3 }
 0x7a5   :  { %v1924_v59 = vpop.permute.xlu1 %1923  ;;  %v1810_v32 = vpop.permute.xlu0 %1809 }
 0x7a6   :  { %v1935_v39 = vsel %vm5540_vm12, %v1924_v59, 0.0  ;;  %v1821_v48 = vsel %vm5550_vm11, %v1810_v32, 0.0  ;;  %v2018_v32 = vld [vmem:[#allocation3 + $0xd0] sm:$0xff] }
 0x7a7   :  { %1939 = vst.msk [vmem:[#allocation3 + $0x180] sm:$0xff] %vm6717_vm10, %v1935_v39  ;;  %vm6720_vm10 = vmmov %vm6715_vm3 }
 0x7a8   :  { %1825 = vst.msk [vmem:[#allocation3 + $0x80] sm:$0xff] %vm6718_vm6, %v1821_v48  ;;  %vm6721_vm6 = vmmov %vm6715_vm3 }
 0x7a9   :  { %v1960_v25 = vpop.permute.xlu1 %1959  ;;  %v1846_v51 = vpop.permute.xlu0 %1845 }
 0x7aa   :  { %v1968_v34 = vsel %vm6637_vm0, %v1960_v25, 0.0  ;;  %v1854_v35 = vsel %vm6714_vm13, %v1846_v51, 0.0  ;;  %v2033_v39 = vld [vmem:[#allocation3 + $0x1c0] sm:$0xff] }
 0x7ab   :  { %1972 = vst.msk [vmem:[#allocation3 + $0x1f0] sm:$0xff] %vm6719_vm14, %v1968_v34  ;;  %vm6722_vm14 = vmmov %vm6715_vm3  ;;  %v2017_v48 = vld [vmem:[#allocation3 + $0xc0] sm:$0xff] }
 0x7ac   :  { %1858 = vst.msk [vmem:[#allocation3 + $0xf0] sm:$0xff] %vm6715_vm3, %v1854_v35 }
 0x7ad   :  { %v1930_v46 = vpop.permute.xlu1 %1929  ;;  %v1816_v13 = vpop.permute.xlu0 %1815 }
 0x7ae   :  { %v1938_v11 = vsel %vm5540_vm12, %v1930_v46, 0.0  ;;  %v1824_v37 = vsel %vm5550_vm11, %v1816_v13, 0.0 }
 0x7af   :  { %1942 = vst.msk [vmem:[#allocation3 + $0x1b0] sm:$0xff] %vm6720_vm10, %v1938_v11  ;;  %vm6723_vm10 = vcmp.le.s32.totalorder %v5389_v53, 2 }
 0x7b0   :  { %1828 = vst.msk [vmem:[#allocation3 + $0xb0] sm:$0xff] %vm6721_vm6, %v1824_v37  ;;  %vm6724_vm6 = vcmp.ge.s32.totalorder %v5392_v56, 1 }
 0x7b1   :  { %v1958_v43 = vpop.permute.xlu1 %1957  ;;  %v1844_v33 = vpop.permute.xlu0 %1843 }
 0x7b2   :  { %v1967_v16 = vsel %vm6637_vm0, %v1958_v43, 0.0  ;;  %v1853_v42 = vsel %vm6714_vm13, %v1844_v33, 0.0  ;;  %v2036_v45 = vld [vmem:[#allocation3 + $0x1f0] sm:$0xff]  ;;  %vm6725_vm0 = vmmov %vm6715_vm3 }
 0x7b3   :  { %v2020_v24 = vld [vmem:[#allocation3 + $0xf0] sm:$0xff]  ;;  %1971 = vst.msk [vmem:[#allocation3 + $0x1e0] sm:$0xff] %vm6722_vm14, %v1967_v16  ;;  %4281 = vmatprep.subr.mxu1 %v2036_v45  ;;  %vm6726_vm15 = vmmov %vm6725_vm0 }
 0x7b4   :  { %1857 = vst.msk [vmem:[#allocation3 + $0xe0] sm:$0xff] %vm6715_vm3, %v1853_v42  ;;  %4282 = vmatpush3.msra.mxu1 %v2020_v24  ;;  %vm6727_vm13 = vmmov %vm6725_vm0  ;;  %v2030_v43 = vld [vmem:[#allocation3 + $0x190] sm:$0xff] }
 0x7b5   :  { %v1900_v58 = vpop.permute.xlu1 %1899  ;;  %v1786_v28 = vpop.permute.xlu0 %1785  ;;  %vm6728_vm14 = vmmov %vm6725_vm0  ;;  %v2014_v42 = vld [vmem:[#allocation3 + $0x90] sm:$0xff] }
 0x7b6   :  { %v1908_v60 = vsel %vm6723_vm10, %v1900_v58, 0.0  ;;  %v1794_v20 = vsel %vm6724_vm6, %v1786_v28, 0.0  ;;  %v2032_v25 = vld [vmem:[#allocation3 + $0x1b0] sm:$0xff]  ;;  %vm6732_vm3 = vmmov %vm6723_vm10  ;;  %v2029_v58 = vld [vmem:[#allocation3 + $0x180] sm:$0xff] }
 0x7b7   :  { %1912 = vst.msk [vmem:[#allocation3 + $0x170] sm:$0xff] %vm6725_vm0, %v1908_v60  ;;  %v2016_v35 = vld [vmem:[#allocation3 + $0xb0] sm:$0xff]  ;;  %v2013_v28 = vld [vmem:[#allocation3 + $0x80] sm:$0xff] }
 0x7b8   :  { %1798 = vst.msk [vmem:[#allocation3 + $0x70] sm:$0xff] %vm6726_vm15, %v1794_v20  ;;  %vm6729_vm15 = vmmov %vm6723_vm10 }
 0x7b9   :  { %v1928_v18 = vpop.permute.xlu1 %1927  ;;  %v1814_v41 = vpop.permute.xlu0 %1813  ;;  %vm6733_vm10 = vmmov %vm6724_vm6 }
 0x7ba   :  { %v1937_v52 = vsel %vm5540_vm12, %v1928_v18, 0.0  ;;  %v1823_v54 = vsel %vm5550_vm11, %v1814_v41, 0.0  ;;  %v2035_v31 = vld [vmem:[#allocation3 + $0x1e0] sm:$0xff]  ;;  %vm6730_vm12 = vmmov %vm6724_vm6 }
 0x7bb   :  { %v2019_v61 = vld [vmem:[#allocation3 + $0xe0] sm:$0xff]  ;;  %1941 = vst.msk [vmem:[#allocation3 + $0x1a0] sm:$0xff] %vm6727_vm13, %v1937_v52  ;;  %4283 = vmatprep.subr.mxu1 %v2035_v31  ;;  %vm6731_vm11 = vmmov %vm6725_vm0 }
 0x7bc   :  { %1827 = vst.msk [vmem:[#allocation3 + $0xa0] sm:$0xff] %vm6728_vm14, %v1823_v54  ;;  %4284 = vmatpush3.msra.mxu1 %v2019_v61  ;;  %vm6734_vm6 = vmmov %vm6725_vm0 }
 0x7bd   :  { %v1896_v40 = vpop.permute.xlu1 %1895  ;;  %4285 = vmatprep.subr.mxu1 %v2034_v62  ;;  %v1782_v59 = vpop.permute.xlu0 %1781  ;;  %vm6735_vm13 = vmmov %vm6725_vm0 }
 0x7be   :  { %v1906_v26 = vsel %vm6729_vm15, %v1896_v40, 0.0  ;;  %v1792_v4 = vsel %vm6730_vm12, %v1782_v59, 0.0  ;;  %4286 = vmatpush3.msra.mxu1 %v2018_v32  ;;  %vm6736_vm14 = vmmov %vm6732_vm3  ;;  %v2028_v60 = vld [vmem:[#allocation3 + $0x170] sm:$0xff] }
 0x7bf   :  { %1910 = vst.msk [vmem:[#allocation3 + $0x150] sm:$0xff] %vm6731_vm11, %v1906_v26  ;;  %4287 = vmatprep.subr.mxu1 %v2033_v39  ;;  %vm6737_vm15 = vmmov %vm6733_vm10  ;;  %v2012_v41 = vld [vmem:[#allocation3 + $0x70] sm:$0xff] }
 0x7c0   :  { %1796 = vst.msk [vmem:[#allocation3 + $0x50] sm:$0xff] %vm6725_vm0, %v1792_v4  ;;  %4288 = vmatpush3.msra.mxu1 %v2017_v48  ;;  %vm6738_vm12 = vmmov %vm6725_vm0 }
 0x7c1   :  { %v1898_v51 = vpop.permute.xlu1 %1897  ;;  %4289 = vmatprep.subr.mxu1 %v2032_v25  ;;  %v1784_v34 = vpop.permute.xlu0 %1783  ;;  %vm6739_vm11 = vmmov %vm6725_vm0 }
 0x7c2   :  { %v1907_v46 = vsel %vm6732_vm3, %v1898_v51, 0.0  ;;  %v1793_v13 = vsel %vm6733_vm10, %v1784_v34, 0.0  ;;  %4290 = vmatpush3.msra.mxu1 %v2016_v35  ;;  %v2031_v11 = vld [vmem:[#allocation3 + $0x1a0] sm:$0xff]  ;;  %vm6740_vm3 = vmmov %vm6725_vm0  ;;  %v2008_v34 = vld [vmem:[#allocation3 + $0x30] sm:$0xff] }
 0x7c3   :  { %v2015_v37 = vld [vmem:[#allocation3 + $0xa0] sm:$0xff]  ;;  %1911 = vst.msk [vmem:[#allocation3 + $0x160] sm:$0xff] %vm6734_vm6, %v1907_v46  ;;  %4291 = vmatprep.subr.mxu1 %v2031_v11  ;;  %vm6741_vm10 = vmmov %vm6725_vm0 }
 0x7c4   :  { %1797 = vst.msk [vmem:[#allocation3 + $0x60] sm:$0xff] %vm6735_vm13, %v1793_v13  ;;  %4292 = vmatpush3.msra.mxu1 %v2015_v37  ;;  %vm6742_vm6 = vmmov %vm6725_vm0 }
 0x7c5   :  { %v1894_v33 = vpop.permute.xlu1 %1893  ;;  %4293 = vmatprep.subr.mxu1 %v2030_v43  ;;  %v1780_v16 = vpop.permute.xlu0 %1779  ;;  %vm6743_vm13 = vmmov %vm6736_vm14  ;;  %v2006_v43 = vld [vmem:[#allocation3 + $0x10] sm:$0xff] }
 0x7c6   :  { %v1905_v45 = vsel %vm6736_vm14, %v1894_v33, 0.0  ;;  %v1791_v24 = vsel %vm6737_vm15, %v1780_v16, 0.0  ;;  %4294 = vmatpush3.msra.mxu1 %v2014_v42  ;;  %v2026_v31 = vld [vmem:[#allocation3 + $0x150] sm:$0xff]  ;;  %vm6744_vm14 = vcmp.le.s32.totalorder %v5392_v56, 2  ;;  %v2007_v56 = vld [vmem:[#allocation3 + $0x20] sm:$0xff] }
 0x7c7   :  { %1909 = vst.msk [vmem:[#allocation3 + $0x140] sm:$0xff] %vm6738_vm12, %v1905_v45  ;;  %4295 = vmatprep.subr.mxu1 %v2029_v58  ;;  %v2010_v40 = vld [vmem:[#allocation3 + $0x50] sm:$0xff]  ;;  %vm5628_vm15 = vmand %vm6744_vm14, %vm6743_vm13  ;;  %v4090_v16 = vld [vmem:[%s6597_s1 + $0xc0] sm:$0xff] }
 0x7c8   :  { %1795 = vst.msk [vmem:[#allocation3 + $0x40] sm:$0xff] %vm6739_vm11, %v1791_v24  ;;  %4296 = vmatpush3.msra.mxu1 %v2013_v28  ;;  %vm6747_vm12 = vmmov %vm6725_vm0  ;;  %v2005_v42 = vld [vmem:[#allocation3] sm:$0xff]  ;;  %v4093_v58 = vld [vmem:[%s6597_s1 + $0xd8] sm:$0xff] }
 0x7c9   :  { %v1874_v20 = vpop.permute.xlu1 %1873  ;;  %4297 = vmatprep.subr.mxu1 %v2028_v60  ;;  %v1872_v18 = vpop.permute.xlu0 %1871  ;;  %vm6748_vm11 = vmmov %vm6725_vm0  ;;  %v4094_v45 = vld [vmem:[%s6597_s1 + $0xe0] sm:$0xff]  ;;  %v4097_v60 = vld [vmem:[%s6597_s1 + $0xf8] sm:$0xff] }
 0x7ca   :  { %1882 = vst.msk [vmem:[#allocation3 + $0x130] sm:$0xff] %vm6725_vm0, %v1874_v20  ;;  %4298 = vmatpush3.msra.mxu1 %v2012_v41  ;;  %v2027_v52 = vld [vmem:[#allocation3 + $0x160] sm:$0xff] }
 0x7cb   :  { %1881 = vst.msk [vmem:[#allocation3 + $0x120] sm:$0xff] %vm6740_vm3, %v1872_v18  ;;  %v2011_v54 = vld [vmem:[#allocation3 + $0x60] sm:$0xff]  ;;  %4299 = vmatprep.subr.mxu1 %v2027_v52  ;;  %vm6749_vm3 = vmmov %vm6725_vm0  ;;  %v4096_v18 = vld [vmem:[%s6597_s1 + $0xf0] sm:$0xff] }
 0x7cc   :  { %4300 = vmatpush3.msra.mxu1 %v2011_v54  ;;  %v4095_v52 = vld [vmem:[%s6597_s1 + $0xe8] sm:$0xff]  ;;  %v4100_v54 = vld [vmem:[%s6597_s1 + $0x110] sm:$0xff] }
 0x7cd   :  { %v1870_v61 = vpop.permute.xlu1 %1869  ;;  %4301 = vmatprep.subr.mxu1 %v2026_v31  ;;  %v1868_v62 = vpop.permute.xlu0 %1867  ;;  %v4098_v31 = vld [vmem:[%s6597_s1 + $0x100] sm:$0xff] }
 0x7ce   :  { %1880 = vst.msk [vmem:[#allocation3 + $0x110] sm:$0xff] %vm6741_vm10, %v1870_v61  ;;  %4302 = vmatpush3.msra.mxu1 %v2010_v40  ;;  %v2025_v59 = vld [vmem:[#allocation3 + $0x140] sm:$0xff]  ;;  %vm6750_vm10 = vcmask 269312   ;;  %v4099_v61 = vld [vmem:[%s6597_s1 + $0x108] sm:$0xff]  ;;  %v2231_v40 = vshrl.u32 %v4908_v49, 1 }
 0x7cf   :  { %1879 = vst.msk [vmem:[#allocation3 + $0x100] sm:$0xff] %vm6742_vm6, %v1868_v62  ;;  %v2009_v32 = vld [vmem:[#allocation3 + $0x40] sm:$0xff]  ;;  %4303 = vmatprep.subr.mxu1 %v2025_v59  ;;  %vm6751_vm6 = vmmov %vm6750_vm10  ;;  %v4101_v62 = vld [vmem:[%s6597_s1 + $0x118] sm:$0xff] }
 0x7d0   :  { %4304 = vmatpush3.msra.mxu1 %v2009_v32  ;;  %vm6752_vm13 = vmmov %vm6751_vm6  ;;  %v2232_v59 = vmul.u32 4, %v2231_v40  ;;  %v2233_v32 = vshrl.u32 %v4911_v50, 1 }
 0x7d1   :  { %v1990_v4 = vpop.permute.xlu1 %1989  ;;  %v1988_v39 = vpop.permute.xlu0 %1987  ;;  %v2024_v48 = vld [vmem:[#allocation3 + $0x130] sm:$0xff] }
 0x7d2   :  { %v1998_v25 = vsel %vm5628_vm15, %v1990_v4, 0.0  ;;  %v1997_v51 = vsel %vm5628_vm15, %v1988_v39, 0.0  ;;  %4305 = vmatprep.subr.mxu1 %v2024_v48  ;;  %v2023_v53 = vld [vmem:[#allocation3 + $0x120] sm:$0xff]  ;;  %v2234_v26 = vadd.s32 %v2233_v32, %v2232_v59 }
 0x7d3   :  { %2002 = vst.msk [vmem:[#allocation3 + $0x230] sm:$0xff] %vm6747_vm12, %v1998_v25  ;;  %4306 = vmatpush3.msra.mxu1 %v2008_v34  ;;  %vm6753_vm12 = vmmov %vm6725_vm0 }
 0x7d4   :  { %2001 = vst.msk [vmem:[#allocation3 + $0x220] sm:$0xff] %vm6748_vm11, %v1997_v51  ;;  %4307 = vmatprep.subr.mxu1 %v2023_v53  ;;  %vm2236_vm14 = vcmp.eq.s32.totalorder %v5056_v14, %v2234_v26  ;;  %vm6754_vm11 = vmmov %vm6725_vm0 }
 0x7d5   :  { %v1986_v35 = vpop.permute.xlu1 %1985  ;;  %4308 = vmatpush3.msra.mxu1 %v2007_v56  ;;  %v1984_v46 = vpop.permute.xlu0 %1983  ;;  %v2022_v13 = vld [vmem:[#allocation3 + $0x110] sm:$0xff] }
 0x7d6   :  { %v1996_v11 = vsel %vm5628_vm15, %v1986_v35, 0.0  ;;  %v1995_v37 = vsel %vm5628_vm15, %v1984_v46, 0.0  ;;  %4309 = vmatprep.subr.mxu1 %v2022_v13  ;;  %v2021_v33 = vld [vmem:[#allocation3 + $0x100] sm:$0xff]  ;;  %vm2235_vm15 = vcmp.eq.s32.totalorder %v4680_v6, %v2234_v26 }
 0x7d7   :  { %2000 = vst.msk [vmem:[#allocation3 + $0x210] sm:$0xff] %vm6725_vm0, %v1996_v11  ;;  %4310 = vmatpush3.msra.mxu1 %v2006_v43 }
 0x7d8   :  { %1999 = vst.msk [vmem:[#allocation3 + $0x200] sm:$0xff] %vm6749_vm3, %v1995_v37  ;;  %4311 = vmatprep.subr.mxu1 %v2021_v33  ;;  %vm6755_vm3 = vmmov %vm6725_vm0 }
 0x7d9   :  { %4312 = vmatpush3.msra.mxu1 %v2005_v42 }
 0x7da   :  { %2122 = vmatmul.mubr.f32.vlgmr.msra.gmra.mxu1 %v4090_v16  ;;  %v2040_v24 = vld [vmem:[#allocation3 + $0x230] sm:$0xff] }
 0x7db   :  { %4433 = vmatprep.subr.mxu0 %v2040_v24  ;;  %2126 = vmatprep.mubr.f32.mxu1 %v4094_v45  ;;  %v2039_v28 = vld [vmem:[#allocation3 + $0x220] sm:$0xff] }
 0x7dc   :  { %4434 = vmatpush3.msra.mxu0 %v2040_v24 }
 0x7dd   :  { %4435 = vmatprep.subr.mxu0 %v2039_v28 }
 0x7de   :  { %2127 = vmatmul.mubr.f32.gmra.mxu1 %v4093_v58  ;;  %4436 = vmatpush3.msra.mxu0 %v2039_v28  ;;  %v2038_v20 = vld [vmem:[#allocation3 + $0x210] sm:$0xff] }
 0x7df   :  { %4437 = vmatprep.subr.mxu0 %v2038_v20  ;;  %2131 = vmatprep.mubr.f32.mxu1 %v4097_v60  ;;  %v2037_v41 = vld [vmem:[#allocation3 + $0x200] sm:$0xff] }
 0x7e0   :  { %4438 = vmatpush3.msra.mxu0 %v2038_v20 }
 0x7e1   :  { %4439 = vmatprep.subr.mxu0 %v2037_v41 }
 0x7e2   :  { %2132 = vmatmul.mubr.f32.gmra.mxu1 %v4096_v18  ;;  %4440 = vmatpush3.msra.mxu0 %v2037_v41 }
 0x7e3   :  { %4442 = vmatmul.mubr.msk.f32.vlgmr.msra.gmra.mxu0 %vm6750_vm10, %v4095_v52  ;;  %2136 = vmatprep.mubr.f32.mxu1 %v4100_v54  ;;  %vm6756_vm10 = vcmask 597064  }
 0x7e4   :  { %4444 = vmatprep.mubr.msk.f32.mxu0 %vm6751_vm6, %v4098_v31  ;;  %4447 = vmatprep.subr.msk.mxu0 %vm2236_vm14, %v6687_v12  ;;  %vm6757_vm6 = vmmov %vm6756_vm10 }
 0x7e5   :  { %4448 = vmatpush3.msk.msra.mxu0 %vm2236_vm14, %v6687_v12  ;;  %vm6759_vm14 = vmmov %vm6757_vm6 }
 0x7e6   :  { %2137 = vmatmul.mubr.f32.gmra.mxu1 %v4099_v61  ;;  %4449 = vmatprep.subr.msk.mxu0 %vm2235_vm15, %v6687_v12 }
 0x7e7   :  { %4445 = vmatmul.mubr.msk.f32.gmra.mxu0 %vm6752_vm13, %v4101_v62  ;;  %vm6758_vm13 = vmmov %vm6757_vm6 }
 0x7e8   :  { %4450 = vmatpush3.msk.msra.mxu0 %vm2235_vm15, %v6687_v12  ;;  %vm6760_vm15 = vcmask 523264  }
 0x89a   :  { %v4313_v4 = vpop.f32.mrf.mxu1 }
 0x89c   :  { %v4314_v39 = vpop.f32.mrf.mxu1 }
 0x89d   :  { %v4315_v56 = vadd.f32 %v4314_v39, %v4313_v4 }
 0x89e   :  { %v4316_v48 = vpop.f32.mrf.mxu1 }
 0x8a0   :  { %v4317_v25 = vpop.f32.mrf.mxu1 }
 0x8a1   :  { %v4318_v51 = vadd.f32 %v4317_v25, %v4316_v48 }
 0x8a2   :  { %v4319_v34 = vpop.f32.mrf.mxu1 }
 0x8a3   :  { %v4443_v53 = vpop.f32.mrf.mxu0 }
 0x8a4   :  { %v4320_v35 = vpop.f32.mrf.mxu1  ;;  %v2214_v46 = vadd.f32 %v4443_v53, %v4318_v51  ;;  %v4116_v53 = vld [vmem:[%s6597_s1 + $0x128] sm:$0xff] }
 0x8a5   :  { %v2208_v13 = vpop.f32.mrf.mxu0  ;;  %v4321_v33 = vadd.f32 %v4320_v35, %v4319_v34 }
 0x8a6   :  { %v2209_v11 = vadd.f32 %v4315_v56, %v2208_v13  ;;  %v4322_v37 = vpop.f32.mrf.mxu1  ;;  %v2228_v45 = vmax.f32 %v2214_v46, 0.0  ;;  %v4117_v56 = vld [vmem:[%s6597_s1 + $0x130] sm:$0xff] }
 0x8a7   :  { %v4446_v43 = vpop.f32.mrf.mxu0 }
 0x8a8   :  { %v2227_v16 = vmax.f32 %v2209_v11, 0.0  ;;  %v4323_v42 = vpop.f32.mrf.mxu1 }
 0x8a9   :  { %v4324_v24 = vadd.f32 %v4323_v42, %v4322_v37  ;;  %v2218_v58 = vpop.f32.mrf.mxu0 }
 0x8aa   :  { %v2219_v28 = vadd.f32 %v4321_v33, %v2218_v58  ;;  %4451 = vmatprep.mubr.msk.f32.mxu0 %vm6753_vm12, %v2227_v16  ;;  %vm6761_vm12 = vmmov %vm6760_vm15 }
 0x8ab   :  { %v2224_v60 = vadd.f32 %v4446_v43, %v4324_v24  ;;  %4452 = vmatmul.mubr.msk.f32.vlgmr.msra.gmra.mxu0 %vm6754_vm11, %v2228_v45  ;;  %vm6762_vm11 = vmmov %vm6761_vm12 }
 0x8ac   :  { %v2229_v20 = vmax.f32 %v2219_v28, 0.0 }
 0x8ad   :  { %v2230_v18 = vmax.f32 %v2224_v60, 0.0 }
 0x8ae   :  { %4454 = vmatprep.mubr.msk.f32.mxu0 %vm6725_vm0, %v2229_v20  ;;  %vm6763_vm0 = vmmov %vm6762_vm11 }
 0x8af   :  { %4455 = vmatmul.mubr.msk.f32.gmra.mxu0 %vm6755_vm3, %v2230_v18 }
 0x8b0   :  { %2720 = vmatprep.mubr.f32.mxu0 %v4116_v53 }
 0x96b   :  { %v4453_v41 = vpop.f32.mrf.mxu0 }
 0x96d   :  { %v2319_v52 = vpop.f32.mrf.mxu0 }
 0x96f   :  { %v4456_v54 = vpop.f32.mrf.mxu0 }
 0x970   :  { %2361 = vrot.lane.b32.xlu1 %v4456_v54, %s4650_s27 }
 0x971   :  { %v2329_v31 = vpop.f32.mrf.mxu0 }
 0x972   :  { %2359 = vrot.lane.b32.xlu0 %v2329_v31, %s4650_s27 }
 0x974   :  { %2357 = vrot.lane.b32.xlu1 %v4453_v41, %s4650_s27 }
 0x976   :  { %2355 = vrot.lane.b32.xlu0 %v2319_v52, %s4650_s27 }
 0x9e2   :  { %v2362_v61 = vpop.permute.xlu1 %2361 }
 0x9e3   :  { %2370 = vst.msk [vmem:[#allocation2 + $0x48] sm:$0xff] %vm6756_vm10, %v2362_v61  ;;  %vm6766_vm10 = vcmask 269312  }
 0x9e4   :  { %v2360_v62 = vpop.permute.xlu0 %2359  ;;  %4467 = vmatprep.mubr.msk.f32.mxu1 %vm6766_vm10, %v4117_v56 }
 0x9e5   :  { %2369 = vst.msk [vmem:[#allocation2 + $0x30] sm:$0xff] %vm6757_vm6, %v2360_v62  ;;  %vm6767_vm6 = vcmp.le.s32.totalorder %v4908_v49, 6 }
 0x9e6   :  { %v2358_v40 = vpop.permute.xlu1 %2357 }
 0x9e7   :  { %2368 = vst.msk [vmem:[#allocation2 + $0x18] sm:$0xff] %vm6758_vm13, %v2358_v40  ;;  %vm6768_vm13 = vcmp.ge.s32.totalorder %v4911_v50, 1 }
 0x9e8   :  { %v2356_v59 = vpop.permute.xlu0 %2355 }
 0x9e9   :  { %2367 = vst.msk [vmem:[#allocation2] sm:$0xff] %vm6759_vm14, %v2356_v59  ;;  %vm6769_vm14 = vmmov %vm6763_vm0 }
 0x9ea   :  { %v2550_v32 = vld [vmem:[#allocation2 + $0x48] sm:$0xff] }
 0x9eb   :  { %v2378_v26 = vsel %vm5180_vm2, %v2550_v32, 0.0 }
 0x9ec   :  { %v2549_v4 = vld [vmem:[#allocation2 + $0x30] sm:$0xff]  ;;  %2382 = vst.msk [vmem:[#allocation3 + $0x30] sm:$0xff] %vm6760_vm15, %v2378_v26  ;;  %vm6770_vm15 = vmmov %vm6763_vm0 }
 0x9ed   :  { %v2377_v39 = vsel %vm5180_vm2, %v2549_v4, 0.0 }
 0x9ee   :  { %v2548_v48 = vld [vmem:[#allocation2 + $0x18] sm:$0xff]  ;;  %2381 = vst.msk [vmem:[#allocation3 + $0x20] sm:$0xff] %vm6761_vm12, %v2377_v39  ;;  %vm6771_vm12 = vmmov %vm6763_vm0 }
 0x9ef   :  { %2557 = vrot.lane.b32.xlu1 %v2548_v48, %s4648_s18  ;;  %2449 = vrot.lane.b32.xlu0 %v2548_v48, %s4651_s28  ;;  %v2376_v25 = vsel %vm5180_vm2, %v2548_v48, 0.0 }
 0x9f0   :  { %v2547_v51 = vld [vmem:[#allocation2] sm:$0xff]  ;;  %2380 = vst.msk [vmem:[#allocation3 + $0x10] sm:$0xff] %vm6762_vm11, %v2376_v25  ;;  %vm6772_vm11 = vmmov %vm6763_vm0 }
 0x9f1   :  { %v2375_v34 = vsel %vm5180_vm2, %v2547_v51, 0.0  ;;  %vm6764_vm2 = vcmask 1040384  }
 0x9f2   :  { %2379 = vst.msk [vmem:[#allocation3] sm:$0xff] %vm6763_vm0, %v2375_v34  ;;  %4457 = vmatprep.subr.msk.mxu1 %vm6764_vm2, %v2640_v3  ;;  %vm6765_vm3 = vmmov %vm6764_vm2 }
 0x9f3   :  { %2529 = vrot.lane.b32.xlu1 %v2548_v48, %s4644_s14  ;;  %2421 = vrot.lane.b32.xlu0 %v2548_v48, %s4643_s13  ;;  %vm6773_vm0 = vmmov %vm6767_vm6 }
 0x9f4   :  { %4458 = vmatpush3.msk.msra.mxu1 %vm6765_vm3, %v2640_v3  ;;  %vm6774_vm2 = vmmov %vm6768_vm13 }
 0x9f5   :  { %vm6775_vm3 = vmmov %vm6772_vm11 }
 0x9f6   :  { %vm6776_vm10 = vmmov %vm6775_vm3 }
 0x9f7   :  { %2555 = vrot.lane.b32.xlu1 %v2547_v51, %s4648_s18  ;;  %2447 = vrot.lane.b32.xlu0 %v2547_v51, %s4651_s28 }
 0x9fb   :  { %2527 = vrot.lane.b32.xlu1 %v2547_v51, %s4644_s14  ;;  %2419 = vrot.lane.b32.xlu0 %v2547_v51, %s4643_s13 }
 0x9ff   :  { %2561 = vrot.lane.b32.xlu1 %v2550_v32, %s4648_s18  ;;  %2453 = vrot.lane.b32.xlu0 %v2550_v32, %s4651_s28 }
 0xa03   :  { %2533 = vrot.lane.b32.xlu1 %v2550_v32, %s4644_s14  ;;  %2425 = vrot.lane.b32.xlu0 %v2550_v32, %s4643_s13 }
 0xa07   :  { %2505 = vrot.lane.b32.xlu1 %v2550_v32, %s4652_s29  ;;  %2397 = vrot.lane.b32.xlu0 %v2550_v32, %s4641_s12 }
 0xa0b   :  { %2559 = vrot.lane.b32.xlu1 %v2549_v4, %s4648_s18  ;;  %2451 = vrot.lane.b32.xlu0 %v2549_v4, %s4651_s28 }
 0xa0f   :  { %2501 = vrot.lane.b32.xlu1 %v2548_v48, %s4652_s29  ;;  %2393 = vrot.lane.b32.xlu0 %v2548_v48, %s4641_s12 }
 0xa13   :  { %2531 = vrot.lane.b32.xlu1 %v2549_v4, %s4644_s14  ;;  %2423 = vrot.lane.b32.xlu0 %v2549_v4, %s4643_s13 }
 0xa17   :  { %2499 = vrot.lane.b32.xlu1 %v2547_v51, %s4652_s29  ;;  %2391 = vrot.lane.b32.xlu0 %v2547_v51, %s4641_s12 }
 0xa1b   :  { %2503 = vrot.lane.b32.xlu1 %v2549_v4, %s4652_s29  ;;  %2395 = vrot.lane.b32.xlu0 %v2549_v4, %s4641_s12 }
 0xa1f   :  { %2481 = vrot.lane.b32.xlu1 %v2550_v32, %s4653_s30  ;;  %2589 = vrot.lane.b32.xlu0 %v2550_v32, %s4645_s15 }
 0xa23   :  { %2477 = vrot.lane.b32.xlu1 %v2548_v48, %s4653_s30  ;;  %2585 = vrot.lane.b32.xlu0 %v2548_v48, %s4645_s15 }
 0xa27   :  { %2479 = vrot.lane.b32.xlu1 %v2549_v4, %s4653_s30  ;;  %2587 = vrot.lane.b32.xlu0 %v2549_v4, %s4645_s15 }
 0xa2b   :  { %2475 = vrot.lane.b32.xlu1 %v2547_v51, %s4653_s30  ;;  %2583 = vrot.lane.b32.xlu0 %v2547_v51, %s4645_s15 }
 0xa61   :  { %v2558_v35 = vpop.permute.xlu1 %2557  ;;  %v2450_v46 = vpop.permute.xlu0 %2449 }
 0xa62   :  { %v2568_v13 = vsel %vm6767_vm6, %v2558_v35, 0.0  ;;  %v2460_v11 = vsel %vm6768_vm13, %v2450_v46, 0.0  ;;  %vm6777_vm6 = vmmov %vm6775_vm3 }
 0xa63   :  { %2572 = vst.msk [vmem:[#allocation3 + $0x1d0] sm:$0xff] %vm6769_vm14, %v2568_v13  ;;  %vm6778_vm13 = vmmov %vm6775_vm3 }
 0xa64   :  { %2464 = vst.msk [vmem:[#allocation3 + $0xd0] sm:$0xff] %vm6770_vm15, %v2460_v11  ;;  %vm6779_vm14 = vmmov %vm6773_vm0 }
 0xa65   :  { %v2530_v37 = vpop.permute.xlu1 %2529  ;;  %v2422_v43 = vpop.permute.xlu0 %2421  ;;  %vm6780_vm15 = vmmov %vm6774_vm2 }
 0xa66   :  { %v2540_v33 = vsel %vm5257_vm1, %v2530_v37, 0.0  ;;  %v2432_v16 = vsel %vm5267_vm9, %v2422_v43, 0.0 }
 0xa67   :  { %2544 = vst.msk [vmem:[#allocation3 + $0x190] sm:$0xff] %vm6771_vm12, %v2540_v33  ;;  %vm6781_vm12 = vmmov %vm6775_vm3 }
 0xa68   :  { %2436 = vst.msk [vmem:[#allocation3 + $0x90] sm:$0xff] %vm6772_vm11, %v2432_v16  ;;  %vm6782_vm11 = vmmov %vm6775_vm3 }
 0xa69   :  { %v2556_v42 = vpop.permute.xlu1 %2555  ;;  %v2448_v45 = vpop.permute.xlu0 %2447 }
 0xa6a   :  { %v2567_v24 = vsel %vm6773_vm0, %v2556_v42, 0.0  ;;  %v2459_v58 = vsel %vm6774_vm2, %v2448_v45, 0.0  ;;  %vm6783_vm0 = vmmov %vm6775_vm3  ;;  %v2633_v45 = vld [vmem:[#allocation3 + $0x1d0] sm:$0xff] }
 0xa6b   :  { %2571 = vst.msk [vmem:[#allocation3 + $0x1c0] sm:$0xff] %vm6775_vm3, %v2567_v24  ;;  %vm6784_vm2 = vmmov %vm6783_vm0  ;;  %vm6785_vm3 = vcmp.le.s32.totalorder %v4911_v50, 6 }
 0xa6c   :  { %2463 = vst.msk [vmem:[#allocation3 + $0xc0] sm:$0xff] %vm6776_vm10, %v2459_v58  ;;  %vm6786_vm10 = vcmp.ge.s32.totalorder %v4908_v49, 1 }
 0xa6d   :  { %v2528_v28 = vpop.permute.xlu1 %2527  ;;  %v2420_v60 = vpop.permute.xlu0 %2419 }
 0xa6e   :  { %v2539_v20 = vsel %vm5257_vm1, %v2528_v28, 0.0  ;;  %v2431_v18 = vsel %vm5267_vm9, %v2420_v60, 0.0  ;;  %v2617_v28 = vld [vmem:[#allocation3 + $0xd0] sm:$0xff] }
 0xa6f   :  { %2543 = vst.msk [vmem:[#allocation3 + $0x180] sm:$0xff] %vm6777_vm6, %v2539_v20  ;;  %vm6787_vm6 = vmmov %vm6783_vm0 }
 0xa70   :  { %2435 = vst.msk [vmem:[#allocation3 + $0x80] sm:$0xff] %vm6778_vm13, %v2431_v18  ;;  %vm6788_vm13 = vmmov %vm6783_vm0 }
 0xa71   :  { %v2562_v41 = vpop.permute.xlu1 %2561  ;;  %v2454_v52 = vpop.permute.xlu0 %2453 }
 0xa72   :  { %v2570_v54 = vsel %vm6779_vm14, %v2562_v41, 0.0  ;;  %v2462_v31 = vsel %vm6780_vm15, %v2454_v52, 0.0  ;;  %v2632_v60 = vld [vmem:[#allocation3 + $0x1c0] sm:$0xff] }
 0xa73   :  { %2574 = vst.msk [vmem:[#allocation3 + $0x1f0] sm:$0xff] %vm6781_vm12, %v2570_v54  ;;  %vm6789_vm12 = vmmov %vm6783_vm0  ;;  %v2616_v20 = vld [vmem:[#allocation3 + $0xc0] sm:$0xff] }
 0xa74   :  { %2466 = vst.msk [vmem:[#allocation3 + $0xf0] sm:$0xff] %vm6782_vm11, %v2462_v31  ;;  %vm6790_vm11 = vmmov %vm6783_vm0 }
 0xa75   :  { %v2534_v61 = vpop.permute.xlu1 %2533  ;;  %v2426_v62 = vpop.permute.xlu0 %2425 }
 0xa76   :  { %v2542_v40 = vsel %vm5257_vm1, %v2534_v61, 0.0  ;;  %v2434_v59 = vsel %vm5267_vm9, %v2426_v62, 0.0  ;;  %v2628_v50 = vld [vmem:[#allocation3 + $0x180] sm:$0xff] }
 0xa77   :  { %2546 = vst.msk [vmem:[#allocation3 + $0x1b0] sm:$0xff] %vm6783_vm0, %v2542_v40  ;;  %vm6791_vm0 = vmmov %vm6785_vm3 }
 0xa78   :  { %2438 = vst.msk [vmem:[#allocation3 + $0xb0] sm:$0xff] %vm6784_vm2, %v2434_v59  ;;  %vm6792_vm2 = vmmov %vm6786_vm10  ;;  %v2629_v59 = vld [vmem:[#allocation3 + $0x190] sm:$0xff] }
 0xa79   :  { %v2506_v32 = vpop.permute.xlu1 %2505  ;;  %v2398_v26 = vpop.permute.xlu0 %2397 }
 0xa7a   :  { %v2514_v4 = vsel %vm6785_vm3, %v2506_v32, 0.0  ;;  %v2406_v39 = vsel %vm6786_vm10, %v2398_v26, 0.0  ;;  %v2635_v48 = vld [vmem:[#allocation3 + $0x1f0] sm:$0xff]  ;;  %vm6793_vm3 = vmmov %vm6787_vm6 }
 0xa7b   :  { %v2619_v25 = vld [vmem:[#allocation3 + $0xf0] sm:$0xff]  ;;  %2518 = vst.msk [vmem:[#allocation3 + $0x170] sm:$0xff] %vm6787_vm6, %v2514_v4  ;;  %4340 = vmatprep.subr.mxu0 %v2635_v48  ;;  %vm6794_vm10 = vmmov %vm6793_vm3 }
 0xa7c   :  { %2410 = vst.msk [vmem:[#allocation3 + $0x70] sm:$0xff] %vm6788_vm13, %v2406_v39  ;;  %4341 = vmatpush3.msra.mxu0 %v2619_v25  ;;  %vm6795_vm6 = vmmov %vm6793_vm3  ;;  %v2613_v4 = vld [vmem:[#allocation3 + $0x90] sm:$0xff]  ;;  %v2612_v39 = vld [vmem:[#allocation3 + $0x80] sm:$0xff] }
 0xa7d   :  { %v2560_v51 = vpop.permute.xlu1 %2559  ;;  %v2452_v34 = vpop.permute.xlu0 %2451  ;;  %vm6796_vm13 = vmmov %vm6793_vm3 }
 0xa7e   :  { %v2569_v3 = vsel %vm6779_vm14, %v2560_v51, 0.0  ;;  %v2461_v53 = vsel %vm6780_vm15, %v2452_v34, 0.0  ;;  %vm6797_vm14 = vmmov %vm6791_vm0  ;;  %v2631_v18 = vld [vmem:[#allocation3 + $0x1b0] sm:$0xff] }
 0xa7f   :  { %2573 = vst.msk [vmem:[#allocation3 + $0x1e0] sm:$0xff] %vm6789_vm12, %v2569_v3  ;;  %vm6800_vm15 = vmmov %vm6793_vm3  ;;  %v2615_v54 = vld [vmem:[#allocation3 + $0xb0] sm:$0xff] }
 0xa80   :  { %2465 = vst.msk [vmem:[#allocation3 + $0xe0] sm:$0xff] %vm6790_vm11, %v2461_v53  ;;  %vm6801_vm12 = vmmov %vm6791_vm0 }
 0xa81   :  { %v2502_v56 = vpop.permute.xlu1 %2501  ;;  %v2394_v35 = vpop.permute.xlu0 %2393 }
 0xa82   :  { %v2512_v46 = vsel %vm6791_vm0, %v2502_v56, 0.0  ;;  %v2404_v13 = vsel %vm6792_vm2, %v2394_v35, 0.0  ;;  %vm6803_vm0 = vmmov %vm6793_vm3  ;;  %v2627_v48 = vld [vmem:[#allocation3 + $0x170] sm:$0xff] }
 0xa83   :  { %2516 = vst.msk [vmem:[#allocation3 + $0x150] sm:$0xff] %vm6793_vm3, %v2512_v46  ;;  %v2611_v34 = vld [vmem:[#allocation3 + $0x70] sm:$0xff] }
 0xa84   :  { %2408 = vst.msk [vmem:[#allocation3 + $0x50] sm:$0xff] %vm6794_vm10, %v2404_v13  ;;  %vm6806_vm10 = vmmov %vm6803_vm0 }
 0xa85   :  { %v2532_v11 = vpop.permute.xlu1 %2531  ;;  %v2424_v37 = vpop.permute.xlu0 %2423 }
 0xa86   :  { %v2541_v43 = vsel %vm5257_vm1, %v2532_v11, 0.0  ;;  %v2433_v33 = vsel %vm5267_vm9, %v2424_v37, 0.0  ;;  %v2634_v16 = vld [vmem:[#allocation3 + $0x1e0] sm:$0xff]  ;;  %vm6798_vm1 = vmmov %vm6792_vm2 }
 0xa87   :  { %v2618_v42 = vld [vmem:[#allocation3 + $0xe0] sm:$0xff]  ;;  %2545 = vst.msk [vmem:[#allocation3 + $0x1a0] sm:$0xff] %vm6795_vm6, %v2541_v43  ;;  %4342 = vmatprep.subr.mxu0 %v2634_v16  ;;  %vm6799_vm9 = vmmov %vm6793_vm3 }
 0xa88   :  { %2437 = vst.msk [vmem:[#allocation3 + $0xa0] sm:$0xff] %vm6796_vm13, %v2433_v33  ;;  %4343 = vmatpush3.msra.mxu0 %v2618_v42  ;;  %vm6802_vm11 = vmmov %vm6798_vm1  ;;  %v6811_v42 = vshrl.u32 %v4683_v7, 4 }
 0xa89   :  { %v2500_v24 = vpop.permute.xlu1 %2499  ;;  %4344 = vmatprep.subr.mxu0 %v2633_v45  ;;  %v2392_v58 = vpop.permute.xlu0 %2391  ;;  %vm6804_vm2 = vmmov %vm6803_vm0 }
 0xa8a   :  { %v2511_v23 = vsel %vm6797_vm14, %v2500_v24, 0.0  ;;  %v2403_v38 = vsel %vm6798_vm1, %v2392_v58, 0.0  ;;  %4345 = vmatpush3.msra.mxu0 %v2617_v28  ;;  %vm6805_vm3 = vmmov %vm6803_vm0  ;;  %v2625_v35 = vld [vmem:[#allocation3 + $0x150] sm:$0xff]  ;;  %v2831_v45 = vshrl.u32 %v6811_v42, 1  ;;  %v6812_v24 = vshrl.u32 %v4678_v5, 4 }
 0xa8b   :  { %2515 = vst.msk [vmem:[#allocation3 + $0x140] sm:$0xff] %vm6799_vm9, %v2511_v23  ;;  %4346 = vmatprep.subr.mxu0 %v2632_v60  ;;  %vm6807_vm6 = vmmov %vm6803_vm0  ;;  %v2609_v11 = vld [vmem:[#allocation3 + $0x50] sm:$0xff] }
 0xa8c   :  { %2407 = vst.msk [vmem:[#allocation3 + $0x40] sm:$0xff] %vm6800_vm15, %v2403_v38  ;;  %4347 = vmatpush3.msra.mxu0 %v2616_v20  ;;  %vm6808_vm13 = vmmov %vm6803_vm0  ;;  %v2830_v58 = vshrl.u32 %v6812_v24, 1  ;;  %v2607_v60 = vld [vmem:[#allocation3 + $0x30] sm:$0xff]  ;;  %v2833_v7 = vmul.u32 8, %v2831_v45 }
 0xa8d   :  { %v2504_v41 = vpop.permute.xlu1 %2503  ;;  %4348 = vmatprep.subr.mxu0 %v2631_v18  ;;  %v2396_v52 = vpop.permute.xlu0 %2395  ;;  %vm6809_vm14 = vmmov %vm6803_vm0  ;;  %v2835_v18 = vshrl.u32 %v4696_v15, 1 }
 0xa8e   :  { %v2513_v31 = vsel %vm6801_vm12, %v2504_v41, 0.0  ;;  %v2405_v61 = vsel %vm6802_vm11, %v2396_v52, 0.0  ;;  %4349 = vmatpush3.msra.mxu0 %v2615_v54  ;;  %v2630_v62 = vld [vmem:[#allocation3 + $0x1a0] sm:$0xff]  ;;  %vm6810_vm1 = vmmov %vm6803_vm0  ;;  %v2832_v5 = vmul.u32 8, %v2830_v58  ;;  %v2834_v41 = vshrl.u32 %v4692_v10, 1 }
 0xa8f   :  { %v2614_v40 = vld [vmem:[#allocation3 + $0xa0] sm:$0xff]  ;;  %2517 = vst.msk [vmem:[#allocation3 + $0x160] sm:$0xff] %vm6803_vm0, %v2513_v31  ;;  %4350 = vmatprep.subr.mxu0 %v2630_v62  ;;  %vm6813_vm9 = vmmov %vm6803_vm0  ;;  %v5847_v62 = vadd.s32 %v2835_v18, %v2833_v7  ;;  %vm6815_vm11 = vcmask 269312  }
 0xa90   :  { %2409 = vst.msk [vmem:[#allocation3 + $0x60] sm:$0xff] %vm6804_vm2, %v2405_v61  ;;  %4351 = vmatpush3.msra.mxu0 %v2614_v40  ;;  %vm6814_vm15 = vmmov %vm6803_vm0  ;;  %v2606_v54 = vld [vmem:[#allocation3 + $0x20] sm:$0xff]  ;;  %v5849_v17 = vadd.s32 %v2834_v41, %v2832_v5  ;;  %v2605_v40 = vld [vmem:[#allocation3 + $0x10] sm:$0xff] }
 0xa91   :  { %v2482_v32 = vpop.permute.xlu1 %2481  ;;  %4352 = vmatprep.subr.mxu0 %v2629_v59  ;;  %v2590_v26 = vpop.permute.xlu0 %2589  ;;  %vm2851_vm0 = vcmp.eq.s32.totalorder %v4993_v44, %v5847_v62  ;;  %vm6816_vm2 = vmmov %vm6815_vm11 }
 0xa92   :  { %2490 = vst.msk [vmem:[#allocation3 + $0x130] sm:$0xff] %vm6805_vm3, %v2482_v32  ;;  %v2598_v49 = vsel %vm5339_vm5, %v2590_v26, 0.0  ;;  %4353 = vmatpush3.msra.mxu0 %v2613_v4  ;;  %v2624_v43 = vld [vmem:[#allocation3 + $0x140] sm:$0xff]  ;;  %vm2852_vm12 = vcmp.eq.s32.totalorder %v4967_v36, %v5849_v17  ;;  %vm2850_vm3 = vcmp.eq.s32.totalorder %v4993_v44, %v5849_v17  ;;  %v4125_v44 = vld [vmem:[%s6597_s1 + $0x170] sm:$0xff] }
 0xa93   :  { %2602 = vst.msk [vmem:[#allocation3 + $0x230] sm:$0xff] %vm6806_vm10, %v2598_v49  ;;  %4354 = vmatprep.subr.mxu0 %v2628_v50  ;;  %v2608_v16 = vld [vmem:[#allocation3 + $0x40] sm:$0xff]  ;;  %v4120_v50 = vld [vmem:[%s6597_s1 + $0x148] sm:$0xff]  ;;  %vm2849_vm10 = vcmp.eq.s32.totalorder %v5001_v47, %v5847_v62 }
 0xa94   :  { %4355 = vmatpush3.msra.mxu0 %v2612_v39  ;;  %v2604_v26 = vld [vmem:[#allocation3] sm:$0xff] }
 0xa95   :  { %v2478_v25 = vpop.permute.xlu1 %2477  ;;  %4356 = vmatprep.subr.mxu0 %v2627_v48  ;;  %v2586_v51 = vpop.permute.xlu0 %2585  ;;  %v4115_v4 = vld [vmem:[%s6597_s1 + $0x120] sm:$0xff] }
 0xa96   :  { %2488 = vst.msk [vmem:[#allocation3 + $0x110] sm:$0xff] %vm6807_vm6, %v2478_v25  ;;  %v2596_v3 = vsel %vm5339_vm5, %v2586_v51, 0.0  ;;  %4357 = vmatpush3.msra.mxu0 %v2611_v34  ;;  %v2626_v53 = vld [vmem:[#allocation3 + $0x160] sm:$0xff]  ;;  %v4118_v25 = vld [vmem:[%s6597_s1 + $0x138] sm:$0xff]  ;;  %v4121_v34 = vld [vmem:[%s6597_s1 + $0x150] sm:$0xff] }
 0xa97   :  { %v2610_v56 = vld [vmem:[#allocation3 + $0x60] sm:$0xff]  ;;  %2600 = vst.msk [vmem:[#allocation3 + $0x210] sm:$0xff] %vm6808_vm13, %v2596_v3  ;;  %4358 = vmatprep.subr.mxu0 %v2626_v53  ;;  %v4122_v51 = vld [vmem:[%s6597_s1 + $0x158] sm:$0xff]  ;;  %vm6817_vm6 = vmmov %vm6816_vm2  ;;  %vm2848_vm13 = vcmp.eq.s32.totalorder %v5001_v47, %v5849_v17  ;;  %v6818_v3 = vmov 0.0  }
 0xa98   :  { %4359 = vmatpush3.msra.mxu0 %v2610_v56  ;;  %v4119_v39 = vld [vmem:[%s6597_s1 + $0x140] sm:$0xff]  ;;  %v4124_v47 = vld [vmem:[%s6597_s1 + $0x168] sm:$0xff] }
 0xa99   :  { %v2480_v46 = vpop.permute.xlu1 %2479  ;;  %4360 = vmatprep.subr.mxu0 %v2625_v35  ;;  %v2588_v13 = vpop.permute.xlu0 %2587  ;;  %v2623_v28 = vld [vmem:[#allocation3 + $0x130] sm:$0xff]  ;;  %v4123_v48 = vld [vmem:[%s6597_s1 + $0x160] sm:$0xff] }
 0xa9a   :  { %2489 = vst.msk [vmem:[#allocation3 + $0x120] sm:$0xff] %vm6809_vm14, %v2480_v46  ;;  %v2597_v37 = vsel %vm5339_vm5, %v2588_v13, 0.0  ;;  %4361 = vmatpush3.msra.mxu0 %v2609_v11  ;;  %v2639_v33 = vld [vmem:[#allocation3 + $0x230] sm:$0xff]  ;;  %vm2847_vm14 = vcmp.eq.s32.totalorder %v5021_v55, %v5847_v62 }
 0xa9b   :  { %2601 = vst.msk [vmem:[#allocation3 + $0x220] sm:$0xff] %vm6810_vm1, %v2597_v37  ;;  %4362 = vmatprep.subr.mxu0 %v2624_v43  ;;  %4459 = vmatprep.subr.mxu1 %v2639_v33  ;;  %vm2846_vm1 = vcmp.eq.s32.totalorder %v5021_v55, %v5849_v17 }
 0xa9c   :  { %4363 = vmatpush3.msra.mxu0 %v2608_v16  ;;  %4460 = vmatpush3.msra.mxu1 %v2639_v33 }
 0xa9d   :  { %v2476_v23 = vpop.permute.xlu1 %2475  ;;  %4364 = vmatprep.subr.mxu0 %v2623_v28  ;;  %v2584_v38 = vpop.permute.xlu0 %2583  ;;  %v2621_v61 = vld [vmem:[#allocation3 + $0x110] sm:$0xff] }
 0xa9e   :  { %2487 = vst.msk [vmem:[#allocation3 + $0x100] sm:$0xff] %vm6813_vm9, %v2476_v23  ;;  %v2595_v20 = vsel %vm5339_vm5, %v2584_v38, 0.0  ;;  %4365 = vmatpush3.msra.mxu0 %v2607_v60  ;;  %v2637_v59 = vld [vmem:[#allocation3 + $0x210] sm:$0xff]  ;;  %vm2853_vm5 = vcmp.eq.s32.totalorder %v4967_v36, %v5847_v62  ;;  %v4126_v36 = vld [vmem:[%s6597_s1 + $0x178] sm:$0xff]  ;;  %vm2845_vm9 = vcmp.eq.s32.totalorder %v5032_v57, %v5847_v62 }
 0xa9f   :  { %2599 = vst.msk [vmem:[#allocation3 + $0x200] sm:$0xff] %vm6814_vm15, %v2595_v20  ;;  %vm2844_vm15 = vcmp.eq.s32.totalorder %v5032_v57, %v5849_v17 }
 0xaa1   :  { %v2622_v52 = vld [vmem:[#allocation3 + $0x120] sm:$0xff] }
 0xaa2   :  { %4366 = vmatprep.subr.mxu0 %v2622_v52  ;;  %v2638_v31 = vld [vmem:[#allocation3 + $0x220] sm:$0xff] }
 0xaa3   :  { %4367 = vmatpush3.msra.mxu0 %v2606_v54  ;;  %4461 = vmatprep.subr.mxu1 %v2638_v31 }
 0xaa4   :  { %4368 = vmatprep.subr.mxu0 %v2621_v61  ;;  %4462 = vmatpush3.msra.mxu1 %v2638_v31 }
 0xaa5   :  { %4369 = vmatpush3.msra.mxu0 %v2605_v40  ;;  %4463 = vmatprep.subr.mxu1 %v2637_v59  ;;  %v2620_v32 = vld [vmem:[#allocation3 + $0x100] sm:$0xff] }
 0xaa6   :  { %4370 = vmatprep.subr.mxu0 %v2620_v32  ;;  %4464 = vmatpush3.msra.mxu1 %v2637_v59  ;;  %v2636_v49 = vld [vmem:[#allocation3 + $0x200] sm:$0xff] }
 0xaa7   :  { %4371 = vmatpush3.msra.mxu0 %v2604_v26  ;;  %4465 = vmatprep.subr.mxu1 %v2636_v49 }
 0xaa8   :  { %2721 = vmatmul.mubr.f32.vlgmr.msra.gmra.mxu0 %v4115_v4  ;;  %4466 = vmatpush3.msra.mxu1 %v2636_v49 }
 0xaa9   :  { %4468 = vmatmul.mubr.msk.f32.vlgmr.msra.gmra.mxu1 %vm6815_vm11, %v4120_v50  ;;  %2725 = vmatprep.mubr.f32.mxu0 %v4119_v39  ;;  %vm2841_vm11 = vcmp.eq.s32.totalorder %v5056_v14, %v5847_v62 }
 0xaaa   :  { %4470 = vmatprep.mubr.msk.f32.mxu1 %vm6816_vm2, %v4123_v48  ;;  %4148 = vmatprep.subr.msk.mxu1 %vm2853_vm5, %v6687_v12  ;;  %vm2843_vm5 = vcmp.eq.s32.totalorder %v5043_v2, %v5847_v62  ;;  %vm2839_vm2 = vcmp.eq.s32.totalorder %v4680_v6, %v5847_v62 }
 0xaab   :  { %4149 = vmatpush1.msk.msra.mxu1 %vm2852_vm12, %v6687_v12  ;;  %vm2842_vm12 = vcmp.eq.s32.totalorder %v5043_v2, %v5849_v17 }
 0xaac   :  { %2726 = vmatmul.mubr.f32.gmra.mxu0 %v4118_v25  ;;  %4150 = vmatprep.subr.msk.mxu1 %vm2851_vm0, %v6687_v12  ;;  %vm2840_vm0 = vcmp.eq.s32.totalorder %v5056_v14, %v5849_v17 }
 0xaad   :  { %2730 = vmatprep.mubr.f32.mxu0 %v4122_v51  ;;  %4471 = vmatmul.mubr.msk.f32.gmra.mxu1 %vm6817_vm6, %v4126_v36 }
 0xaae   :  { %4151 = vmatpush1.msk.msra.mxu1 %vm2850_vm3, %v6687_v12  ;;  %2962 = vmatprep.mubr.f32.mxu1 %v6818_v3  ;;  %vm2838_vm3 = vcmp.eq.s32.totalorder %v4680_v6, %v5849_v17 }
 0xaaf   :  { %4152 = vmatprep.subr.msk.mxu1 %vm2849_vm10, %v6687_v12  ;;  %vm6819_vm10 = vcmask 523264  }
 0xab0   :  { %2731 = vmatmul.mubr.f32.gmra.mxu0 %v4121_v34  ;;  %4153 = vmatpush1.msk.msra.mxu1 %vm2848_vm13, %v6687_v12  ;;  %vm6820_vm6 = vmmov %vm6819_vm10 }
 0xab1   :  { %2735 = vmatprep.mubr.f32.mxu0 %v4125_v44  ;;  %4154 = vmatprep.subr.msk.mxu1 %vm2847_vm14, %v6687_v12  ;;  %vm6821_vm13 = vmmov %vm6820_vm6 }
 0xab2   :  { %4155 = vmatpush1.msk.msra.mxu1 %vm2846_vm1, %v6687_v12  ;;  %vm6822_vm14 = vmmov %vm6820_vm6  ;;  %vm3029_vm1 = vcmask 1047688  }
 0xab3   :  { %4156 = vmatprep.subr.msk.mxu1 %vm2845_vm9, %v6687_v12  ;;  %vm6823_vm9 = vcmask 138240  }
 0xab4   :  { %2736 = vmatmul.mubr.f32.gmra.mxu0 %v4124_v47  ;;  %4157 = vmatpush1.msk.msra.mxu1 %vm2844_vm15, %v6687_v12  ;;  %vm6824_vm15 = vmmov %vm6823_vm9 }
 0xab5   :  { %4158 = vmatprep.subr.msk.mxu1 %vm2843_vm5, %v6687_v12  ;;  %vm6825_vm5 = vcmp.ge.s32.totalorder %v4696_v15, 1 }
 0xab6   :  { %4159 = vmatpush1.msk.msra.mxu1 %vm2842_vm12, %v6687_v12  ;;  %vm6826_vm12 = vmmov %vm6823_vm9 }
 0xab7   :  { %4160 = vmatprep.subr.msk.mxu1 %vm2841_vm11, %v6687_v12  ;;  %vm6827_vm11 = vmmov %vm6823_vm9 }
 0xab8   :  { %4161 = vmatpush1.msk.msra.mxu1 %vm2840_vm0, %v6687_v12  ;;  %vm6828_vm0 = vmmov %vm6825_vm5 }
 0xab9   :  { %4162 = vmatprep.subr.msk.mxu1 %vm2839_vm2, %v6687_v12  ;;  %vm6829_vm2 = vmmov %vm6823_vm9 }
 0xaba   :  { %4163 = vmatpush1.msk.msra.mxu1 %vm2838_vm3, %v6687_v12  ;;  %vm6830_vm3 = vmmov %vm6829_vm2 }
 0xb68   :  { %v4372_v55 = vpop.f32.mrf.mxu0 }
 0xb69   :  { %v4469_v57 = vpop.f32.mrf.mxu1 }
 0xb6a   :  { %v4373_v2 = vpop.f32.mrf.mxu0 }
 0xb6b   :  { %v4374_v53 = vadd.f32 %v4373_v2, %v4372_v55  ;;  %v2807_v56 = vpop.f32.mrf.mxu1 }
 0xb6c   :  { %v4375_v35 = vpop.f32.mrf.mxu0 }
 0xb6d   :  { %v2808_v46 = vadd.f32 %v4374_v53, %v2807_v56  ;;  %v4472_v13 = vpop.f32.mrf.mxu1 }
 0xb6e   :  { %v4376_v14 = vpop.f32.mrf.mxu0 }
 0xb6f   :  { %v2826_v11 = vmax.f32 %v2808_v46, 0.0  ;;  %v4377_v37 = vadd.f32 %v4376_v14, %v4375_v35  ;;  %v2817_v16 = vpop.f32.mrf.mxu1 }
 0xb70   :  { %v4378_v43 = vpop.f32.mrf.mxu0 }
 0xb71   :  { %v2813_v33 = vadd.f32 %v4469_v57, %v4377_v37  ;;  %4164 = vmatmul.mubr.msk.f32.vlgmr.msra.gmra.mxu1 %vm6819_vm10, %v2826_v11  ;;  %vm6831_vm10 = vmmov %vm6829_vm2 }
 0xb72   :  { %2968 = vmatprep.mubr.f32.mxu1 %v6818_v3  ;;  %v4379_v6 = vpop.f32.mrf.mxu0 }
 0xb73   :  { %v2827_v12 = vmax.f32 %v2813_v33, 0.0  ;;  %v4380_v42 = vadd.f32 %v4379_v6, %v4378_v43 }
 0xb74   :  { %v4381_v45 = vpop.f32.mrf.mxu0 }
 0xb75   :  { %4165 = vmatmul.mubr.msk.f32.gmra.mxu1 %vm6820_vm6, %v2827_v12  ;;  %v2818_v24 = vadd.f32 %v4380_v42, %v2817_v16  ;;  %vm6832_vm6 = vmmov %vm6829_vm2 }
 0xb76   :  { %v4382_v58 = vpop.f32.mrf.mxu0  ;;  %2974 = vmatprep.mubr.f32.mxu1 %v6818_v3 }
 0xb77   :  { %v2828_v28 = vmax.f32 %v2818_v24, 0.0  ;;  %v4383_v23 = vadd.f32 %v4382_v58, %v4381_v45 }
 0xb79   :  { %v2823_v38 = vadd.f32 %v4472_v13, %v4383_v23  ;;  %4166 = vmatmul.mubr.msk.f32.gmra.mxu1 %vm6821_vm13, %v2828_v28  ;;  %vm6833_vm13 = vcmask 1039360  }
 0xb7a   :  { %2980 = vmatprep.mubr.f32.mxu1 %v6818_v3 }
 0xb7b   :  { %v2829_v60 = vmax.f32 %v2823_v38, 0.0 }
 0xb7d   :  { %4167 = vmatmul.mubr.msk.f32.gmra.mxu1 %vm6822_vm14, %v2829_v60  ;;  %vm6834_vm14 = vcmask 777216  }
 0xb7e   :  { %3953 = vmatprep.mubr.f32.mxu1 %v6818_v3 }
 0xc31   :  { %v2964_v20 = vpop.f32.mrf.mxu1 }
 0xc32   :  { %2997 = vrot.lane.b32.xlu1 %v2964_v20, %s4638_s11 }
 0xc33   :  { %v2966_v7 = vpop.f32.mrf.mxu1 }
 0xc34   :  { %2999 = vrot.lane.b32.xlu0 %v2966_v7, %s4638_s11 }
 0xc35   :  { %v2970_v18 = vpop.f32.mrf.mxu1 }
 0xc36   :  { %3001 = vrot.lane.b32.xlu1 %v2970_v18, %s4638_s11 }
 0xc37   :  { %v2972_v5 = vpop.f32.mrf.mxu1 }
 0xc38   :  { %3003 = vrot.lane.b32.xlu0 %v2972_v5, %s4638_s11 }
 0xc39   :  { %v2976_v41 = vpop.f32.mrf.mxu1 }
 0xc3a   :  { %3005 = vrot.lane.b32.xlu1 %v2976_v41, %s4638_s11 }
 0xc3b   :  { %v2978_v52 = vpop.f32.mrf.mxu1 }
 0xc3c   :  { %3007 = vrot.lane.b32.xlu0 %v2978_v52, %s4638_s11 }
 0xc3d   :  { %v2982_v54 = vpop.f32.mrf.mxu1 }
 0xc3e   :  { %3009 = vrot.lane.b32.xlu1 %v2982_v54, %s4638_s11 }
 0xc3f   :  { %v2984_v31 = vpop.f32.mrf.mxu1 }
 0xc40   :  { %3011 = vrot.lane.b32.xlu0 %v2984_v31, %s4638_s11 }
 0xca4   :  { %v2998_v61 = vpop.permute.xlu1 %2997 }
 0xca5   :  { %3030 = vst.msk [vmem:[#allocation2] sm:$0xff] %vm3029_vm1, %v2998_v61 }
 0xca6   :  { %v3000_v62 = vpop.permute.xlu0 %2999 }
 0xca7   :  { %v5951_v17 = vsel %vm6823_vm9, %v2998_v61, %v3000_v62  ;;  %3032 = vst.msk [vmem:[#allocation2 + $0x10] sm:$0xff] %vm6824_vm15, %v3000_v62  ;;  %vm6836_vm9 = vmmov %vm6834_vm14  ;;  %vm6837_vm15 = vcmask 916480  }
 0xca8   :  { %3031 = vst [vmem:[#allocation2 + $0x8] sm:$0xff] %v5951_v17  ;;  %v3055_v40 = vsel %vm6825_vm5, %v5951_v17, 0.0  ;;  %v3002_v59 = vpop.permute.xlu1 %3001  ;;  %vm6838_vm5 = vmmov %vm6837_vm15 }
 0xca9   :  { %3063 = vst [vmem:[#allocation3 + $0x8] sm:$0xff] %v3055_v40  ;;  %3033 = vst.msk [vmem:[#allocation2 + $0x18] sm:$0xff] %vm3029_vm1, %v3002_v59 }
 0xcaa   :  { %v3004_v32 = vpop.permute.xlu0 %3003 }
 0xcab   :  { %v5960_v26 = vsel %vm6826_vm12, %v3002_v59, %v3004_v32  ;;  %3035 = vst.msk [vmem:[#allocation2 + $0x28] sm:$0xff] %vm6827_vm11, %v3004_v32  ;;  %vm6839_vm12 = vcmp.ge.s32.totalorder %v4692_v10, 1  ;;  %vm6840_vm11 = vcmask 1031168  }
 0xcac   :  { %v5963_v4 = vld [vmem:[#allocation2] sm:$0xff]  ;;  %v3006_v49 = vpop.permute.xlu1 %3005  ;;  %v3057_v50 = vsel %vm6828_vm0, %v5960_v26, 0.0  ;;  %vm6841_vm0 = vmmov %vm6840_vm11 }
 0xcad   :  { %3266 = vrot.lane.b32.xlu0 %v5963_v4, %s4644_s14  ;;  %3036 = vst.msk [vmem:[#allocation2 + $0x30] sm:$0xff] %vm3029_vm1, %v3006_v49  ;;  %3065 = vst [vmem:[#allocation3 + $0x18] sm:$0xff] %v3057_v50  ;;  %v3054_v39 = vsel %vm4724_vm7, %v5963_v4, 0.0 }
 0xcae   :  { %v5974_v48 = vld [vmem:[#allocation2 + $0x10] sm:$0xff]  ;;  %v3008_v25 = vpop.permute.xlu0 %3007  ;;  %3062 = vst [vmem:[#allocation3] sm:$0xff] %v3054_v39 }
 0xcaf   :  { %3270 = vrot.lane.b32.xlu1 %v5974_v48, %s4644_s14  ;;  %v5979_v51 = vsel %vm6829_vm2, %v3006_v49, %v3008_v25  ;;  %3038 = vst.msk [vmem:[#allocation2 + $0x40] sm:$0xff] %vm6830_vm3, %v3008_v25  ;;  %vm6842_vm2 = vnez %v6667_v22  ;;  %vm6843_vm3 = vcmask 785408  }
 0xcb0   :  { %v5982_v36 = vld [vmem:[#allocation2 + $0x18] sm:$0xff]  ;;  %v3010_v34 = vpop.permute.xlu1 %3009 }
 0xcb1   :  { %3182 = vrot.lane.b32.xlu0 %v5963_v4, %s4643_s13  ;;  %3039 = vst.msk [vmem:[#allocation2 + $0x48] sm:$0xff] %vm3029_vm1, %v3010_v34  ;;  %v3056_v44 = vsel %vm4724_vm7, %v5982_v36, 0.0  ;;  %vm6835_vm1 = vmmov %vm6833_vm13 }
 0xcb2   :  { %v3012_v3 = vpop.permute.xlu0 %3011  ;;  %3064 = vst [vmem:[#allocation3 + $0x10] sm:$0xff] %v3056_v44  ;;  %v6042_v56 = vld [vmem:[#allocation2 + $0x28] sm:$0xff] }
 0xcb3   :  { %3186 = vrot.lane.b32.xlu1 %v5974_v48, %s4643_s13  ;;  %v5993_v47 = vsel %vm6831_vm10, %v3010_v34, %v3012_v3  ;;  %3041 = vst.msk [vmem:[#allocation2 + $0x58] sm:$0xff] %vm6832_vm6, %v3012_v3  ;;  %vm6844_vm10 = vmmov %vm6843_vm3 }
 0xcb4   :  { %v5996_v55 = vld [vmem:[#allocation2 + $0x30] sm:$0xff]  ;;  %vm6845_vm6 = vmmov %vm6839_vm12 }
 0xcb5   :  { %3098 = vrot.lane.b32.xlu0 %v5963_v4, %s4641_s12  ;;  %v3058_v57 = vsel %vm4724_vm7, %v5996_v55, 0.0 }
 0xcb6   :  { %3066 = vst [vmem:[#allocation3 + $0x20] sm:$0xff] %v3058_v57  ;;  %v6070_v35 = vld [vmem:[#allocation2 + $0x40] sm:$0xff] }
 0xcb7   :  { %3506 = vrot.lane.b32.xlu1 %v5974_v48, %s4646_s16 }
 0xcb8   :  { %v6005_v2 = vld [vmem:[#allocation2 + $0x48] sm:$0xff] }
 0xcb9   :  { %3582 = vrot.lane.b32.xlu0 %v5963_v4, %s4647_s17  ;;  %v3060_v53 = vsel %vm4724_vm7, %v6005_v2, 0.0 }
 0xcba   :  { %3068 = vst [vmem:[#allocation3 + $0x30] sm:$0xff] %v3060_v53  ;;  %v3249_v14 = vld [vmem:[#allocation2 + $0x58] sm:$0xff] }
 0xcbb   :  { %3100 = vrot.lane.b32.xlu1 %v5951_v17, %s4641_s12 }
 0xcbd   :  { %3502 = vrot.lane.b32.xlu0 %v5963_v4, %s4646_s16 }
 0xcbf   :  { %3584 = vrot.lane.b32.xlu1 %v5951_v17, %s4647_s17 }
 0xcc1   :  { %3102 = vrot.lane.b32.xlu0 %v5974_v48, %s4641_s12 }
 0xcc3   :  { %3272 = vrot.lane.b32.xlu1 %v5982_v36, %s4644_s14 }
 0xcc5   :  { %3586 = vrot.lane.b32.xlu0 %v5974_v48, %s4647_s17 }
 0xcc7   :  { %3188 = vrot.lane.b32.xlu1 %v5982_v36, %s4643_s13 }
 0xcc9   :  { %3268 = vrot.lane.b32.xlu0 %v5951_v17, %s4644_s14 }
 0xccb   :  { %3104 = vrot.lane.b32.xlu1 %v5982_v36, %s4641_s12 }
 0xccd   :  { %3184 = vrot.lane.b32.xlu0 %v5951_v17, %s4643_s13 }
 0xccf   :  { %3588 = vrot.lane.b32.xlu1 %v5982_v36, %s4647_s17 }
 0xcd1   :  { %3504 = vrot.lane.b32.xlu0 %v5951_v17, %s4646_s16 }
 0xcd3   :  { %3508 = vrot.lane.b32.xlu1 %v5982_v36, %s4646_s16 }
 0xcd5   :  { %3420 = vrot.lane.b32.xlu0 %v5951_v17, %s4645_s15 }
 0xcd7   :  { %3424 = vrot.lane.b32.xlu1 %v5982_v36, %s4645_s15 }
 0xcd9   :  { %3276 = vrot.lane.b32.xlu0 %v6042_v56, %s4644_s14 }
 0xcdb   :  { %3108 = vrot.lane.b32.xlu1 %v6042_v56, %s4641_s12 }
 0xcdd   :  { %3192 = vrot.lane.b32.xlu0 %v6042_v56, %s4643_s13 }
 0xcdf   :  { %3592 = vrot.lane.b32.xlu1 %v6042_v56, %s4647_s17 }
 0xce1   :  { %3512 = vrot.lane.b32.xlu0 %v6042_v56, %s4646_s16 }
 0xce3   :  { %3274 = vrot.lane.b32.xlu1 %v5960_v26, %s4644_s14 }
 0xce5   :  { %3428 = vrot.lane.b32.xlu0 %v6042_v56, %s4645_s15 }
 0xce7   :  { %3190 = vrot.lane.b32.xlu1 %v5960_v26, %s4643_s13 }
 0xce9   :  { %3106 = vrot.lane.b32.xlu0 %v5960_v26, %s4641_s12 }
 0xceb   :  { %3510 = vrot.lane.b32.xlu1 %v5960_v26, %s4646_s16 }
 0xced   :  { %3590 = vrot.lane.b32.xlu0 %v5960_v26, %s4647_s17 }
 0xcef   :  { %3426 = vrot.lane.b32.xlu1 %v5960_v26, %s4645_s15 }
 0xcf1   :  { %3278 = vrot.lane.b32.xlu0 %v5996_v55, %s4644_s14 }
 0xcf3   :  { %3282 = vrot.lane.b32.xlu1 %v6070_v35, %s4644_s14 }
 0xcf5   :  { %3194 = vrot.lane.b32.xlu0 %v5996_v55, %s4643_s13 }
 0xcf7   :  { %3198 = vrot.lane.b32.xlu1 %v6070_v35, %s4643_s13 }
 0xcf9   :  { %3110 = vrot.lane.b32.xlu0 %v5996_v55, %s4641_s12 }
 0xcfb   :  { %3518 = vrot.lane.b32.xlu1 %v6070_v35, %s4646_s16 }
 0xcfd   :  { %3594 = vrot.lane.b32.xlu0 %v5996_v55, %s4647_s17 }
 0xcff   :  { %3434 = vrot.lane.b32.xlu1 %v6070_v35, %s4645_s15 }
 0xd01   :  { %3514 = vrot.lane.b32.xlu0 %v5996_v55, %s4646_s16 }
 0xd03   :  { %3112 = vrot.lane.b32.xlu1 %v5979_v51, %s4641_s12 }
 0xd05   :  { %3430 = vrot.lane.b32.xlu0 %v5996_v55, %s4645_s15 }
 0xd07   :  { %3596 = vrot.lane.b32.xlu1 %v5979_v51, %s4647_s17 }
 0xd09   :  { %3114 = vrot.lane.b32.xlu0 %v6070_v35, %s4641_s12 }
 0xd0b   :  { %3284 = vrot.lane.b32.xlu1 %v6005_v2, %s4644_s14 }
 0xd0d   :  { %3598 = vrot.lane.b32.xlu0 %v6070_v35, %s4647_s17 }
 0xd0f   :  { %3200 = vrot.lane.b32.xlu1 %v6005_v2, %s4643_s13 }
 0xd11   :  { %3280 = vrot.lane.b32.xlu0 %v5979_v51, %s4644_s14 }
 0xd13   :  { %3116 = vrot.lane.b32.xlu1 %v6005_v2, %s4641_s12 }
 0xd15   :  { %3196 = vrot.lane.b32.xlu0 %v5979_v51, %s4643_s13 }
 0xd17   :  { %3600 = vrot.lane.b32.xlu1 %v6005_v2, %s4647_s17 }
 0xd19   :  { %3516 = vrot.lane.b32.xlu0 %v5979_v51, %s4646_s16 }
 0xd1b   :  { %3520 = vrot.lane.b32.xlu1 %v6005_v2, %s4646_s16 }
 0xd1d   :  { %3432 = vrot.lane.b32.xlu0 %v5979_v51, %s4645_s15 }
 0xd1f   :  { %3436 = vrot.lane.b32.xlu1 %v6005_v2, %s4645_s15  ;;  %v3267_v46 = vpop.permute.xlu0 %3266 }
 0xd21   :  { %v3271_v13 = vpop.permute.xlu1 %3270  ;;  %3288 = vrot.lane.b32.xlu0 %v3249_v14, %s4644_s14 }
 0xd23   :  { %3120 = vrot.lane.b32.xlu1 %v3249_v14, %s4641_s12  ;;  %v3183_v11 = vpop.permute.xlu0 %3182 }
 0xd25   :  { %v3187_v37 = vpop.permute.xlu1 %3186  ;;  %3204 = vrot.lane.b32.xlu0 %v3249_v14, %s4643_s13 }
 0xd27   :  { %3524 = vrot.lane.b32.xlu1 %v3249_v14, %s4646_s16  ;;  %v3099_v43 = vpop.permute.xlu0 %3098 }
 0xd29   :  { %v3507_v33 = vpop.permute.xlu1 %3506  ;;  %3604 = vrot.lane.b32.xlu0 %v3249_v14, %s4647_s17 }
 0xd2b   :  { %3286 = vrot.lane.b32.xlu1 %v5993_v47, %s4644_s14  ;;  %v3583_v6 = vpop.permute.xlu0 %3582 }
 0xd2d   :  { %v3101_v16 = vpop.permute.xlu1 %3100  ;;  %3440 = vrot.lane.b32.xlu0 %v3249_v14, %s4645_s15 }
 0xd2e   :  { %v6127_v12 = vsel %vm6833_vm13, %v3099_v43, %v3101_v16  ;;  %vm6846_vm13 = vmmov %vm6838_vm5 }
 0xd2f   :  { %v3138_v42 = vsel %vm4707_vm4, %v6127_v12, 0.0  ;;  %3422 = vrot.lane.b32.xlu1 %v5974_v48, %s4645_s15  ;;  %v3503_v45 = vpop.permute.xlu0 %3502 }
 0xd30   :  { %3146 = vst [vmem:[#allocation3 + $0x40] sm:$0xff] %v3138_v42 }
 0xd31   :  { %v3585_v24 = vpop.permute.xlu1 %3584  ;;  %3418 = vrot.lane.b32.xlu0 %v5963_v4, %s4645_s15 }
 0xd32   :  { %v6137_v58 = vsel %vm6834_vm14, %v3583_v6, %v3585_v24  ;;  %vm6847_vm14 = vmmov %vm6838_vm5  ;;  %v3793_v6 = vld [vmem:[#allocation3 + $0x240] sm:$0x1] }
 0xd33   :  { %3630 = vst [vmem:[#allocation3 + $0x1c0] sm:$0xff] %v6137_v58  ;;  %3202 = vrot.lane.b32.xlu1 %v5993_v47, %s4643_s13  ;;  %v3103_v28 = vpop.permute.xlu0 %3102 }
 0xd34   :  { %v6143_v23 = vsel %vm6835_vm1, %v3101_v16, %v3103_v28  ;;  %vm6848_vm1 = vmmov %vm6845_vm6 }
 0xd35   :  { %v3273_v38 = vpop.permute.xlu1 %3272  ;;  %3684 = vrot.lane.b32.xlu0 %v3249_v14, %s4640_s0 }
 0xd37   :  { %3680 = vrot.lane.b32.xlu1 %v6005_v2, %s4640_s0  ;;  %v3587_v60 = vpop.permute.xlu0 %3586 }
 0xd38   :  { %v6149_v20 = vsel %vm6836_vm9, %v3585_v24, %v3587_v60  ;;  %vm6849_vm9 = vcmask 1040384  }
 0xd39   :  { %v3189_v7 = vpop.permute.xlu1 %3188  ;;  %3118 = vrot.lane.b32.xlu0 %v5993_v47, %s4641_s12 }
 0xd3b   :  { %3676 = vrot.lane.b32.xlu1 %v5979_v51, %s4640_s0  ;;  %v3269_v18 = vpop.permute.xlu0 %3268 }
 0xd3c   :  { %v6156_v5 = vsel %vm6837_vm15, %v3267_v46, %v3269_v18  ;;  %v6159_v41 = vsel %vm6838_vm5, %v3269_v18, %v3271_v13  ;;  %vm6850_vm15 = vmmov %vm6849_vm9 }
 0xd3d   :  { %v3306_v52 = vsel %vm6839_vm12, %v6156_v5, 0.0  ;;  %v3105_v54 = vpop.permute.xlu1 %3104  ;;  %3368 = vrot.lane.b32.xlu0 %v3249_v14, %s4648_s18  ;;  %vm6851_vm5 = vmmov %vm6841_vm0 }
 0xd3e   :  { %3314 = vst [vmem:[#allocation3 + $0xc0] sm:$0xff] %v3306_v52  ;;  %vm6852_vm12 = vmmov %vm6841_vm0 }
 0xd3f   :  { %3360 = vrot.lane.b32.xlu1 %v5979_v51, %s4648_s18  ;;  %v3185_v31 = vpop.permute.xlu0 %3184 }
 0xd40   :  { %v6168_v61 = vsel %vm6840_vm11, %v3183_v11, %v3185_v31  ;;  %v6171_v62 = vsel %vm6841_vm0, %v3185_v31, %v3187_v37  ;;  %v3794_v37 = vld [vmem:[#allocation3 + $0x248] sm:$0x1]  ;;  %vm6853_vm11 = vcmask 1039360  }
 0xd41   :  { %v3222_v40 = vsel %vm6842_vm2, %v6168_v61, 0.0  ;;  %v3589_v59 = vpop.permute.xlu1 %3588  ;;  %3364 = vrot.lane.b32.xlu0 %v6005_v2, %s4648_s18  ;;  %4169 = vmatprep.subr.msk.mxu1 %vm6849_vm9, %v3794_v37  ;;  %vm6854_vm0 = vmmov %vm6853_vm11 }
 0xd42   :  { %3230 = vst [vmem:[#allocation3 + $0x80] sm:$0xff] %v3222_v40  ;;  %4170 = vmatpush1.msk.msra.mxu1 %vm6850_vm15, %v3793_v6  ;;  %vm6864_vm15 = vcmp.le.s32.totalorder %v4692_v10, 14 }
 0xd43   :  { %3674 = vrot.lane.b32.xlu1 %v5996_v55, %s4640_s0  ;;  %v3505_v32 = vpop.permute.xlu0 %3504 }
 0xd44   :  { %v6181_v49 = vsel %vm6843_vm3, %v3503_v45, %v3505_v32  ;;  %v6184_v50 = vsel %vm6844_vm10, %v3505_v32, %v3507_v33  ;;  %vm6855_vm10 = vmmov %vm6843_vm3 }
 0xd45   :  { %v3542_v39 = vsel %vm6845_vm6, %v6181_v49, 0.0  ;;  %v3509_v25 = vpop.permute.xlu1 %3508  ;;  %3678 = vrot.lane.b32.xlu0 %v6070_v35, %s4640_s0  ;;  %vm6856_vm6 = vmmov %vm6848_vm1 }
 0xd46   :  { %3550 = vst [vmem:[#allocation3 + $0x180] sm:$0xff] %v3542_v39  ;;  %v6266_v39 = vld [vmem:[%s6597_s1 + $0x180] ss:$8 sm:$0x7] }
 0xd47   :  { %3670 = vrot.lane.b32.xlu1 %v5960_v26, %s4640_s0  ;;  %v6193_v34 = vpop.permute.xlu0 %3420  ;;  %6859 = vst [vmem:[#allocation9_spill] sm:$0xff] %v6266_v39 }
 0xd49   :  { %v3425_v44 = vpop.permute.xlu1 %3424  ;;  %3362 = vrot.lane.b32.xlu0 %v6070_v35, %s4648_s18 }
 0xd4b   :  { %3602 = vrot.lane.b32.xlu1 %v5993_v47, %s4647_s17  ;;  %v3277_v3 = vpop.permute.xlu0 %3276 }
 0xd4d   :  { %v3109_v57 = vpop.permute.xlu1 %3108  ;;  %3358 = vrot.lane.b32.xlu0 %v5996_v55, %s4648_s18 }
 0xd4f   :  { %3354 = vrot.lane.b32.xlu1 %v5960_v26, %s4648_s18  ;;  %v3193_v53 = vpop.permute.xlu0 %3192 }
 0xd51   :  { %v3593_v46 = vpop.permute.xlu1 %3592  ;;  %3522 = vrot.lane.b32.xlu0 %v5993_v47, %s4646_s16 }
 0xd53   :  { %3668 = vrot.lane.b32.xlu1 %v5982_v36, %s4640_s0  ;;  %v3513_v35 = vpop.permute.xlu0 %3512 }
 0xd55   :  { %v3275_v14 = vpop.permute.xlu1 %3274  ;;  %3672 = vrot.lane.b32.xlu0 %v6042_v56, %s4640_s0 }
 0xd56   :  { %v6210_v13 = vsel %vm6846_vm13, %v3273_v38, %v3275_v14  ;;  %v6213_v11 = vsel %vm6847_vm14, %v3275_v14, %v3277_v3  ;;  %vm6857_vm13 = vcmask 777216   ;;  %v3803_v3 = vrot.slane %v6266_v39, %v4689_v9 }
 0xd57   :  { %v3308_v43 = vsel %vm6848_vm1, %v6210_v13, 0.0  ;;  %3664 = vrot.lane.b32.xlu1 %v5951_v17, %s4640_s0  ;;  %v3429_v33 = vpop.permute.xlu0 %3428  ;;  %vm6858_vm14 = vmmov %vm6857_vm13  ;;  %vm6860_vm1 = vcmask 900096  }
 0xd58   :  { %3316 = vst [vmem:[#allocation3 + $0xd0] sm:$0xff] %v3308_v43  ;;  %vm6862_vm9 = vmmov %vm6860_vm1  ;;  %3882 = vmatprep.mubr.f32.mxu0 %v3803_v3 }
 0xd59   :  { %v3191_v16 = vpop.permute.xlu1 %3190  ;;  %3356 = vrot.lane.b32.xlu0 %v6042_v56, %s4648_s18 }
 0xd5a   :  { %v6225_v42 = vsel %vm6851_vm5, %v3189_v7, %v3191_v16  ;;  %v6228_v45 = vsel %vm6852_vm12, %v3191_v16, %v3193_v53  ;;  %vm6865_vm5 = vmmov %vm6854_vm0 }
 0xd5b   :  { %v3224_v24 = vsel %vm6842_vm2, %v6225_v42, 0.0  ;;  %3438 = vrot.lane.b32.xlu1 %v5993_v47, %s4645_s15  ;;  %v3107_v28 = vpop.permute.xlu0 %3106  ;;  %vm6866_vm12 = vmmov %vm6857_vm13 }
 0xd5c   :  { %3232 = vst [vmem:[#allocation3 + $0x90] sm:$0xff] %v3224_v24  ;;  %v6236_v38 = vsel %vm6853_vm11, %v3105_v54, %v3107_v28  ;;  %v6239_v56 = vsel %vm6854_vm0, %v3107_v28, %v3109_v57  ;;  %vm6867_vm11 = vmmov %vm6854_vm0 }
 0xd5d   :  { %v3140_v60 = vsel %vm4707_vm4, %v6236_v38, 0.0  ;;  %v3511_v7 = vpop.permute.xlu1 %3510  ;;  %3352 = vrot.lane.b32.xlu0 %v5982_v36, %s4648_s18  ;;  %vm6868_vm0 = vmmov %vm6866_vm12 }
 0xd5e   :  { %3148 = vst [vmem:[#allocation3 + $0x50] sm:$0xff] %v3140_v60  ;;  %v6247_v18 = vsel %vm6843_vm3, %v3509_v25, %v3511_v7  ;;  %v6250_v52 = vsel %vm6855_vm10, %v3511_v7, %v3513_v35  ;;  %vm6869_vm3 = vcmask 916480  }
 0xd5f   :  { %v3544_v54 = vsel %vm6856_vm6, %v6247_v18, 0.0  ;;  %3682 = vrot.lane.b32.xlu1 %v5993_v47, %s4640_s0  ;;  %v3591_v31 = vpop.permute.xlu0 %3590  ;;  %vm6870_vm10 = vmmov %vm6869_vm3 }
 0xd60   :  { %3552 = vst [vmem:[#allocation3 + $0x190] sm:$0xff] %v3544_v54  ;;  %v6258_v40 = vsel %vm6857_vm13, %v3589_v59, %v3591_v31  ;;  %v6261_v32 = vsel %vm6858_vm14, %v3591_v31, %v3593_v46  ;;  %vm6871_vm13 = vcmask 1031168  }
 0xd61   :  { %3632 = vst [vmem:[#allocation3 + $0x1d0] sm:$0xff] %v6258_v40  ;;  %v3427_v25 = vpop.permute.xlu1 %3426  ;;  %3666 = vrot.lane.b32.xlu0 %v5974_v48, %s4640_s0  ;;  %vm6872_vm14 = vmmov %vm6871_vm13 }
 0xd62   :  { %v6274_v59 = vsel %vm6860_vm1, %v3425_v44, %v3427_v25  ;;  %v6277_v57 = vsel %vm6862_vm9, %v3427_v25, %v3429_v33  ;;  %vm6873_vm1 = vcmask 785408  }
 0xd63   :  { %6861 = vst [vmem:[#allocation10_spill] sm:$0xff] %v6274_v59  ;;  %6863 = vst [vmem:[#allocation11_spill] sm:$0xff] %v6277_v57  ;;  %v3460_v53 = vsel %vm6864_vm15, %v6274_v59, 0.0  ;;  %3366 = vrot.lane.b32.xlu1 %v5993_v47, %s4648_s18  ;;  %v3279_v46 = vpop.permute.xlu0 %3278 }
 0xd64   :  { %3468 = vst [vmem:[#allocation3 + $0x150] sm:$0xff] %v3460_v53  ;;  %vm6874_vm9 = vmmov %vm6873_vm1 }
 0xd65   :  { %v3283_v35 = vpop.permute.xlu1 %3282  ;;  %3350 = vrot.lane.b32.xlu0 %v5974_v48, %s4648_s18  ;;  %vm6875_vm15 = vmmov %vm6856_vm6 }
 0xd67   :  { %3348 = vrot.lane.b32.xlu1 %v5951_v17, %s4648_s18  ;;  %v3195_v9 = vpop.permute.xlu0 %3194 }
 0xd69   :  { %v3199_v44 = vpop.permute.xlu1 %3198  ;;  %3346 = vrot.lane.b32.xlu0 %v5963_v4, %s4648_s18 }
 0xd6b   :  { %3662 = vrot.lane.b32.xlu1 %v5963_v4, %s4640_s0  ;;  %v3111_v14 = vpop.permute.xlu0 %3110 }
 0xd6d   :  { %v3519_v37 = vpop.permute.xlu1 %3518 }
 0xd6f   :  { %v3595_v43 = vpop.permute.xlu0 %3594 }
 0xd71   :  { %v3435_v33 = vpop.permute.xlu1 %3434 }
 0xd73   :  { %v3515_v6 = vpop.permute.xlu0 %3514 }
 0xd75   :  { %v3113_v16 = vpop.permute.xlu1 %3112 }
 0xd76   :  { %v6293_v24 = vsel %vm6865_vm5, %v3111_v14, %v3113_v16  ;;  %vm6876_vm5 = vcmask 900096  }
 0xd77   :  { %v3142_v17 = vsel %vm4707_vm4, %v6293_v24, 0.0  ;;  %v3431_v48 = vpop.permute.xlu0 %3430 }
 0xd78   :  { %3150 = vst [vmem:[#allocation3 + $0x60] sm:$0xff] %v3142_v17 }
 0xd79   :  { %v3597_v28 = vpop.permute.xlu1 %3596 }
 0xd7a   :  { %v6299_v60 = vsel %vm6866_vm12, %v3595_v43, %v3597_v28  ;;  %vm6878_vm12 = vmmov %vm6876_vm5 }
 0xd7b   :  { %3634 = vst [vmem:[#allocation3 + $0x1e0] sm:$0xff] %v6299_v60  ;;  %v3115_v7 = vpop.permute.xlu0 %3114 }
 0xd7c   :  { %v6303_v54 = vsel %vm6867_vm11, %v3113_v16, %v3115_v7  ;;  %vm6879_vm11 = vcmp.le.s32.totalorder %v4692_v10, 14 }
 0xd7d   :  { %v3285_v31 = vpop.permute.xlu1 %3284 }
 0xd7f   :  { %v3599_v25 = vpop.permute.xlu0 %3598 }
 0xd80   :  { %v6306_v3 = vsel %vm6868_vm0, %v3597_v28, %v3599_v25  ;;  %vm6880_vm0 = vmmov %vm6869_vm3 }
 0xd81   :  { %v3201_v53 = vpop.permute.xlu1 %3200 }
 0xd83   :  { %v3281_v14 = vpop.permute.xlu0 %3280 }
 0xd84   :  { %v3294_v30 = vsel %vm6869_vm3, %v3279_v46, %v3281_v14  ;;  %v3295_v17 = vsel %vm6870_vm10, %v3281_v14, %v3283_v35  ;;  %vm6881_vm3 = vmmov %vm6880_vm0 }
 0xd85   :  { %v3310_v43 = vsel %vm6856_vm6, %v3294_v30, 0.0  ;;  %v3117_v29 = vpop.permute.xlu1 %3116  ;;  %vm6882_vm10 = vmmov %vm6856_vm6  ;;  %vm6883_vm6 = vcmp.ge.s32.totalorder %v4696_v15, 1 }
 0xd86   :  { %3318 = vst [vmem:[#allocation3 + $0xe0] sm:$0xff] %v3310_v43 }
 0xd87   :  { %v3197_v19 = vpop.permute.xlu0 %3196 }
 0xd88   :  { %v3210_v16 = vsel %vm6871_vm13, %v3195_v9, %v3197_v19  ;;  %v3211_v7 = vsel %vm6872_vm14, %v3197_v19, %v3199_v44  ;;  %vm6884_vm13 = vmmov %vm6882_vm10 }
 0xd89   :  { %v3226_v28 = vsel %vm6842_vm2, %v3210_v16, 0.0  ;;  %v6316_v25 = vpop.permute.xlu1 %3600  ;;  %vm6885_vm14 = vmmov %vm6876_vm5 }
 0xd8a   :  { %3234 = vst [vmem:[#allocation3 + $0xa0] sm:$0xff] %v3226_v28 }
 0xd8b   :  { %v3517_v39 = vpop.permute.xlu0 %3516 }
 0xd8c   :  { %v6319_v46 = vsel %vm6873_vm1, %v3515_v6, %v3517_v39  ;;  %v6322_v35 = vsel %vm6874_vm9, %v3517_v39, %v3519_v37  ;;  %vm6886_vm1 = vmmov %vm6883_vm6 }
 0xd8d   :  { %v3546_v14 = vsel %vm6875_vm15, %v6319_v46, 0.0  ;;  %v6327_v9 = vpop.permute.xlu1 %3520  ;;  %vm6887_vm9 = vmmov %vm6882_vm10 }
 0xd8e   :  { %3554 = vst [vmem:[#allocation3 + $0x1a0] sm:$0xff] %v3546_v14  ;;  %vm6888_vm15 = vmmov %vm6876_vm5 }
 0xd8f   :  { %v3433_v19 = vpop.permute.xlu0 %3432 }
 0xd90   :  { %v6330_v44 = vsel %vm6876_vm5, %v3431_v48, %v3433_v19  ;;  %v6333_v43 = vsel %vm6878_vm12, %v3433_v19, %v3435_v33  ;;  %vm6889_vm5 = vmmov %vm6886_vm1 }
 0xd91   :  { %6877 = vst [vmem:[#allocation12_spill] sm:$0xff] %v6330_v44  ;;  %v3462_v6 = vsel %vm6879_vm11, %v6330_v44, 0.0  ;;  %v6338_v39 = vpop.permute.xlu1 %3436  ;;  %vm6890_vm12 = vmmov %vm6879_vm11 }
 0xd92   :  { %3470 = vst [vmem:[#allocation3 + $0x160] sm:$0xff] %v3462_v6  ;;  %vm6891_vm11 = vmmov %vm6887_vm9 }
 0xd93   :  { %v3289_v37 = vpop.permute.xlu0 %3288 }
 0xd95   :  { %v3121_v28 = vpop.permute.xlu1 %3120 }
 0xd97   :  { %v3205_v8 = vpop.permute.xlu0 %3204 }
 0xd99   :  { %v6340_v59 = vpop.permute.xlu1 %3524 }
 0xd9b   :  { %v6342_v14 = vpop.permute.xlu0 %3604 }
 0xd9d   :  { %v3287_v1 = vpop.permute.xlu1 %3286 }
 0xd9e   :  { %v3296_v48 = vsel %vm6880_vm0, %v3285_v31, %v3287_v1  ;;  %v3297_v33 = vsel %vm6881_vm3, %v3287_v1, %v3289_v37  ;;  %vm6892_vm0 = vcmask 1031168  }
 0xd9f   :  { %v3312_v19 = vsel %vm6882_vm10, %v3296_v48, 0.0  ;;  %v6348_v57 = vpop.permute.xlu0 %3440  ;;  %4583 = vmatprep.subr.msk.mxu0 %vm6883_vm6, %v3297_v33  ;;  %vm6893_vm3 = vmmov %vm6892_vm0 }
 0xda0   :  { %3320 = vst [vmem:[#allocation3 + $0xf0] sm:$0xff] %v3312_v19  ;;  %4584 = vmatpush1.msk.msra.mxu0 %vm6884_vm13, %v3296_v48  ;;  %vm6894_vm10 = vmmov %vm6886_vm1  ;;  %vm6896_vm13 = vcmp.le.s32.totalorder %v4696_v15, 14  ;;  %v6937_v19 = vld [vmem:[#allocation8_spill] sm:$0xff] }
 0xda1   :  { %v3423_v6 = vpop.permute.xlu1 %3422  ;;  %4585 = vmatprep.subr.msk.mxu0 %vm6886_vm1, %v3295_v17  ;;  %vm6895_vm6 = vmmov %vm6887_vm9  ;;  %vm6898_vm1 = vcmask 1039360  }
 0xda2   :  { %v6356_v44 = vsel %vm6885_vm14, %v6193_v34, %v3423_v6  ;;  %4586 = vmatpush1.msk.msra.mxu0 %vm6887_vm9, %v3294_v30  ;;  %vm6897_vm14 = vmmov %vm6896_vm13 }
 0xda3   :  { %v3419_v1 = vpop.permute.xlu0 %3418  ;;  %4587 = vmatprep.subr.msk.mxu0 %vm6889_vm5, %v6213_v11  ;;  %vm6899_vm9 = vmmov %vm6898_vm1 }
 0xda4   :  { %v6364_v31 = vsel %vm6888_vm15, %v3419_v1, %v6193_v34  ;;  %4588 = vmatpush1.msk.msra.mxu0 %vm6891_vm11, %v6210_v13  ;;  %vm6900_vm15 = vmmov %vm6896_vm13 }
 0xda5   :  { %v3458_v37 = vsel %vm6890_vm12, %v6364_v31, 0.0  ;;  %v3203_v48 = vpop.permute.xlu1 %3202  ;;  %4589 = vmatprep.subr.msk.mxu0 %vm6894_vm10, %v6159_v41  ;;  %vm6901_vm5 = vmmov %vm6896_vm13 }
 0xda6   :  { %3466 = vst [vmem:[#allocation3 + $0x140] sm:$0xff] %v3458_v37  ;;  %v3212_v30 = vsel %vm6892_vm0, %v3201_v53, %v3203_v48  ;;  %v3213_v17 = vsel %vm6893_vm3, %v3203_v48, %v3205_v8  ;;  %4590 = vmatpush1.msk.msra.mxu0 %vm6895_vm6, %v6156_v5  ;;  %vm6904_vm0 = vmmov %vm6894_vm10  ;;  %vm6908_vm6 = vcmask 777216  }
 0xda7   :  { %v3228_v34 = vsel %vm6842_vm2, %v3212_v30, 0.0  ;;  %v6382_v11 = vpop.permute.xlu0 %3684  ;;  %4591 = vmatprep.subr.msk.mxu0 %vm6896_vm13, %v3213_v17  ;;  %vm6905_vm3 = vmmov %vm6904_vm0  ;;  %v6950_v17 = vld [vmem:[#allocation4_spill] sm:$0xff] }
 0xda8   :  { %3236 = vst [vmem:[#allocation3 + $0xb0] sm:$0xff] %v3228_v34  ;;  %4592 = vmatpush1.msk.msra.mxu0 %vm6842_vm2, %v3212_v30  ;;  %vm6907_vm10 = vmmov %vm6904_vm0  ;;  %v6951_v34 = vld [vmem:[#allocation9_spill] sm:$0xff] }
 0xda9   :  { %v6389_v13 = vpop.permute.xlu1 %3680  ;;  %4593 = vmatprep.subr.msk.mxu0 %vm6897_vm14, %v3211_v7  ;;  %vm6909_vm13 = vmmov %vm6908_vm6 }
 0xdaa   :  { %4594 = vmatpush1.msk.msra.mxu0 %vm6842_vm2, %v3210_v16 }
 0xdab   :  { %v3119_v8 = vpop.permute.xlu0 %3118  ;;  %4595 = vmatprep.subr.msk.mxu0 %vm6900_vm15, %v6228_v45  ;;  %vm6914_vm15 = vcmp.ge.s32.totalorder %v4692_v10, 1 }
 0xdac   :  { %v3128_v41 = vsel %vm6898_vm1, %v3117_v29, %v3119_v8  ;;  %v3129_v5 = vsel %vm6899_vm9, %v3119_v8, %v3121_v28  ;;  %4596 = vmatpush1.msk.msra.mxu0 %vm6842_vm2, %v6225_v42  ;;  %vm6911_vm1 = vnez %v6662_v63  ;;  %vm6912_vm9 = vcmask 785408   ;;  %v6952_v8 = vld [vmem:[#allocation5_spill] sm:$0xff] }
 0xdad   :  { %v3144_v53 = vsel %vm4707_vm4, %v3128_v41, 0.0  ;;  %v3677_v33 = vpop.permute.xlu1 %3676  ;;  %4597 = vmatprep.subr.msk.mxu0 %vm6901_vm5, %v6171_v62 }
 0xdae   :  { %3152 = vst [vmem:[#allocation3 + $0x70] sm:$0xff] %v3144_v53  ;;  %4598 = vmatpush1.msk.msra.mxu0 %vm6842_vm2, %v6168_v61  ;;  %vm6902_vm2 = vcmask 769024  }
 0xdaf   :  { %v6410_v29 = vpop.permute.xlu0 %3368  ;;  %3834 = vmatprep.subr.mxu0 %v3129_v5  ;;  %vm6903_vm11 = vmmov %vm6902_vm2 }
 0xdb0   :  { %4599 = vmatpush1.msk.msra.mxu0 %vm4707_vm4, %v3128_v41  ;;  %vm6915_vm5 = vmmov %vm6902_vm2  ;;  %v3807_v41 = vrot.slane %v6951_v34, %v6952_v8 }
 0xdb1   :  { %v3361_v45 = vpop.permute.xlu1 %3360  ;;  %3836 = vmatprep.subr.mxu0 %v6303_v54 }
 0xdb2   :  { %4600 = vmatpush1.msk.msra.mxu0 %vm4707_vm4, %v6293_v24 }
 0xdb3   :  { %v6418_v16 = vpop.permute.xlu0 %3364  ;;  %3838 = vmatprep.subr.mxu0 %v6239_v56 }
 0xdb4   :  { %4601 = vmatpush1.msk.msra.mxu0 %vm4707_vm4, %v6236_v38 }
 0xdb5   :  { %v3675_v62 = vpop.permute.xlu1 %3674  ;;  %3840 = vmatprep.subr.mxu0 %v6143_v23 }
 0xdb6   :  { %v6428_v22 = vsel %vm6902_vm2, %v3675_v62, %v3677_v33  ;;  %4602 = vmatpush1.msk.msra.mxu0 %vm4707_vm4, %v6127_v12  ;;  %vm6906_vm4 = vcmask 908288   ;;  %vm6916_vm2 = vmmov %vm6890_vm12 }
 0xdb7   :  { %v3706_v61 = vsel %vm6890_vm12, %v6428_v22, 0.0  ;;  %v3679_v42 = vpop.permute.xlu0 %3678  ;;  %4603 = vmatprep.subr.msk.mxu0 %vm6904_vm0, %v5993_v47  ;;  %vm6910_vm14 = vmmov %vm6906_vm4 }
 0xdb8   :  { %3714 = vst [vmem:[#allocation3 + $0x220] sm:$0xff] %v3706_v61  ;;  %v6438_v56 = vsel %vm6903_vm11, %v3677_v33, %v3679_v42  ;;  %4604 = vmatpush1.msk.msra.mxu0 %vm4724_vm7, %v6005_v2  ;;  %v3722_v2 = vld [vmem:[#allocation3 + $0x8] sm:$0xff]  ;;  %vm6917_vm12 = vmmov %vm6915_vm5  ;;  %vm6918_vm11 = vnez %v6669_v0  ;;  %v6956_v42 = vld [vmem:[#allocation6_spill] sm:$0xff] }
 0xdb9   :  { %v3671_v38 = vpop.permute.xlu1 %3670  ;;  %4605 = vmatprep.subr.msk.mxu0 %vm6905_vm3, %v5979_v51  ;;  %vm6919_vm0 = vmmov %vm6914_vm15 }
 0xdba   :  { %4606 = vmatpush1.msk.msra.mxu0 %vm4724_vm7, %v5996_v55  ;;  %vm6920_vm3 = vmmov %vm6919_vm0 }
 0xdbb   :  { %v3363_v23 = vpop.permute.xlu0 %3362  ;;  %4607 = vmatprep.subr.msk.mxu0 %vm6907_vm10, %v5960_v26  ;;  %vm6921_vm10 = vmmov %vm6919_vm0 }
 0xdbc   :  { %v6453_v21 = vsel %vm6906_vm4, %v3361_v45, %v3363_v23  ;;  %4608 = vmatpush1.msk.msra.mxu0 %vm4724_vm7, %v5982_v36 }
 0xdbd   :  { %v3603_v47 = vpop.permute.xlu1 %3602  ;;  %3848 = vmatprep.subr.mxu0 %v3722_v2 }
 0xdbe   :  { %v3612_v51 = vsel %vm6908_vm6, %v6316_v25, %v3603_v47  ;;  %v3613_v12 = vsel %vm6909_vm13, %v3603_v47, %v6342_v14  ;;  %4609 = vmatpush1.msk.msra.mxu0 %vm4724_vm7, %v5963_v4  ;;  %vm6913_vm7 = vmmov %vm6912_vm9  ;;  %vm6922_vm6 = vcmask 900096   ;;  %v6935_v14 = vld [vmem:[#allocation11_spill] sm:$0xff] }
 0xdbf   :  { %3636 = vst [vmem:[#allocation3 + $0x1f0] sm:$0xff] %v3612_v51  ;;  %v3359_v55 = vpop.permute.xlu0 %3358  ;;  %4610 = vmatprep.subr.msk.mxu0 %vm6911_vm1, %v3613_v12  ;;  %vm6923_vm13 = vmmov %vm6922_vm6 }
 0xdc0   :  { %v6469_v26 = vsel %vm6910_vm14, %v3359_v55, %v3361_v45  ;;  %3851 = vmatpush2.msra.mxu0 %v3612_v51  ;;  %vm6924_vm14 = vmmov %vm6916_vm2 }
 0xdc1   :  { %3390 = vst [vmem:[#allocation3 + $0x120] sm:$0xff] %v6469_v26  ;;  %v3355_v36 = vpop.permute.xlu1 %3354  ;;  %4611 = vmatprep.subr.msk.mxu0 %vm6911_vm1, %v6306_v3 }
 0xdc2   :  { %3853 = vmatpush2.msra.mxu0 %v6299_v60 }
 0xdc3   :  { %v3523_v24 = vpop.permute.xlu0 %3522  ;;  %4612 = vmatprep.subr.msk.mxu0 %vm6911_vm1, %v6261_v32 }
 0xdc4   :  { %v3532_v27 = vsel %vm6912_vm9, %v6327_v9, %v3523_v24  ;;  %v3533_v4 = vsel %vm6913_vm7, %v3523_v24, %v6340_v59  ;;  %3855 = vmatpush2.msra.mxu0 %v6258_v40  ;;  %vm6926_vm9 = vmmov %vm6906_vm4  ;;  %vm6927_vm7 = vcmp.le.s32.totalorder %v4696_v15, 14 }
 0xdc5   :  { %v3548_v54 = vsel %vm6914_vm15, %v3532_v27, 0.0  ;;  %v3669_v7 = vpop.permute.xlu1 %3668  ;;  %4613 = vmatprep.subr.msk.mxu0 %vm6911_vm1, %v6149_v20  ;;  %vm6925_vm1 = vmmov %vm6919_vm0 }
 0xdc6   :  { %3556 = vst [vmem:[#allocation3 + $0x1b0] sm:$0xff] %v3548_v54  ;;  %v3688_v3 = vsel %vm6915_vm5, %v3669_v7, %v3671_v38  ;;  %3857 = vmatpush2.msra.mxu0 %v6137_v58  ;;  %vm6928_vm15 = vmmov %vm6916_vm2 }
 0xdc7   :  { %v3704_v59 = vsel %vm6916_vm2, %v3688_v3, 0.0  ;;  %v3673_v60 = vpop.permute.xlu0 %3672  ;;  %4614 = vmatprep.subr.msk.mxu0 %vm6918_vm11, %v3533_v4  ;;  %vm6929_vm2 = vmmov %vm6915_vm5 }
 0xdc8   :  { %3712 = vst [vmem:[#allocation3 + $0x210] sm:$0xff] %v3704_v59  ;;  %v3689_v32 = vsel %vm6917_vm12, %v3671_v38, %v3673_v60  ;;  %4615 = vmatpush2.msk.msra.mxu0 %vm6919_vm0, %v3532_v27  ;;  %vm6930_vm12 = vmmov %vm6927_vm7 }
 0xdc9   :  { %v3665_v40 = vpop.permute.xlu1 %3664  ;;  %4616 = vmatprep.subr.msk.mxu0 %vm6918_vm11, %v6322_v35 }
 0xdca   :  { %4617 = vmatpush2.msk.msra.mxu0 %vm6920_vm3, %v6319_v46  ;;  %vm6934_vm3 = vmmov %vm6929_vm2 }
 0xdcb   :  { %v3357_v63 = vpop.permute.xlu0 %3356  ;;  %4618 = vmatprep.subr.msk.mxu0 %vm6918_vm11, %v6250_v52 }
 0xdcc   :  { %v3373_v58 = vsel %vm6906_vm4, %v3355_v36, %v3357_v63  ;;  %4619 = vmatpush2.msk.msra.mxu0 %vm6921_vm10, %v6247_v18  ;;  %vm6936_vm4 = vmmov %vm6927_vm7  ;;  %vm6938_vm10 = vnez %v6937_v19 }
 0xdcd   :  { %v3439_v20 = vpop.permute.xlu1 %3438  ;;  %4620 = vmatprep.subr.msk.mxu0 %vm6918_vm11, %v6184_v50  ;;  %vm6931_vm11 = vmmov %vm6924_vm14 }
 0xdce   :  { %v3448_v25 = vsel %vm6922_vm6, %v6338_v39, %v3439_v20  ;;  %v3449_v35 = vsel %vm6923_vm13, %v3439_v20, %v6348_v57  ;;  %4621 = vmatpush2.msk.msra.mxu0 %vm6925_vm1, %v6181_v49  ;;  %v6932_v39 = vld [vmem:[#allocation12_spill] sm:$0xff]  ;;  %vm6933_vm0 = vmmov %vm6931_vm11 }
 0xdcf   :  { %v3464_v46 = vsel %vm6924_vm14, %v3448_v25, 0.0  ;;  %v3353_v9 = vpop.permute.xlu0 %3352  ;;  %4622 = vmatprep.subr.msk.mxu0 %vm6927_vm7, %v3449_v35  ;;  %vm6940_vm6 = vmmov %vm6933_vm0 }
 0xdd0   :  { %3472 = vst [vmem:[#allocation3 + $0x170] sm:$0xff] %v3464_v46  ;;  %v3372_v18 = vsel %vm6926_vm9, %v3353_v9, %v3355_v36  ;;  %4623 = vmatpush2.msk.msra.mxu0 %vm6928_vm15, %v3448_v25  ;;  %vm6941_vm13 = vmmov %vm6933_vm0 }
 0xdd1   :  { %3388 = vst [vmem:[#allocation3 + $0x110] sm:$0xff] %v3372_v18  ;;  %v3683_v52 = vpop.permute.xlu1 %3682  ;;  %4624 = vmatprep.subr.msk.mxu0 %vm6930_vm12, %v6333_v43  ;;  %v6939_v43 = vld [vmem:[#allocation10_spill] sm:$0xff]  ;;  %vm6942_vm14 = vmmov %vm6926_vm9 }
 0xdd2   :  { %v3692_v0 = vsel %vm6915_vm5, %v6389_v13, %v3683_v52  ;;  %v3693_v50 = vsel %vm6929_vm2, %v3683_v52, %v6382_v11  ;;  %4625 = vmatpush2.msk.msra.mxu0 %vm6933_vm0, %v6932_v39  ;;  %vm6943_vm1 = vmmov %vm6926_vm9  ;;  %v3799_v11 = vrot.slane %v6951_v34, %v6950_v17 }
 0xdd3   :  { %v3708_v49 = vsel %vm6931_vm11, %v3692_v0, 0.0  ;;  %v3667_v57 = vpop.permute.xlu0 %3666  ;;  %4626 = vmatprep.subr.msk.mxu0 %vm6936_vm4, %v6935_v14  ;;  %4627 = vmatprep.subr.msk.mxu1 %vm6938_vm10, %v3693_v50  ;;  %vm6944_vm9 = vmmov %vm6936_vm4  ;;  %vm6955_vm4 = vcmask 269312  }
 0xdd4   :  { %3716 = vst [vmem:[#allocation3 + $0x230] sm:$0xff] %v3708_v49  ;;  %v3687_v28 = vsel %vm6934_vm3, %v3665_v40, %v3667_v57  ;;  %4628 = vmatpush2.msk.msra.mxu0 %vm6940_vm6, %v6939_v43  ;;  %4629 = vmatpush1.msk.msra.mxu1 %vm6941_vm13, %v3692_v0  ;;  %vm6945_vm7 = vmmov %vm6933_vm0 }
 0xdd5   :  { %v3367_v6 = vpop.permute.xlu1 %3366  ;;  %4630 = vmatprep.subr.msk.mxu0 %vm6944_vm9, %v6356_v44  ;;  %4631 = vmatprep.subr.msk.mxu1 %vm6938_vm10, %v6438_v56  ;;  %vm6946_vm15 = vmmov %vm6933_vm0 }
 0xdd6   :  { %v3376_v1 = vsel %vm6942_vm14, %v6418_v16, %v3367_v6  ;;  %v3377_v37 = vsel %vm6943_vm1, %v3367_v6, %v6410_v29  ;;  %4632 = vmatpush2.msk.msra.mxu0 %vm6945_vm7, %v6364_v31  ;;  %4633 = vmatpush1.msk.msra.mxu1 %vm6946_vm15, %v6428_v22  ;;  %vm6947_vm5 = vmmov %vm6933_vm0 }
 0xdd7   :  { %3392 = vst [vmem:[#allocation3 + $0x130] sm:$0xff] %v3376_v1  ;;  %v3351_v48 = vpop.permute.xlu0 %3350  ;;  %3874 = vmatprep.subr.mxu0 %v3377_v37  ;;  %4634 = vmatprep.subr.msk.mxu1 %vm6938_vm10, %v3689_v32  ;;  %vm6948_vm2 = vmmov %vm6943_vm1 }
 0xdd8   :  { %3875 = vmatpush2.msra.mxu0 %v3376_v1  ;;  %4635 = vmatpush1.msk.msra.mxu1 %vm6947_vm5, %v3688_v3  ;;  %vm6949_vm12 = vmmov %vm6943_vm1 }
 0xdd9   :  { %v3349_v15 = vpop.permute.xlu1 %3348  ;;  %3876 = vmatprep.subr.mxu0 %v6453_v21  ;;  %4636 = vmatprep.subr.msk.mxu1 %vm6938_vm10, %v3687_v28  ;;  %vm6953_vm11 = vmmov %vm6934_vm3 }
 0xdda   :  { %v3371_v44 = vsel %vm6948_vm2, %v3349_v15, %v3351_v48  ;;  %3877 = vmatpush2.msra.mxu0 %v6469_v26  ;;  %vm6954_vm3 = vmmov %vm6933_vm0 }
 0xddb   :  { %v3347_v31 = vpop.permute.xlu0 %3346  ;;  %3878 = vmatprep.subr.mxu0 %v3373_v58 }
 0xddc   :  { %v3370_v30 = vsel %vm6949_vm12, %v3347_v31, %v3349_v15  ;;  %3879 = vmatpush2.msra.mxu0 %v3372_v18 }
 0xddd   :  { %3386 = vst [vmem:[#allocation3 + $0x100] sm:$0xff] %v3370_v30  ;;  %v3663_v13 = vpop.permute.xlu1 %3662  ;;  %3880 = vmatprep.subr.mxu0 %v3371_v44 }
 0xdde   :  { %v3686_v5 = vsel %vm6953_vm11, %v3663_v13, %v3665_v40  ;;  %3881 = vmatpush2.msra.mxu0 %v3370_v30 }
 0xddf   :  { %v3702_v53 = vsel %vm6933_vm0, %v3686_v5, 0.0  ;;  %4637 = vmatpush1.msk.msra.mxu1 %vm6954_vm3, %v3686_v5  ;;  %3883 = vmatmul.mubr.f32.vlgmr.msra.gmra.mxu0 %v3799_v11 }
 0xde0   :  { %3710 = vst [vmem:[#allocation3 + $0x200] sm:$0xff] %v3702_v53  ;;  %4171 = vmatmul.mubr.msk.f32.vlgmr.msra.gmra.mxu1 %vm6955_vm4, %v3807_v41 }
 0xe9f   :  { %v3884_v33 = vpop.f32.mrf.mxu0 }
 0xea0   :  { %v3955_v29 = vpop.f32.mrf.mxu1 }
 0xea1   :  { %v3886_v45 = vpop.f32.mrf.mxu0  ;;  %v3956_v62 = vadd.f32 %v3955_v29, %v3884_v33 }
 0xea2   :  { %v3957_v16 = vpop.f32.mrf.mxu1 }
 0xea3   :  { %v3958_v22 = vadd.f32 %v3957_v16, %v3886_v45 }
 0xea5   :  { %v3962_v61 = vcombine.low %v3956_v62, %v3958_v22 }
 0xea7   :  { %v3969_v56 = vrot.slane %v3962_v61, %v6956_v42 }
 0xea9   :  { %v3976_v38 = vrot.slane %v3969_v56, %v6956_v42 }
 0xeab   :  { %3978 = vst.msk [vmem:[%s6598_s2] sm:$0x3] %vm4733_vm8, %v3976_v38 }

</bundles_post_ra>
